<compile_context>
chip_gen: v6e
topology: v6e:2x2x1
jax: 0.10.0
libtpu: 0.0.40
codegen_flags: <defaults>
</compile_context>

<pallas_src>
import jax
import jax.numpy as jnp
from jax.experimental import pallas as pl
from jax.experimental.pallas import tpu as pltpu


# ---------------------------------------------------------------------------
# Kernel
# ---------------------------------------------------------------------------
def _pow5_kernel(x_ref, o_ref):
    x = x_ref[...]
    # Upcast narrow floats: compute like torch's f32 pow, downcast once at the end.
    if x.dtype in (jnp.bfloat16, jnp.float16):
        x = x.astype(jnp.float32)
    # x**5 with three multiplies (exact for an integer exponent, VPU-only).
    x2 = x * x
    x4 = x2 * x2
    o_ref[...] = (x4 * x).astype(o_ref.dtype)


# ---------------------------------------------------------------------------
# Wrapper
# ---------------------------------------------------------------------------
_SUBLANE_PACK = 32              # row-tile multiple legal for f32/bf16/int8 packing
_TARGET_BLOCK_BYTES = 6 * 1024 * 1024     # ~6 MiB/block -> ~24 MiB double-buffered
_VMEM_LIMIT_BYTES = 32 * 1024 * 1024      # safe on v5e/v6e (128 MiB) and v7x (64 MiB)
_SMALL_FALLBACK_BYTES = 256 * 1024        # below this, XLA-fused x**5 wins


def _round_up(a: int, b: int) -> int:
    return -(-a // b) * b


def pow5(x: jax.Array, donate: bool = False) -> jax.Array:
    """Elementwise x**5 via a Pallas TPU kernel. Matches torch.pow(input, 5)."""
    orig_shape = x.shape
    dtype = x.dtype
    n = x.size
    itemsize = jnp.dtype(dtype).itemsize
    n_bytes = n * itemsize

    # Tiny tensors: custom-call + grid-step overhead dominates; use fused XLA.
    if n == 0 or n_bytes < _SMALL_FALLBACK_BYTES:
        return x ** 5

    # Pick the widest lane-dense trailing dim (multiple of 128) dividing n, so
    # no padding copy is ever needed on the kernel path.
    lanes = None
    for cand in (2048, 1024, 512, 256, 128):
        if n % cand == 0:
            lanes = cand
            break
    if lanes is None:
        # Ragged size: pad/slice would add ~2 extra full HBM passes to a 2-pass
        # kernel. Plain XLA x**5 is already a single fused streaming op.
        return x ** 5

    flat = x.reshape(-1)
    rows = n // lanes
    x2d = flat.reshape(rows, lanes)

    # Row-tile size: aim for ~6 MiB per block, rounded to a multiple of 32
    # sublanes, and guarantee >= 2 blocks when rows allow it so the "parallel"
    # grid axis can use both TensorCores on v7x.
    tr = max(_SUBLANE_PACK,
             (_TARGET_BLOCK_BYTES // (lanes * itemsize)) // _SUBLANE_PACK * _SUBLANE_PACK)
    if rows <= _SUBLANE_PACK:
        tile_rows = rows                          # single full-extent block (legal)
    else:
        half = _round_up(pl.cdiv(rows, 2), _SUBLANE_PACK)
        tile_rows = min(tr, half)                 # >= 2 blocks, multiple of 32

    grid = (pl.cdiv(rows, tile_rows),)            # partial last block is masked

    call_kwargs = {}
    if donate:
        # Reuse the input HBM buffer for the output (caller must not reuse x).
        call_kwargs["input_output_aliases"] = {0: 0}

    out2d = pl.pallas_call(
        _pow5_kernel,
        out_shape=jax.ShapeDtypeStruct((rows, lanes), dtype),
        grid=grid,
        in_specs=[pl.BlockSpec((tile_rows, lanes), lambda i: (i, 0))],
        out_specs=pl.BlockSpec((tile_rows, lanes), lambda i: (i, 0)),
        compiler_params=pltpu.CompilerParams(
            dimension_semantics=("parallel",),
            vmem_limit_bytes=_VMEM_LIMIT_BYTES,
        ),
        cost_estimate=pl.CostEstimate(
            flops=3 * n,
            transcendentals=0,
            bytes_accessed=2 * n * itemsize,
        ),
        **call_kwargs,
    )(x2d)

    return out2d.reshape(orig_shape)


# ---------------------------------------------------------------------------
# Self-test
# ---------------------------------------------------------------------------
if __name__ == "__main__":
    key = jax.random.PRNGKey(0)
    k1, k2, k3 = jax.random.split(key, 3)

    # 1) Small NCHW input matching a typical use of the module (XLA fallback path).
    x_small = jax.random.normal(k1, (2, 4, 16, 16), dtype=jnp.float32)
    # 2) Larger aligned input exercising the Pallas kernel path (2 parallel blocks).
    x_big = jax.random.normal(k2, (4, 8, 128, 256), dtype=jnp.float32)
    # 3) Large ragged size (n % 128 != 0) exercising the no-pad ragged path.
    x_rag = jax.random.normal(k3, (1000003,), dtype=jnp.float32)

    ok = True
    for x in (x_small, x_big, x_rag):
        y = pow5(x)
        jax.block_until_ready(y)
        y_ref = x ** 5
        ok &= (y.shape == x.shape) and (y.dtype == x.dtype)
        ok &= bool(jnp.allclose(y, y_ref, rtol=1e-6, atol=1e-6))

    assert ok
    print("KERNEL_OK")
</pallas_src>

<mosaic_0001>
module attributes {stable_mosaic.version = 11 : i64} {
  func.func @_pow5_kernel(%arg0: i32, %arg1: memref<256x2048xf32, #tpu.memory_space<vmem>>, %arg2: memref<256x2048xf32, #tpu.memory_space<vmem>>) attributes {dimension_semantics = [#tpu.dimension_semantics<parallel>], iteration_bounds = array<i64: 2>, scalar_prefetch = 0 : i64, scratch_operands = 0 : i64, tpu.core_type = #tpu.core_type<tc>, window_params = [{transform_indices = @transform_0, window_bounds = array<i64: 256, 2048>}, {transform_indices = @transform_1, window_bounds = array<i64: 256, 2048>}]} {
    %c0 = arith.constant 0 : index
    %c0_0 = arith.constant 0 : index
    %0 = vector.load %arg1[%c0, %c0_0] : memref<256x2048xf32, #tpu.memory_space<vmem>>, vector<256x2048xf32>
    %1 = arith.mulf %0, %0 : vector<256x2048xf32>
    %2 = arith.mulf %1, %1 : vector<256x2048xf32>
    %3 = arith.mulf %2, %0 : vector<256x2048xf32>
    %c0_1 = arith.constant 0 : index
    %c0_2 = arith.constant 0 : index
    %4 = vector.load %arg2[%c0_1, %c0_2] : memref<256x2048xf32, #tpu.memory_space<vmem>>, vector<256x2048xf32>
    tpu.vector_store %arg2[%c0_1, %c0_2], %3 {strides = array<i32>} : memref<256x2048xf32, #tpu.memory_space<vmem>>, vector<256x2048xf32>,
    return
  }
  func.func @transform_0(%arg0: i32) -> (i32, i32) {
    %c0_i32 = arith.constant 0 : i32
    %c0_i32_0 = arith.constant 0 : i32
    return %arg0, %c0_i32 : i32, i32
  }
  func.func @transform_1(%arg0: i32) -> (i32, i32) {
    %c0_i32 = arith.constant 0 : i32
    %c0_i32_0 = arith.constant 0 : i32
    return %arg0, %c0_i32 : i32, i32
  }
}

</mosaic_0001>

<bundles_post_ra>
// kernel: tpu_custom_call.1
= control target key start
LH: loop header
LB: loop body
LE: loop exit
PB: predicated region body
PF: predicated region fallthrough
CT: control target
= control target key end

     0   :  { %6 = vsyncpa [#allocation3], 0  ;;  %s4153_s0 = inlined_call_operand.hbm [shape: f32[512,2048], index: 0, kind: input, shape index: {}]   ;;  %s4154_s1 = inlined_call_operand.hbm [shape: f32[512,2048], index: 1, kind: output, shape index: {}]  }
   0x1   :  { %8 = vsyncpa [#allocation3 + $0x1], 0 }
   0x2   :  { %9 = vsyncpa [#allocation4], 0 }
   0x3   :  { %11 = vsyncpa [#allocation4 + $0x1], 0  ;;  %s2966_s6 = smov 0   ;;  %s2968_s7 = smov 0  }
   0x4   :  { %s2970_s8 = smov 0   ;;  %s2972_s9 = smov 0  }
   0x5 LB: > { %s2987_s10 = sadd.s32 4294967295, %s2948_s9   ;;  %s2786_s11 = sadd.s32 4294967294, %s2948_s9   ;;  %s2948_s9 = sphi %s2972_s9, %s4169_s9   ;;  %s2944_s8 = sphi %s2970_s8, %s4168_s8   ;;  %s2940_s7 = sphi %s2968_s7, %s4167_s7   ;;  %s2936_s6 = sphi %s2966_s6, %s4166_s6  }
   0x6   : > { %s2991_s12 = sadd.s32 1, %s2948_s9   ;;  %s24_s13 = sadd.s32 1, %s2944_s8 }
   0x7   : > { %s21_s14 = ssub.s32 %s2948_s9, %s2991_s12  ;;  %p31_p0 = scmp.ne.s32.totalorder %s2944_s8, %s2940_s7 }
   0x8   : > { %p22_p1 = scmp.eq.s32.totalorder %s21_s14, 0  ;;  %p32_p2 = scmp.eq.s32.totalorder %s2948_s9, 0 }
   0x9   : > { %p37_p3 = scmp.ne.s32.totalorder %s2940_s7, %s2936_s6  ;;  %p38_p4 = scmp.eq.s32.totalorder %s2987_s10, 0 }
   0xa   : > { %s3003_s15 = scalar_select %p22_p1, %s2944_s8, %s24_s13  }
   0xb   : > { %p3005_p5 = por %p32_p2, %p31_p0  ;;  %p3009_p6 = por %p38_p4, %p37_p3 }
   0xc   : > { %p61_p7 = scmp.eq.s32.totalorder %s2987_s10, 1  ;;  %p67_p8 = scmp.eq.s32.totalorder %s2786_s11, 1 }
   0xd   : > { %s4158_s17 = scalar_select %p3009_p6, 1, 0 }
   0xe   : > { %p2818_p10 = scmp.lt.s32.totalorder %s2948_s9, 2  ;;  %p3016_p11 = por %p61_p7, %p31_p0 }
   0xf   : > { %p3020_p12 = por %p67_p8, %p37_p3  ;;  %s87_s20 = sand.u32 1, %s2944_s8  }
  0x10   : > { %s4159_s18 = scalar_select %p3016_p11, 1, 0 }
  0x11   : > { %s4160_s19 = scalar_select %p3020_p12, 1, 0 }
  0x12   : > { %s2803_s21 = sshll.u32 %s2948_s9, 16  ;;  %s2789_s22 = sshll.u32 %s87_s20, 12 }
  0x13   : > { %s3029_s25 = scalar_lea.hbm %s4153_s0, %s2803_s21  ;;  %s91_s26 = scalar_lea.vmem [#allocation2], %s2789_s22 }
  0x14   : > { %s99_s27 = sshll.u32 %s91_s26, 4  ;;  %p3033_p13 = pnand %p2818_p10, %p3005_p5  ;;  %s3037_s27 = int_to_ptr.vmem [resolvable:$true] %s99_s27 }
  0x15   : > { %s3039_s29 = scalar_lea.sflag [#allocation3], %s87_s20  ;;  %s2856_s30 = scalar_lea.hbm %s3029_s25, 65536 }
  0x16   : > { %p2857_p0 = scmp.ne.s32.totalorder %s3029_s25, %s2856_s30  ;;  %p2858_p1 = pneg %p3033_p13 }
  0x17   : > { %s2861_s4 = scalar_lea.hbm %s4153_s0, 131072  ;;  %p2862_p4 = scmp.lt.s32.totalorder %s3029_s25, %s4153_s0 }
  0x18   : > { %p2859_p2 = pnand %p2858_p1, %p2857_p0  ;;  %p2863_p5 = scmp.lt.s32.totalorder %s2861_s4, %s2856_s30 }
  0x1a   : > { %p2860_p3 = pneg %p2859_p2  ;;  %p2864_p7 = por %p2863_p5, %p2862_p4 }
  0x1c   : > { %p2865_p8 = pnand %p2864_p7, %p2860_p3 }
  0x1e   : > { %2868 = shalt.err (!%p2865_p8)
}
  0x1f   : > { %s2869_s13 = scalar_lea.vmem %s3037_s27, 65536  ;;  %s2950_s14 = smov [#allocation2]  }
  0x20   : > { %p2870_p10 = scmp.ne.s32.totalorder %s3037_s27, %s2869_s13  ;;  %s2874_s16 = sshll.u32 %s2950_s14, 4  ;;  %s2875_s16 = int_to_ptr.vmem [resolvable:$false] %s2874_s16 }
  0x21   : > { %s2876_s20 = scalar_lea.vmem %s2875_s16, 131072  ;;  %p2877_p2 = scmp.lt.s32.totalorder %s3037_s27, %s2875_s16 }
  0x22   : > { %p2872_p9 = pnand %p2870_p10, %p2858_p1  ;;  %p2878_p12 = scmp.lt.s32.totalorder %s2876_s20, %s2869_s13 }
  0x24   : > { %p2873_p0 = pneg %p2872_p9  ;;  %p2879_p11 = por %p2878_p12, %p2877_p2 }
  0x26   : > { %p2880_p6 = pnand %p2879_p11, %p2873_p0 }
  0x28   : > { %2883 = shalt.err (!%p2880_p6)
}
  0x29   : > { %s2951_s21 = smov 2048   ;;  %s2952_s22 = smov 128  }
  0x2a   : > { %2813 = dma.hbm_to_vmem [thread:$0]  (!%p3033_p13), %s3029_s25, 65536, %s3037_s27, %s3039_s29, %s2951_s21, %s2951_s21, %s2952_s22  }
  0x2b   : > { %p2793_p9 = scmp.ge.s32.totalorder %s2948_s9, 1  ;;  %p107_p1 = scmp.lt.s32.totalorder %s2948_s9, 3 }
  0x2d   : > { %p108_p3 = pnand %p2793_p9, %p107_p1 }
  0x2e   : > { %s3063_s23 = sand.u32 (!%p108_p3), 1, %s2940_s7   ;;  %p4162_p6 = scmp.ne.s32.totalorder (!%p108_p3), %s4158_s17, 0 }
  0x2f   : > { %111 = sbr.rel (%p108_p3) target bundleno = 518 (0x206), region = 24  ;;  %s2794_s24 = sshll.u32 (!%p108_p3), %s3063_s23, 12 }
  0x30   : > { %s114_s26 = scalar_lea.sflag (!%p108_p3), [#allocation3], %s3063_s23  ;;  %s3069_s30 = scalar_lea.vmem (!%p108_p3), [#allocation2], %s2794_s24 }
  0x34   : > { %2927 = dma.done.wait (%p4162_p6), %s114_s26, 65536  }
  0x35   : > { %2929 = vsyncadd (%p4162_p6), %s114_s26, 4294901760  ;;  %v138_v0 = vld [vmem:[%s3069_s30] sm:$0xff]  ;;  %v139_v1 = vld [vmem:[%s3069_s30 + $0x8] sm:$0xff]  ;;  %s3092_s17 = scalar_lea.vmem [#allocation5], %s2794_s24  ;;  %s2805_s25 = sshll.u32 %s2987_s10, 16 }
  0x36   : > { %v140_v2 = vld [vmem:[%s3069_s30 + $0x10] sm:$0xff]  ;;  %v650_v3 = vmul.f32 %v138_v0, %v138_v0  ;;  %v651_v4 = vmul.f32 %v139_v1, %v139_v1  ;;  %v141_v6 = vld [vmem:[%s3069_s30 + $0x18] sm:$0xff]  ;;  %v142_v7 = vld [vmem:[%s3069_s30 + $0x20] sm:$0xff]  ;;  %s2713_s27 = sshll.u32 %s3092_s17, 4  ;;  %s4103_s29 = scalar_lea.hbm %s4154_s1, %s2805_s25  ;;  %s4105_s27 = int_to_ptr.vmem [resolvable:$true] %s2713_s27 }
  0x37   : > { %v652_v5 = vmul.f32 %v140_v2, %v140_v2  ;;  %v143_v8 = vld [vmem:[%s3069_s30 + $0x28] sm:$0xff]  ;;  %v653_v9 = vmul.f32 %v141_v6, %v141_v6  ;;  %v654_v10 = vmul.f32 %v142_v7, %v142_v7  ;;  %v144_v12 = vld [vmem:[%s3069_s30 + $0x30] sm:$0xff]  ;;  %v145_v13 = vld [vmem:[%s3069_s30 + $0x38] sm:$0xff]  ;;  %s2699_s2 = scalar_lea.sflag [#allocation4], %s3063_s23  ;;  %s2884_s3 = scalar_lea.vmem %s4105_s27, 65536 }
  0x38   : > { %v655_v11 = vmul.f32 %v143_v8, %v143_v8  ;;  %v1162_v14 = vmul.f32 %v650_v3, %v650_v3  ;;  %v1163_v15 = vmul.f32 %v651_v4, %v651_v4  ;;  %v656_v17 = vmul.f32 %v144_v12, %v144_v12  ;;  %v146_v22 = vld [vmem:[%s3069_s30 + $0x40] sm:$0xff]  ;;  %v147_v23 = vld [vmem:[%s3069_s30 + $0x48] sm:$0xff]  ;;  %v148_v24 = vld [vmem:[%s3069_s30 + $0x50] sm:$0xff]  ;;  %p2885_p11 = scmp.ne.s32.totalorder %s4105_s27, %s2884_s3  ;;  %p4163_p12 = scmp.ne.s32.totalorder %s4159_s18, 0 }
  0x39   : > { %v1164_v16 = vmul.f32 %v652_v5, %v652_v5  ;;  %v1165_v18 = vmul.f32 %v653_v9, %v653_v9  ;;  %v1166_v19 = vmul.f32 %v654_v10, %v654_v10  ;;  %v657_v21 = vmul.f32 %v145_v13, %v145_v13  ;;  %v149_v29 = vld [vmem:[%s3069_s30 + $0x58] sm:$0xff]  ;;  %v150_v30 = vld [vmem:[%s3069_s30 + $0x60] sm:$0xff]  ;;  %v151_v31 = vld [vmem:[%s3069_s30 + $0x68] sm:$0xff]  ;;  %s2953_s4 = smov [#allocation5]  }
  0x3a   : > { %v1167_v20 = vmul.f32 %v655_v11, %v655_v11  ;;  %v1674_v25 = vmul.f32 %v1162_v14, %v138_v0  ;;  %v1675_v26 = vmul.f32 %v1163_v15, %v139_v1  ;;  %v1168_v28 = vmul.f32 %v656_v17, %v656_v17  ;;  %v152_v36 = vld [vmem:[%s3069_s30 + $0x70] sm:$0xff]  ;;  %v153_v41 = vld [vmem:[%s3069_s30 + $0x78] sm:$0xff]  ;;  %v154_v54 = vld [vmem:[%s3069_s30 + $0x80] sm:$0xff]  ;;  %p2886_p13 = pnand %p2885_p11, %p4163_p12  ;;  %s2888_s5 = sshll.u32 %s2953_s4, 4  ;;  %s2889_s5 = int_to_ptr.vmem [resolvable:$false] %s2888_s5 }
  0x3b   : > { %v1676_v27 = vmul.f32 %v1164_v16, %v140_v2  ;;  %v1677_v32 = vmul.f32 %v1165_v18, %v141_v6  ;;  %v1678_v33 = vmul.f32 %v1166_v19, %v142_v7  ;;  %v1169_v35 = vmul.f32 %v657_v21, %v657_v21  ;;  %v155_v55 = vld [vmem:[%s3069_s30 + $0x88] sm:$0xff]  ;;  %v156_v56 = vld [vmem:[%s3069_s30 + $0x90] sm:$0xff]  ;;  %v157_v61 = vld [vmem:[%s3069_s30 + $0x98] sm:$0xff]  ;;  %s2890_s11 = scalar_lea.vmem %s2889_s5, 131072  ;;  %p2891_p5 = scmp.lt.s32.totalorder %s4105_s27, %s2889_s5 }
  0x3c   : > { %v1679_v34 = vmul.f32 %v1167_v20, %v143_v8  ;;  %2186 = vst [vmem:[%s3092_s17] sm:$0xff] %v1674_v25  ;;  %2187 = vst [vmem:[%s3092_s17 + $0x8] sm:$0xff] %v1675_v26  ;;  %v1680_v37 = vmul.f32 %v1168_v28, %v144_v12  ;;  %v658_v38 = vmul.f32 %v146_v22, %v146_v22  ;;  %v158_v62 = vld [vmem:[%s3069_s30 + $0xa0] sm:$0xff]  ;;  %v159_v63 = vld [vmem:[%s3069_s30 + $0xa8] sm:$0xff]  ;;  %p2887_p4 = pneg %p2886_p13  ;;  %p2892_p7 = scmp.lt.s32.totalorder %s2890_s11, %s2884_s3 }
  0x3d   : > { %2188 = vst [vmem:[%s3092_s17 + $0x10] sm:$0xff] %v1676_v27  ;;  %v659_v39 = vmul.f32 %v147_v23, %v147_v23  ;;  %v660_v40 = vmul.f32 %v148_v24, %v148_v24  ;;  %2189 = vst [vmem:[%s3092_s17 + $0x18] sm:$0xff] %v1677_v32  ;;  %v1681_v42 = vmul.f32 %v1169_v35, %v145_v13  ;;  %v160_v4 = vld [vmem:[%s3069_s30 + $0xb0] sm:$0xff]  ;;  %v161_v9 = vld [vmem:[%s3069_s30 + $0xb8] sm:$0xff] }
  0x3e   : > { %2190 = vst [vmem:[%s3092_s17 + $0x20] sm:$0xff] %v1678_v33  ;;  %2191 = vst [vmem:[%s3092_s17 + $0x28] sm:$0xff] %v1679_v34  ;;  %v661_v43 = vmul.f32 %v149_v29, %v149_v29  ;;  %v662_v44 = vmul.f32 %v150_v30, %v150_v30  ;;  %v663_v45 = vmul.f32 %v151_v31, %v151_v31  ;;  %p2893_p8 = por %p2892_p7, %p2891_p5 }
  0x3f   : > { %2192 = vst [vmem:[%s3092_s17 + $0x30] sm:$0xff] %v1680_v37  ;;  %v1170_v46 = vmul.f32 %v658_v38, %v658_v38  ;;  %v1171_v47 = vmul.f32 %v659_v39, %v659_v39  ;;  %v1172_v48 = vmul.f32 %v660_v40, %v660_v40  ;;  %v664_v49 = vmul.f32 %v152_v36, %v152_v36 }
  0x40   : > { %2193 = vst [vmem:[%s3092_s17 + $0x38] sm:$0xff] %v1681_v42  ;;  %v1173_v50 = vmul.f32 %v661_v43, %v661_v43  ;;  %v1174_v51 = vmul.f32 %v662_v44, %v662_v44  ;;  %v1175_v52 = vmul.f32 %v663_v45, %v663_v45  ;;  %v665_v53 = vmul.f32 %v153_v41, %v153_v41  ;;  %p2894_p10 = pnand %p2893_p8, %p2887_p4 }
  0x41   : > { %v1682_v57 = vmul.f32 %v1170_v46, %v146_v22  ;;  %v1683_v58 = vmul.f32 %v1171_v47, %v147_v23  ;;  %v1684_v59 = vmul.f32 %v1172_v48, %v148_v24  ;;  %v1176_v60 = vmul.f32 %v664_v49, %v664_v49  ;;  %v162_v22 = vld [vmem:[%s3069_s30 + $0xc0] sm:$0xff]  ;;  %v163_v23 = vld [vmem:[%s3069_s30 + $0xc8] sm:$0xff]  ;;  %v164_v24 = vld [vmem:[%s3069_s30 + $0xd0] sm:$0xff] }
  0x42   : > { %v1685_v0 = vmul.f32 %v1173_v50, %v149_v29  ;;  %v1686_v1 = vmul.f32 %v1174_v51, %v150_v30  ;;  %v1687_v2 = vmul.f32 %v1175_v52, %v151_v31  ;;  %v1177_v3 = vmul.f32 %v665_v53, %v665_v53  ;;  %v165_v29 = vld [vmem:[%s3069_s30 + $0xd8] sm:$0xff]  ;;  %v166_v30 = vld [vmem:[%s3069_s30 + $0xe0] sm:$0xff]  ;;  %v167_v31 = vld [vmem:[%s3069_s30 + $0xe8] sm:$0xff] }
  0x43   : > { %2194 = vst [vmem:[%s3092_s17 + $0x40] sm:$0xff] %v1682_v57  ;;  %2195 = vst [vmem:[%s3092_s17 + $0x48] sm:$0xff] %v1683_v58  ;;  %v1688_v5 = vmul.f32 %v1176_v60, %v152_v36  ;;  %v666_v6 = vmul.f32 %v154_v54, %v154_v54  ;;  %v667_v7 = vmul.f32 %v155_v55, %v155_v55  ;;  %v168_v36 = vld [vmem:[%s3069_s30 + $0xf0] sm:$0xff] }
  0x44   : > { %2196 = vst [vmem:[%s3092_s17 + $0x50] sm:$0xff] %v1684_v59  ;;  %v668_v8 = vmul.f32 %v156_v56, %v156_v56  ;;  %2197 = vst [vmem:[%s3092_s17 + $0x58] sm:$0xff] %v1685_v0  ;;  %v1689_v10 = vmul.f32 %v1177_v3, %v153_v41  ;;  %v669_v11 = vmul.f32 %v157_v61, %v157_v61  ;;  %v169_v41 = vld [vmem:[%s3069_s30 + $0xf8] sm:$0xff] }
  0x45   : > { %2198 = vst [vmem:[%s3092_s17 + $0x60] sm:$0xff] %v1686_v1  ;;  %2199 = vst [vmem:[%s3092_s17 + $0x68] sm:$0xff] %v1687_v2  ;;  %v670_v12 = vmul.f32 %v158_v62, %v158_v62  ;;  %v671_v13 = vmul.f32 %v159_v63, %v159_v63  ;;  %v1178_v14 = vmul.f32 %v666_v6, %v666_v6 }
  0x46   : > { %2200 = vst [vmem:[%s3092_s17 + $0x70] sm:$0xff] %v1688_v5  ;;  %v1179_v15 = vmul.f32 %v667_v7, %v667_v7  ;;  %v1180_v16 = vmul.f32 %v668_v8, %v668_v8  ;;  %v672_v17 = vmul.f32 %v160_v4, %v160_v4  ;;  %2201 = vst [vmem:[%s3092_s17 + $0x78] sm:$0xff] %v1689_v10 }
  0x47   : > { %v1181_v18 = vmul.f32 %v669_v11, %v669_v11  ;;  %v1182_v19 = vmul.f32 %v670_v12, %v670_v12  ;;  %v1183_v20 = vmul.f32 %v671_v13, %v671_v13  ;;  %v673_v21 = vmul.f32 %v161_v9, %v161_v9 }
  0x48   : > { %v1690_v25 = vmul.f32 %v1178_v14, %v154_v54  ;;  %v1691_v26 = vmul.f32 %v1179_v15, %v155_v55  ;;  %v1692_v27 = vmul.f32 %v1180_v16, %v156_v56  ;;  %v1184_v28 = vmul.f32 %v672_v17, %v672_v17  ;;  %v170_v54 = vld [vmem:[%s3069_s30 + $0x100] sm:$0xff]  ;;  %v171_v55 = vld [vmem:[%s3069_s30 + $0x108] sm:$0xff]  ;;  %v172_v56 = vld [vmem:[%s3069_s30 + $0x110] sm:$0xff] }
  0x49   : > { %v1693_v32 = vmul.f32 %v1181_v18, %v157_v61  ;;  %v1694_v33 = vmul.f32 %v1182_v19, %v158_v62  ;;  %v1695_v34 = vmul.f32 %v1183_v20, %v159_v63  ;;  %v1185_v35 = vmul.f32 %v673_v21, %v673_v21  ;;  %v173_v61 = vld [vmem:[%s3069_s30 + $0x118] sm:$0xff]  ;;  %v174_v62 = vld [vmem:[%s3069_s30 + $0x120] sm:$0xff]  ;;  %v175_v63 = vld [vmem:[%s3069_s30 + $0x128] sm:$0xff] }
  0x4a   : > { %2202 = vst [vmem:[%s3092_s17 + $0x80] sm:$0xff] %v1690_v25  ;;  %2203 = vst [vmem:[%s3092_s17 + $0x88] sm:$0xff] %v1691_v26  ;;  %v1696_v37 = vmul.f32 %v1184_v28, %v160_v4  ;;  %v674_v38 = vmul.f32 %v162_v22, %v162_v22  ;;  %v675_v39 = vmul.f32 %v163_v23, %v163_v23  ;;  %v176_v4 = vld [vmem:[%s3069_s30 + $0x130] sm:$0xff] }
  0x4b   : > { %2204 = vst [vmem:[%s3092_s17 + $0x90] sm:$0xff] %v1692_v27  ;;  %v676_v40 = vmul.f32 %v164_v24, %v164_v24  ;;  %2205 = vst [vmem:[%s3092_s17 + $0x98] sm:$0xff] %v1693_v32  ;;  %v1697_v42 = vmul.f32 %v1185_v35, %v161_v9  ;;  %v677_v43 = vmul.f32 %v165_v29, %v165_v29  ;;  %v177_v9 = vld [vmem:[%s3069_s30 + $0x138] sm:$0xff] }
  0x4c   : > { %2206 = vst [vmem:[%s3092_s17 + $0xa0] sm:$0xff] %v1694_v33  ;;  %2207 = vst [vmem:[%s3092_s17 + $0xa8] sm:$0xff] %v1695_v34  ;;  %v678_v44 = vmul.f32 %v166_v30, %v166_v30  ;;  %v679_v45 = vmul.f32 %v167_v31, %v167_v31  ;;  %v1186_v46 = vmul.f32 %v674_v38, %v674_v38 }
  0x4d   : > { %2208 = vst [vmem:[%s3092_s17 + $0xb0] sm:$0xff] %v1696_v37  ;;  %v1187_v47 = vmul.f32 %v675_v39, %v675_v39  ;;  %v1188_v48 = vmul.f32 %v676_v40, %v676_v40  ;;  %v680_v49 = vmul.f32 %v168_v36, %v168_v36  ;;  %2209 = vst [vmem:[%s3092_s17 + $0xb8] sm:$0xff] %v1697_v42 }
  0x4e   : > { %v1189_v50 = vmul.f32 %v677_v43, %v677_v43  ;;  %v1190_v51 = vmul.f32 %v678_v44, %v678_v44  ;;  %v1191_v52 = vmul.f32 %v679_v45, %v679_v45  ;;  %v681_v53 = vmul.f32 %v169_v41, %v169_v41 }
  0x4f   : > { %v1698_v57 = vmul.f32 %v1186_v46, %v162_v22  ;;  %v1699_v58 = vmul.f32 %v1187_v47, %v163_v23  ;;  %v1700_v59 = vmul.f32 %v1188_v48, %v164_v24  ;;  %v1192_v60 = vmul.f32 %v680_v49, %v680_v49  ;;  %v178_v22 = vld [vmem:[%s3069_s30 + $0x140] sm:$0xff]  ;;  %v179_v23 = vld [vmem:[%s3069_s30 + $0x148] sm:$0xff]  ;;  %v180_v24 = vld [vmem:[%s3069_s30 + $0x150] sm:$0xff] }
  0x50   : > { %v1701_v0 = vmul.f32 %v1189_v50, %v165_v29  ;;  %v1702_v1 = vmul.f32 %v1190_v51, %v166_v30  ;;  %v1703_v2 = vmul.f32 %v1191_v52, %v167_v31  ;;  %v1193_v3 = vmul.f32 %v681_v53, %v681_v53  ;;  %v181_v29 = vld [vmem:[%s3069_s30 + $0x158] sm:$0xff]  ;;  %v182_v30 = vld [vmem:[%s3069_s30 + $0x160] sm:$0xff]  ;;  %v183_v31 = vld [vmem:[%s3069_s30 + $0x168] sm:$0xff] }
  0x51   : > { %2210 = vst [vmem:[%s3092_s17 + $0xc0] sm:$0xff] %v1698_v57  ;;  %2211 = vst [vmem:[%s3092_s17 + $0xc8] sm:$0xff] %v1699_v58  ;;  %v1704_v5 = vmul.f32 %v1192_v60, %v168_v36  ;;  %v682_v6 = vmul.f32 %v170_v54, %v170_v54  ;;  %v683_v7 = vmul.f32 %v171_v55, %v171_v55  ;;  %v184_v36 = vld [vmem:[%s3069_s30 + $0x170] sm:$0xff] }
  0x52   : > { %2212 = vst [vmem:[%s3092_s17 + $0xd0] sm:$0xff] %v1700_v59  ;;  %v684_v8 = vmul.f32 %v172_v56, %v172_v56  ;;  %2213 = vst [vmem:[%s3092_s17 + $0xd8] sm:$0xff] %v1701_v0  ;;  %v1705_v10 = vmul.f32 %v1193_v3, %v169_v41  ;;  %v685_v11 = vmul.f32 %v173_v61, %v173_v61  ;;  %v185_v41 = vld [vmem:[%s3069_s30 + $0x178] sm:$0xff] }
  0x53   : > { %2214 = vst [vmem:[%s3092_s17 + $0xe0] sm:$0xff] %v1702_v1  ;;  %2215 = vst [vmem:[%s3092_s17 + $0xe8] sm:$0xff] %v1703_v2  ;;  %v686_v12 = vmul.f32 %v174_v62, %v174_v62  ;;  %v687_v13 = vmul.f32 %v175_v63, %v175_v63  ;;  %v1194_v14 = vmul.f32 %v682_v6, %v682_v6 }
  0x54   : > { %2216 = vst [vmem:[%s3092_s17 + $0xf0] sm:$0xff] %v1704_v5  ;;  %v1195_v15 = vmul.f32 %v683_v7, %v683_v7  ;;  %v1196_v16 = vmul.f32 %v684_v8, %v684_v8  ;;  %v688_v17 = vmul.f32 %v176_v4, %v176_v4  ;;  %2217 = vst [vmem:[%s3092_s17 + $0xf8] sm:$0xff] %v1705_v10 }
  0x55   : > { %v1197_v18 = vmul.f32 %v685_v11, %v685_v11  ;;  %v1198_v19 = vmul.f32 %v686_v12, %v686_v12  ;;  %v1199_v20 = vmul.f32 %v687_v13, %v687_v13  ;;  %v689_v21 = vmul.f32 %v177_v9, %v177_v9 }
  0x56   : > { %v1706_v25 = vmul.f32 %v1194_v14, %v170_v54  ;;  %v1707_v26 = vmul.f32 %v1195_v15, %v171_v55  ;;  %v1708_v27 = vmul.f32 %v1196_v16, %v172_v56  ;;  %v1200_v28 = vmul.f32 %v688_v17, %v688_v17  ;;  %v186_v54 = vld [vmem:[%s3069_s30 + $0x180] sm:$0xff]  ;;  %v187_v55 = vld [vmem:[%s3069_s30 + $0x188] sm:$0xff]  ;;  %v188_v56 = vld [vmem:[%s3069_s30 + $0x190] sm:$0xff] }
  0x57   : > { %v1709_v32 = vmul.f32 %v1197_v18, %v173_v61  ;;  %v1710_v33 = vmul.f32 %v1198_v19, %v174_v62  ;;  %v1711_v34 = vmul.f32 %v1199_v20, %v175_v63  ;;  %v1201_v35 = vmul.f32 %v689_v21, %v689_v21  ;;  %v189_v61 = vld [vmem:[%s3069_s30 + $0x198] sm:$0xff]  ;;  %v190_v62 = vld [vmem:[%s3069_s30 + $0x1a0] sm:$0xff]  ;;  %v191_v63 = vld [vmem:[%s3069_s30 + $0x1a8] sm:$0xff] }
  0x58   : > { %2218 = vst [vmem:[%s3092_s17 + $0x100] sm:$0xff] %v1706_v25  ;;  %2219 = vst [vmem:[%s3092_s17 + $0x108] sm:$0xff] %v1707_v26  ;;  %v1712_v37 = vmul.f32 %v1200_v28, %v176_v4  ;;  %v690_v38 = vmul.f32 %v178_v22, %v178_v22  ;;  %v691_v39 = vmul.f32 %v179_v23, %v179_v23  ;;  %v192_v4 = vld [vmem:[%s3069_s30 + $0x1b0] sm:$0xff] }
  0x59   : > { %2220 = vst [vmem:[%s3092_s17 + $0x110] sm:$0xff] %v1708_v27  ;;  %v692_v40 = vmul.f32 %v180_v24, %v180_v24  ;;  %2221 = vst [vmem:[%s3092_s17 + $0x118] sm:$0xff] %v1709_v32  ;;  %v1713_v42 = vmul.f32 %v1201_v35, %v177_v9  ;;  %v693_v43 = vmul.f32 %v181_v29, %v181_v29  ;;  %v193_v9 = vld [vmem:[%s3069_s30 + $0x1b8] sm:$0xff] }
  0x5a   : > { %2222 = vst [vmem:[%s3092_s17 + $0x120] sm:$0xff] %v1710_v33  ;;  %2223 = vst [vmem:[%s3092_s17 + $0x128] sm:$0xff] %v1711_v34  ;;  %v694_v44 = vmul.f32 %v182_v30, %v182_v30  ;;  %v695_v45 = vmul.f32 %v183_v31, %v183_v31  ;;  %v1202_v46 = vmul.f32 %v690_v38, %v690_v38 }
  0x5b   : > { %2224 = vst [vmem:[%s3092_s17 + $0x130] sm:$0xff] %v1712_v37  ;;  %v1203_v47 = vmul.f32 %v691_v39, %v691_v39  ;;  %v1204_v48 = vmul.f32 %v692_v40, %v692_v40  ;;  %v696_v49 = vmul.f32 %v184_v36, %v184_v36  ;;  %2225 = vst [vmem:[%s3092_s17 + $0x138] sm:$0xff] %v1713_v42 }
  0x5c   : > { %v1205_v50 = vmul.f32 %v693_v43, %v693_v43  ;;  %v1206_v51 = vmul.f32 %v694_v44, %v694_v44  ;;  %v1207_v52 = vmul.f32 %v695_v45, %v695_v45  ;;  %v697_v53 = vmul.f32 %v185_v41, %v185_v41 }
  0x5d   : > { %v1714_v57 = vmul.f32 %v1202_v46, %v178_v22  ;;  %v1715_v58 = vmul.f32 %v1203_v47, %v179_v23  ;;  %v1716_v59 = vmul.f32 %v1204_v48, %v180_v24  ;;  %v1208_v60 = vmul.f32 %v696_v49, %v696_v49  ;;  %v194_v22 = vld [vmem:[%s3069_s30 + $0x1c0] sm:$0xff]  ;;  %v195_v23 = vld [vmem:[%s3069_s30 + $0x1c8] sm:$0xff]  ;;  %v196_v24 = vld [vmem:[%s3069_s30 + $0x1d0] sm:$0xff] }
  0x5e   : > { %v1717_v0 = vmul.f32 %v1205_v50, %v181_v29  ;;  %v1718_v1 = vmul.f32 %v1206_v51, %v182_v30  ;;  %v1719_v2 = vmul.f32 %v1207_v52, %v183_v31  ;;  %v1209_v3 = vmul.f32 %v697_v53, %v697_v53  ;;  %v197_v29 = vld [vmem:[%s3069_s30 + $0x1d8] sm:$0xff]  ;;  %v198_v30 = vld [vmem:[%s3069_s30 + $0x1e0] sm:$0xff]  ;;  %v199_v31 = vld [vmem:[%s3069_s30 + $0x1e8] sm:$0xff] }
  0x5f   : > { %2226 = vst [vmem:[%s3092_s17 + $0x140] sm:$0xff] %v1714_v57  ;;  %2227 = vst [vmem:[%s3092_s17 + $0x148] sm:$0xff] %v1715_v58  ;;  %v1720_v5 = vmul.f32 %v1208_v60, %v184_v36  ;;  %v698_v6 = vmul.f32 %v186_v54, %v186_v54  ;;  %v699_v7 = vmul.f32 %v187_v55, %v187_v55  ;;  %v200_v36 = vld [vmem:[%s3069_s30 + $0x1f0] sm:$0xff] }
  0x60   : > { %2228 = vst [vmem:[%s3092_s17 + $0x150] sm:$0xff] %v1716_v59  ;;  %v700_v8 = vmul.f32 %v188_v56, %v188_v56  ;;  %2229 = vst [vmem:[%s3092_s17 + $0x158] sm:$0xff] %v1717_v0  ;;  %v1721_v10 = vmul.f32 %v1209_v3, %v185_v41  ;;  %v701_v11 = vmul.f32 %v189_v61, %v189_v61  ;;  %v201_v41 = vld [vmem:[%s3069_s30 + $0x1f8] sm:$0xff] }
  0x61   : > { %2230 = vst [vmem:[%s3092_s17 + $0x160] sm:$0xff] %v1718_v1  ;;  %2231 = vst [vmem:[%s3092_s17 + $0x168] sm:$0xff] %v1719_v2  ;;  %v702_v12 = vmul.f32 %v190_v62, %v190_v62  ;;  %v703_v13 = vmul.f32 %v191_v63, %v191_v63  ;;  %v1210_v14 = vmul.f32 %v698_v6, %v698_v6 }
  0x62   : > { %2232 = vst [vmem:[%s3092_s17 + $0x170] sm:$0xff] %v1720_v5  ;;  %v1211_v15 = vmul.f32 %v699_v7, %v699_v7  ;;  %v1212_v16 = vmul.f32 %v700_v8, %v700_v8  ;;  %v704_v17 = vmul.f32 %v192_v4, %v192_v4  ;;  %2233 = vst [vmem:[%s3092_s17 + $0x178] sm:$0xff] %v1721_v10 }
  0x63   : > { %v1213_v18 = vmul.f32 %v701_v11, %v701_v11  ;;  %v1214_v19 = vmul.f32 %v702_v12, %v702_v12  ;;  %v1215_v20 = vmul.f32 %v703_v13, %v703_v13  ;;  %v705_v21 = vmul.f32 %v193_v9, %v193_v9 }
  0x64   : > { %v1722_v25 = vmul.f32 %v1210_v14, %v186_v54  ;;  %v1723_v26 = vmul.f32 %v1211_v15, %v187_v55  ;;  %v1724_v27 = vmul.f32 %v1212_v16, %v188_v56  ;;  %v1216_v28 = vmul.f32 %v704_v17, %v704_v17  ;;  %v202_v54 = vld [vmem:[%s3069_s30 + $0x200] sm:$0xff]  ;;  %v203_v55 = vld [vmem:[%s3069_s30 + $0x208] sm:$0xff]  ;;  %v204_v56 = vld [vmem:[%s3069_s30 + $0x210] sm:$0xff] }
  0x65   : > { %v1725_v32 = vmul.f32 %v1213_v18, %v189_v61  ;;  %v1726_v33 = vmul.f32 %v1214_v19, %v190_v62  ;;  %v1727_v34 = vmul.f32 %v1215_v20, %v191_v63  ;;  %v1217_v35 = vmul.f32 %v705_v21, %v705_v21  ;;  %v205_v61 = vld [vmem:[%s3069_s30 + $0x218] sm:$0xff]  ;;  %v206_v62 = vld [vmem:[%s3069_s30 + $0x220] sm:$0xff]  ;;  %v207_v63 = vld [vmem:[%s3069_s30 + $0x228] sm:$0xff] }
  0x66   : > { %2234 = vst [vmem:[%s3092_s17 + $0x180] sm:$0xff] %v1722_v25  ;;  %2235 = vst [vmem:[%s3092_s17 + $0x188] sm:$0xff] %v1723_v26  ;;  %v1728_v37 = vmul.f32 %v1216_v28, %v192_v4  ;;  %v706_v38 = vmul.f32 %v194_v22, %v194_v22  ;;  %v707_v39 = vmul.f32 %v195_v23, %v195_v23  ;;  %v208_v4 = vld [vmem:[%s3069_s30 + $0x230] sm:$0xff] }
  0x67   : > { %2236 = vst [vmem:[%s3092_s17 + $0x190] sm:$0xff] %v1724_v27  ;;  %v708_v40 = vmul.f32 %v196_v24, %v196_v24  ;;  %2237 = vst [vmem:[%s3092_s17 + $0x198] sm:$0xff] %v1725_v32  ;;  %v1729_v42 = vmul.f32 %v1217_v35, %v193_v9  ;;  %v709_v43 = vmul.f32 %v197_v29, %v197_v29  ;;  %v209_v9 = vld [vmem:[%s3069_s30 + $0x238] sm:$0xff] }
  0x68   : > { %2238 = vst [vmem:[%s3092_s17 + $0x1a0] sm:$0xff] %v1726_v33  ;;  %2239 = vst [vmem:[%s3092_s17 + $0x1a8] sm:$0xff] %v1727_v34  ;;  %v710_v44 = vmul.f32 %v198_v30, %v198_v30  ;;  %v711_v45 = vmul.f32 %v199_v31, %v199_v31  ;;  %v1218_v46 = vmul.f32 %v706_v38, %v706_v38 }
  0x69   : > { %2240 = vst [vmem:[%s3092_s17 + $0x1b0] sm:$0xff] %v1728_v37  ;;  %v1219_v47 = vmul.f32 %v707_v39, %v707_v39  ;;  %v1220_v48 = vmul.f32 %v708_v40, %v708_v40  ;;  %v712_v49 = vmul.f32 %v200_v36, %v200_v36  ;;  %2241 = vst [vmem:[%s3092_s17 + $0x1b8] sm:$0xff] %v1729_v42 }
  0x6a   : > { %v1221_v50 = vmul.f32 %v709_v43, %v709_v43  ;;  %v1222_v51 = vmul.f32 %v710_v44, %v710_v44  ;;  %v1223_v52 = vmul.f32 %v711_v45, %v711_v45  ;;  %v713_v53 = vmul.f32 %v201_v41, %v201_v41 }
  0x6b   : > { %v1730_v57 = vmul.f32 %v1218_v46, %v194_v22  ;;  %v1731_v58 = vmul.f32 %v1219_v47, %v195_v23  ;;  %v1732_v59 = vmul.f32 %v1220_v48, %v196_v24  ;;  %v1224_v60 = vmul.f32 %v712_v49, %v712_v49  ;;  %v210_v22 = vld [vmem:[%s3069_s30 + $0x240] sm:$0xff]  ;;  %v211_v23 = vld [vmem:[%s3069_s30 + $0x248] sm:$0xff]  ;;  %v212_v24 = vld [vmem:[%s3069_s30 + $0x250] sm:$0xff] }
  0x6c   : > { %v1733_v0 = vmul.f32 %v1221_v50, %v197_v29  ;;  %v1734_v1 = vmul.f32 %v1222_v51, %v198_v30  ;;  %v1735_v2 = vmul.f32 %v1223_v52, %v199_v31  ;;  %v1225_v3 = vmul.f32 %v713_v53, %v713_v53  ;;  %v213_v29 = vld [vmem:[%s3069_s30 + $0x258] sm:$0xff]  ;;  %v214_v30 = vld [vmem:[%s3069_s30 + $0x260] sm:$0xff]  ;;  %v215_v31 = vld [vmem:[%s3069_s30 + $0x268] sm:$0xff] }
  0x6d   : > { %2242 = vst [vmem:[%s3092_s17 + $0x1c0] sm:$0xff] %v1730_v57  ;;  %2243 = vst [vmem:[%s3092_s17 + $0x1c8] sm:$0xff] %v1731_v58  ;;  %v1736_v5 = vmul.f32 %v1224_v60, %v200_v36  ;;  %v714_v6 = vmul.f32 %v202_v54, %v202_v54  ;;  %v715_v7 = vmul.f32 %v203_v55, %v203_v55  ;;  %v216_v36 = vld [vmem:[%s3069_s30 + $0x270] sm:$0xff] }
  0x6e   : > { %2244 = vst [vmem:[%s3092_s17 + $0x1d0] sm:$0xff] %v1732_v59  ;;  %v716_v8 = vmul.f32 %v204_v56, %v204_v56  ;;  %2245 = vst [vmem:[%s3092_s17 + $0x1d8] sm:$0xff] %v1733_v0  ;;  %v1737_v10 = vmul.f32 %v1225_v3, %v201_v41  ;;  %v717_v11 = vmul.f32 %v205_v61, %v205_v61  ;;  %v217_v41 = vld [vmem:[%s3069_s30 + $0x278] sm:$0xff] }
  0x6f   : > { %2246 = vst [vmem:[%s3092_s17 + $0x1e0] sm:$0xff] %v1734_v1  ;;  %2247 = vst [vmem:[%s3092_s17 + $0x1e8] sm:$0xff] %v1735_v2  ;;  %v718_v12 = vmul.f32 %v206_v62, %v206_v62  ;;  %v719_v13 = vmul.f32 %v207_v63, %v207_v63  ;;  %v1226_v14 = vmul.f32 %v714_v6, %v714_v6 }
  0x70   : > { %2248 = vst [vmem:[%s3092_s17 + $0x1f0] sm:$0xff] %v1736_v5  ;;  %v1227_v15 = vmul.f32 %v715_v7, %v715_v7  ;;  %v1228_v16 = vmul.f32 %v716_v8, %v716_v8  ;;  %v720_v17 = vmul.f32 %v208_v4, %v208_v4  ;;  %2249 = vst [vmem:[%s3092_s17 + $0x1f8] sm:$0xff] %v1737_v10 }
  0x71   : > { %v1229_v18 = vmul.f32 %v717_v11, %v717_v11  ;;  %v1230_v19 = vmul.f32 %v718_v12, %v718_v12  ;;  %v1231_v20 = vmul.f32 %v719_v13, %v719_v13  ;;  %v721_v21 = vmul.f32 %v209_v9, %v209_v9 }
  0x72   : > { %v1738_v25 = vmul.f32 %v1226_v14, %v202_v54  ;;  %v1739_v26 = vmul.f32 %v1227_v15, %v203_v55  ;;  %v1740_v27 = vmul.f32 %v1228_v16, %v204_v56  ;;  %v1232_v28 = vmul.f32 %v720_v17, %v720_v17  ;;  %v218_v54 = vld [vmem:[%s3069_s30 + $0x280] sm:$0xff]  ;;  %v219_v55 = vld [vmem:[%s3069_s30 + $0x288] sm:$0xff]  ;;  %v220_v56 = vld [vmem:[%s3069_s30 + $0x290] sm:$0xff] }
  0x73   : > { %v1741_v32 = vmul.f32 %v1229_v18, %v205_v61  ;;  %v1742_v33 = vmul.f32 %v1230_v19, %v206_v62  ;;  %v1743_v34 = vmul.f32 %v1231_v20, %v207_v63  ;;  %v1233_v35 = vmul.f32 %v721_v21, %v721_v21  ;;  %v221_v61 = vld [vmem:[%s3069_s30 + $0x298] sm:$0xff]  ;;  %v222_v62 = vld [vmem:[%s3069_s30 + $0x2a0] sm:$0xff]  ;;  %v223_v63 = vld [vmem:[%s3069_s30 + $0x2a8] sm:$0xff] }
  0x74   : > { %2250 = vst [vmem:[%s3092_s17 + $0x200] sm:$0xff] %v1738_v25  ;;  %2251 = vst [vmem:[%s3092_s17 + $0x208] sm:$0xff] %v1739_v26  ;;  %v1744_v37 = vmul.f32 %v1232_v28, %v208_v4  ;;  %v722_v38 = vmul.f32 %v210_v22, %v210_v22  ;;  %v723_v39 = vmul.f32 %v211_v23, %v211_v23  ;;  %v224_v4 = vld [vmem:[%s3069_s30 + $0x2b0] sm:$0xff] }
  0x75   : > { %2252 = vst [vmem:[%s3092_s17 + $0x210] sm:$0xff] %v1740_v27  ;;  %v724_v40 = vmul.f32 %v212_v24, %v212_v24  ;;  %2253 = vst [vmem:[%s3092_s17 + $0x218] sm:$0xff] %v1741_v32  ;;  %v1745_v42 = vmul.f32 %v1233_v35, %v209_v9  ;;  %v725_v43 = vmul.f32 %v213_v29, %v213_v29  ;;  %v225_v9 = vld [vmem:[%s3069_s30 + $0x2b8] sm:$0xff] }
  0x76   : > { %2254 = vst [vmem:[%s3092_s17 + $0x220] sm:$0xff] %v1742_v33  ;;  %2255 = vst [vmem:[%s3092_s17 + $0x228] sm:$0xff] %v1743_v34  ;;  %v726_v44 = vmul.f32 %v214_v30, %v214_v30  ;;  %v727_v45 = vmul.f32 %v215_v31, %v215_v31  ;;  %v1234_v46 = vmul.f32 %v722_v38, %v722_v38 }
  0x77   : > { %2256 = vst [vmem:[%s3092_s17 + $0x230] sm:$0xff] %v1744_v37  ;;  %v1235_v47 = vmul.f32 %v723_v39, %v723_v39  ;;  %v1236_v48 = vmul.f32 %v724_v40, %v724_v40  ;;  %v728_v49 = vmul.f32 %v216_v36, %v216_v36  ;;  %2257 = vst [vmem:[%s3092_s17 + $0x238] sm:$0xff] %v1745_v42 }
  0x78   : > { %v1237_v50 = vmul.f32 %v725_v43, %v725_v43  ;;  %v1238_v51 = vmul.f32 %v726_v44, %v726_v44  ;;  %v1239_v52 = vmul.f32 %v727_v45, %v727_v45  ;;  %v729_v53 = vmul.f32 %v217_v41, %v217_v41 }
  0x79   : > { %v1746_v57 = vmul.f32 %v1234_v46, %v210_v22  ;;  %v1747_v58 = vmul.f32 %v1235_v47, %v211_v23  ;;  %v1748_v59 = vmul.f32 %v1236_v48, %v212_v24  ;;  %v1240_v60 = vmul.f32 %v728_v49, %v728_v49  ;;  %v226_v22 = vld [vmem:[%s3069_s30 + $0x2c0] sm:$0xff]  ;;  %v227_v23 = vld [vmem:[%s3069_s30 + $0x2c8] sm:$0xff]  ;;  %v228_v24 = vld [vmem:[%s3069_s30 + $0x2d0] sm:$0xff] }
  0x7a   : > { %v1749_v0 = vmul.f32 %v1237_v50, %v213_v29  ;;  %v1750_v1 = vmul.f32 %v1238_v51, %v214_v30  ;;  %v1751_v2 = vmul.f32 %v1239_v52, %v215_v31  ;;  %v1241_v3 = vmul.f32 %v729_v53, %v729_v53  ;;  %v229_v29 = vld [vmem:[%s3069_s30 + $0x2d8] sm:$0xff]  ;;  %v230_v30 = vld [vmem:[%s3069_s30 + $0x2e0] sm:$0xff]  ;;  %v231_v31 = vld [vmem:[%s3069_s30 + $0x2e8] sm:$0xff] }
  0x7b   : > { %2258 = vst [vmem:[%s3092_s17 + $0x240] sm:$0xff] %v1746_v57  ;;  %2259 = vst [vmem:[%s3092_s17 + $0x248] sm:$0xff] %v1747_v58  ;;  %v1752_v5 = vmul.f32 %v1240_v60, %v216_v36  ;;  %v730_v6 = vmul.f32 %v218_v54, %v218_v54  ;;  %v731_v7 = vmul.f32 %v219_v55, %v219_v55  ;;  %v232_v36 = vld [vmem:[%s3069_s30 + $0x2f0] sm:$0xff] }
  0x7c   : > { %2260 = vst [vmem:[%s3092_s17 + $0x250] sm:$0xff] %v1748_v59  ;;  %v732_v8 = vmul.f32 %v220_v56, %v220_v56  ;;  %2261 = vst [vmem:[%s3092_s17 + $0x258] sm:$0xff] %v1749_v0  ;;  %v1753_v10 = vmul.f32 %v1241_v3, %v217_v41  ;;  %v733_v11 = vmul.f32 %v221_v61, %v221_v61  ;;  %v233_v41 = vld [vmem:[%s3069_s30 + $0x2f8] sm:$0xff] }
  0x7d   : > { %2262 = vst [vmem:[%s3092_s17 + $0x260] sm:$0xff] %v1750_v1  ;;  %2263 = vst [vmem:[%s3092_s17 + $0x268] sm:$0xff] %v1751_v2  ;;  %v734_v12 = vmul.f32 %v222_v62, %v222_v62  ;;  %v735_v13 = vmul.f32 %v223_v63, %v223_v63  ;;  %v1242_v14 = vmul.f32 %v730_v6, %v730_v6 }
  0x7e   : > { %2264 = vst [vmem:[%s3092_s17 + $0x270] sm:$0xff] %v1752_v5  ;;  %v1243_v15 = vmul.f32 %v731_v7, %v731_v7  ;;  %v1244_v16 = vmul.f32 %v732_v8, %v732_v8  ;;  %v736_v17 = vmul.f32 %v224_v4, %v224_v4  ;;  %2265 = vst [vmem:[%s3092_s17 + $0x278] sm:$0xff] %v1753_v10 }
  0x7f   : > { %v1245_v18 = vmul.f32 %v733_v11, %v733_v11  ;;  %v1246_v19 = vmul.f32 %v734_v12, %v734_v12  ;;  %v1247_v20 = vmul.f32 %v735_v13, %v735_v13  ;;  %v737_v21 = vmul.f32 %v225_v9, %v225_v9 }
  0x80   : > { %v1754_v25 = vmul.f32 %v1242_v14, %v218_v54  ;;  %v1755_v26 = vmul.f32 %v1243_v15, %v219_v55  ;;  %v1756_v27 = vmul.f32 %v1244_v16, %v220_v56  ;;  %v1248_v28 = vmul.f32 %v736_v17, %v736_v17  ;;  %v234_v54 = vld [vmem:[%s3069_s30 + $0x300] sm:$0xff]  ;;  %v235_v55 = vld [vmem:[%s3069_s30 + $0x308] sm:$0xff]  ;;  %v236_v56 = vld [vmem:[%s3069_s30 + $0x310] sm:$0xff] }
  0x81   : > { %v1757_v32 = vmul.f32 %v1245_v18, %v221_v61  ;;  %v1758_v33 = vmul.f32 %v1246_v19, %v222_v62  ;;  %v1759_v34 = vmul.f32 %v1247_v20, %v223_v63  ;;  %v1249_v35 = vmul.f32 %v737_v21, %v737_v21  ;;  %v237_v61 = vld [vmem:[%s3069_s30 + $0x318] sm:$0xff]  ;;  %v238_v62 = vld [vmem:[%s3069_s30 + $0x320] sm:$0xff]  ;;  %v239_v63 = vld [vmem:[%s3069_s30 + $0x328] sm:$0xff] }
  0x82   : > { %2266 = vst [vmem:[%s3092_s17 + $0x280] sm:$0xff] %v1754_v25  ;;  %2267 = vst [vmem:[%s3092_s17 + $0x288] sm:$0xff] %v1755_v26  ;;  %v1760_v37 = vmul.f32 %v1248_v28, %v224_v4  ;;  %v738_v38 = vmul.f32 %v226_v22, %v226_v22  ;;  %v739_v39 = vmul.f32 %v227_v23, %v227_v23  ;;  %v240_v4 = vld [vmem:[%s3069_s30 + $0x330] sm:$0xff] }
  0x83   : > { %2268 = vst [vmem:[%s3092_s17 + $0x290] sm:$0xff] %v1756_v27  ;;  %v740_v40 = vmul.f32 %v228_v24, %v228_v24  ;;  %2269 = vst [vmem:[%s3092_s17 + $0x298] sm:$0xff] %v1757_v32  ;;  %v1761_v42 = vmul.f32 %v1249_v35, %v225_v9  ;;  %v741_v43 = vmul.f32 %v229_v29, %v229_v29  ;;  %v241_v9 = vld [vmem:[%s3069_s30 + $0x338] sm:$0xff] }
  0x84   : > { %2270 = vst [vmem:[%s3092_s17 + $0x2a0] sm:$0xff] %v1758_v33  ;;  %2271 = vst [vmem:[%s3092_s17 + $0x2a8] sm:$0xff] %v1759_v34  ;;  %v742_v44 = vmul.f32 %v230_v30, %v230_v30  ;;  %v743_v45 = vmul.f32 %v231_v31, %v231_v31  ;;  %v1250_v46 = vmul.f32 %v738_v38, %v738_v38 }
  0x85   : > { %2272 = vst [vmem:[%s3092_s17 + $0x2b0] sm:$0xff] %v1760_v37  ;;  %v1251_v47 = vmul.f32 %v739_v39, %v739_v39  ;;  %v1252_v48 = vmul.f32 %v740_v40, %v740_v40  ;;  %v744_v49 = vmul.f32 %v232_v36, %v232_v36  ;;  %2273 = vst [vmem:[%s3092_s17 + $0x2b8] sm:$0xff] %v1761_v42 }
  0x86   : > { %v1253_v50 = vmul.f32 %v741_v43, %v741_v43  ;;  %v1254_v51 = vmul.f32 %v742_v44, %v742_v44  ;;  %v1255_v52 = vmul.f32 %v743_v45, %v743_v45  ;;  %v745_v53 = vmul.f32 %v233_v41, %v233_v41 }
  0x87   : > { %v1762_v57 = vmul.f32 %v1250_v46, %v226_v22  ;;  %v1763_v58 = vmul.f32 %v1251_v47, %v227_v23  ;;  %v1764_v59 = vmul.f32 %v1252_v48, %v228_v24  ;;  %v1256_v60 = vmul.f32 %v744_v49, %v744_v49  ;;  %v242_v22 = vld [vmem:[%s3069_s30 + $0x340] sm:$0xff]  ;;  %v243_v23 = vld [vmem:[%s3069_s30 + $0x348] sm:$0xff]  ;;  %v244_v24 = vld [vmem:[%s3069_s30 + $0x350] sm:$0xff] }
  0x88   : > { %v1765_v0 = vmul.f32 %v1253_v50, %v229_v29  ;;  %v1766_v1 = vmul.f32 %v1254_v51, %v230_v30  ;;  %v1767_v2 = vmul.f32 %v1255_v52, %v231_v31  ;;  %v1257_v3 = vmul.f32 %v745_v53, %v745_v53  ;;  %v245_v29 = vld [vmem:[%s3069_s30 + $0x358] sm:$0xff]  ;;  %v246_v30 = vld [vmem:[%s3069_s30 + $0x360] sm:$0xff]  ;;  %v247_v31 = vld [vmem:[%s3069_s30 + $0x368] sm:$0xff] }
  0x89   : > { %2274 = vst [vmem:[%s3092_s17 + $0x2c0] sm:$0xff] %v1762_v57  ;;  %2275 = vst [vmem:[%s3092_s17 + $0x2c8] sm:$0xff] %v1763_v58  ;;  %v1768_v5 = vmul.f32 %v1256_v60, %v232_v36  ;;  %v746_v6 = vmul.f32 %v234_v54, %v234_v54  ;;  %v747_v7 = vmul.f32 %v235_v55, %v235_v55  ;;  %v248_v36 = vld [vmem:[%s3069_s30 + $0x370] sm:$0xff] }
  0x8a   : > { %2276 = vst [vmem:[%s3092_s17 + $0x2d0] sm:$0xff] %v1764_v59  ;;  %v748_v8 = vmul.f32 %v236_v56, %v236_v56  ;;  %2277 = vst [vmem:[%s3092_s17 + $0x2d8] sm:$0xff] %v1765_v0  ;;  %v1769_v10 = vmul.f32 %v1257_v3, %v233_v41  ;;  %v749_v11 = vmul.f32 %v237_v61, %v237_v61  ;;  %v249_v41 = vld [vmem:[%s3069_s30 + $0x378] sm:$0xff] }
  0x8b   : > { %2278 = vst [vmem:[%s3092_s17 + $0x2e0] sm:$0xff] %v1766_v1  ;;  %2279 = vst [vmem:[%s3092_s17 + $0x2e8] sm:$0xff] %v1767_v2  ;;  %v750_v12 = vmul.f32 %v238_v62, %v238_v62  ;;  %v751_v13 = vmul.f32 %v239_v63, %v239_v63  ;;  %v1258_v14 = vmul.f32 %v746_v6, %v746_v6 }
  0x8c   : > { %2280 = vst [vmem:[%s3092_s17 + $0x2f0] sm:$0xff] %v1768_v5  ;;  %v1259_v15 = vmul.f32 %v747_v7, %v747_v7  ;;  %v1260_v16 = vmul.f32 %v748_v8, %v748_v8  ;;  %v752_v17 = vmul.f32 %v240_v4, %v240_v4  ;;  %2281 = vst [vmem:[%s3092_s17 + $0x2f8] sm:$0xff] %v1769_v10 }
  0x8d   : > { %v1261_v18 = vmul.f32 %v749_v11, %v749_v11  ;;  %v1262_v19 = vmul.f32 %v750_v12, %v750_v12  ;;  %v1263_v20 = vmul.f32 %v751_v13, %v751_v13  ;;  %v753_v21 = vmul.f32 %v241_v9, %v241_v9 }
  0x8e   : > { %v1770_v25 = vmul.f32 %v1258_v14, %v234_v54  ;;  %v1771_v26 = vmul.f32 %v1259_v15, %v235_v55  ;;  %v1772_v27 = vmul.f32 %v1260_v16, %v236_v56  ;;  %v1264_v28 = vmul.f32 %v752_v17, %v752_v17  ;;  %v250_v54 = vld [vmem:[%s3069_s30 + $0x380] sm:$0xff]  ;;  %v251_v55 = vld [vmem:[%s3069_s30 + $0x388] sm:$0xff]  ;;  %v252_v56 = vld [vmem:[%s3069_s30 + $0x390] sm:$0xff] }
  0x8f   : > { %v1773_v32 = vmul.f32 %v1261_v18, %v237_v61  ;;  %v1774_v33 = vmul.f32 %v1262_v19, %v238_v62  ;;  %v1775_v34 = vmul.f32 %v1263_v20, %v239_v63  ;;  %v1265_v35 = vmul.f32 %v753_v21, %v753_v21  ;;  %v253_v61 = vld [vmem:[%s3069_s30 + $0x398] sm:$0xff]  ;;  %v254_v62 = vld [vmem:[%s3069_s30 + $0x3a0] sm:$0xff]  ;;  %v255_v63 = vld [vmem:[%s3069_s30 + $0x3a8] sm:$0xff] }
  0x90   : > { %2282 = vst [vmem:[%s3092_s17 + $0x300] sm:$0xff] %v1770_v25  ;;  %2283 = vst [vmem:[%s3092_s17 + $0x308] sm:$0xff] %v1771_v26  ;;  %v1776_v37 = vmul.f32 %v1264_v28, %v240_v4  ;;  %v754_v38 = vmul.f32 %v242_v22, %v242_v22  ;;  %v755_v39 = vmul.f32 %v243_v23, %v243_v23  ;;  %v256_v4 = vld [vmem:[%s3069_s30 + $0x3b0] sm:$0xff] }
  0x91   : > { %2284 = vst [vmem:[%s3092_s17 + $0x310] sm:$0xff] %v1772_v27  ;;  %v756_v40 = vmul.f32 %v244_v24, %v244_v24  ;;  %2285 = vst [vmem:[%s3092_s17 + $0x318] sm:$0xff] %v1773_v32  ;;  %v1777_v42 = vmul.f32 %v1265_v35, %v241_v9  ;;  %v757_v43 = vmul.f32 %v245_v29, %v245_v29  ;;  %v257_v9 = vld [vmem:[%s3069_s30 + $0x3b8] sm:$0xff] }
  0x92   : > { %2286 = vst [vmem:[%s3092_s17 + $0x320] sm:$0xff] %v1774_v33  ;;  %2287 = vst [vmem:[%s3092_s17 + $0x328] sm:$0xff] %v1775_v34  ;;  %v758_v44 = vmul.f32 %v246_v30, %v246_v30  ;;  %v759_v45 = vmul.f32 %v247_v31, %v247_v31  ;;  %v1266_v46 = vmul.f32 %v754_v38, %v754_v38 }
  0x93   : > { %2288 = vst [vmem:[%s3092_s17 + $0x330] sm:$0xff] %v1776_v37  ;;  %v1267_v47 = vmul.f32 %v755_v39, %v755_v39  ;;  %v1268_v48 = vmul.f32 %v756_v40, %v756_v40  ;;  %v760_v49 = vmul.f32 %v248_v36, %v248_v36  ;;  %2289 = vst [vmem:[%s3092_s17 + $0x338] sm:$0xff] %v1777_v42 }
  0x94   : > { %v1269_v50 = vmul.f32 %v757_v43, %v757_v43  ;;  %v1270_v51 = vmul.f32 %v758_v44, %v758_v44  ;;  %v1271_v52 = vmul.f32 %v759_v45, %v759_v45  ;;  %v761_v53 = vmul.f32 %v249_v41, %v249_v41 }
  0x95   : > { %v1778_v57 = vmul.f32 %v1266_v46, %v242_v22  ;;  %v1779_v58 = vmul.f32 %v1267_v47, %v243_v23  ;;  %v1780_v59 = vmul.f32 %v1268_v48, %v244_v24  ;;  %v1272_v60 = vmul.f32 %v760_v49, %v760_v49  ;;  %v258_v22 = vld [vmem:[%s3069_s30 + $0x3c0] sm:$0xff]  ;;  %v259_v23 = vld [vmem:[%s3069_s30 + $0x3c8] sm:$0xff]  ;;  %v260_v24 = vld [vmem:[%s3069_s30 + $0x3d0] sm:$0xff] }
  0x96   : > { %v1781_v0 = vmul.f32 %v1269_v50, %v245_v29  ;;  %v1782_v1 = vmul.f32 %v1270_v51, %v246_v30  ;;  %v1783_v2 = vmul.f32 %v1271_v52, %v247_v31  ;;  %v1273_v3 = vmul.f32 %v761_v53, %v761_v53  ;;  %v261_v29 = vld [vmem:[%s3069_s30 + $0x3d8] sm:$0xff]  ;;  %v262_v30 = vld [vmem:[%s3069_s30 + $0x3e0] sm:$0xff]  ;;  %v263_v31 = vld [vmem:[%s3069_s30 + $0x3e8] sm:$0xff] }
  0x97   : > { %2290 = vst [vmem:[%s3092_s17 + $0x340] sm:$0xff] %v1778_v57  ;;  %2291 = vst [vmem:[%s3092_s17 + $0x348] sm:$0xff] %v1779_v58  ;;  %v1784_v5 = vmul.f32 %v1272_v60, %v248_v36  ;;  %v762_v6 = vmul.f32 %v250_v54, %v250_v54  ;;  %v763_v7 = vmul.f32 %v251_v55, %v251_v55  ;;  %v264_v36 = vld [vmem:[%s3069_s30 + $0x3f0] sm:$0xff] }
  0x98   : > { %2292 = vst [vmem:[%s3092_s17 + $0x350] sm:$0xff] %v1780_v59  ;;  %v764_v8 = vmul.f32 %v252_v56, %v252_v56  ;;  %2293 = vst [vmem:[%s3092_s17 + $0x358] sm:$0xff] %v1781_v0  ;;  %v1785_v10 = vmul.f32 %v1273_v3, %v249_v41  ;;  %v765_v11 = vmul.f32 %v253_v61, %v253_v61  ;;  %v265_v41 = vld [vmem:[%s3069_s30 + $0x3f8] sm:$0xff] }
  0x99   : > { %2294 = vst [vmem:[%s3092_s17 + $0x360] sm:$0xff] %v1782_v1  ;;  %2295 = vst [vmem:[%s3092_s17 + $0x368] sm:$0xff] %v1783_v2  ;;  %v766_v12 = vmul.f32 %v254_v62, %v254_v62  ;;  %v767_v13 = vmul.f32 %v255_v63, %v255_v63  ;;  %v1274_v14 = vmul.f32 %v762_v6, %v762_v6 }
  0x9a   : > { %2296 = vst [vmem:[%s3092_s17 + $0x370] sm:$0xff] %v1784_v5  ;;  %v1275_v15 = vmul.f32 %v763_v7, %v763_v7  ;;  %v1276_v16 = vmul.f32 %v764_v8, %v764_v8  ;;  %v768_v17 = vmul.f32 %v256_v4, %v256_v4  ;;  %2297 = vst [vmem:[%s3092_s17 + $0x378] sm:$0xff] %v1785_v10 }
  0x9b   : > { %v1277_v18 = vmul.f32 %v765_v11, %v765_v11  ;;  %v1278_v19 = vmul.f32 %v766_v12, %v766_v12  ;;  %v1279_v20 = vmul.f32 %v767_v13, %v767_v13  ;;  %v769_v21 = vmul.f32 %v257_v9, %v257_v9 }
  0x9c   : > { %v1786_v25 = vmul.f32 %v1274_v14, %v250_v54  ;;  %v1787_v26 = vmul.f32 %v1275_v15, %v251_v55  ;;  %v1788_v27 = vmul.f32 %v1276_v16, %v252_v56  ;;  %v1280_v28 = vmul.f32 %v768_v17, %v768_v17  ;;  %v266_v54 = vld [vmem:[%s3069_s30 + $0x400] sm:$0xff]  ;;  %v267_v55 = vld [vmem:[%s3069_s30 + $0x408] sm:$0xff]  ;;  %v268_v56 = vld [vmem:[%s3069_s30 + $0x410] sm:$0xff] }
  0x9d   : > { %v1789_v32 = vmul.f32 %v1277_v18, %v253_v61  ;;  %v1790_v33 = vmul.f32 %v1278_v19, %v254_v62  ;;  %v1791_v34 = vmul.f32 %v1279_v20, %v255_v63  ;;  %v1281_v35 = vmul.f32 %v769_v21, %v769_v21  ;;  %v269_v61 = vld [vmem:[%s3069_s30 + $0x418] sm:$0xff]  ;;  %v270_v62 = vld [vmem:[%s3069_s30 + $0x420] sm:$0xff]  ;;  %v271_v63 = vld [vmem:[%s3069_s30 + $0x428] sm:$0xff] }
  0x9e   : > { %2298 = vst [vmem:[%s3092_s17 + $0x380] sm:$0xff] %v1786_v25  ;;  %2299 = vst [vmem:[%s3092_s17 + $0x388] sm:$0xff] %v1787_v26  ;;  %v1792_v37 = vmul.f32 %v1280_v28, %v256_v4  ;;  %v770_v38 = vmul.f32 %v258_v22, %v258_v22  ;;  %v771_v39 = vmul.f32 %v259_v23, %v259_v23  ;;  %v272_v4 = vld [vmem:[%s3069_s30 + $0x430] sm:$0xff] }
  0x9f   : > { %2300 = vst [vmem:[%s3092_s17 + $0x390] sm:$0xff] %v1788_v27  ;;  %v772_v40 = vmul.f32 %v260_v24, %v260_v24  ;;  %2301 = vst [vmem:[%s3092_s17 + $0x398] sm:$0xff] %v1789_v32  ;;  %v1793_v42 = vmul.f32 %v1281_v35, %v257_v9  ;;  %v773_v43 = vmul.f32 %v261_v29, %v261_v29  ;;  %v273_v9 = vld [vmem:[%s3069_s30 + $0x438] sm:$0xff] }
  0xa0   : > { %2302 = vst [vmem:[%s3092_s17 + $0x3a0] sm:$0xff] %v1790_v33  ;;  %2303 = vst [vmem:[%s3092_s17 + $0x3a8] sm:$0xff] %v1791_v34  ;;  %v774_v44 = vmul.f32 %v262_v30, %v262_v30  ;;  %v775_v45 = vmul.f32 %v263_v31, %v263_v31  ;;  %v1282_v46 = vmul.f32 %v770_v38, %v770_v38 }
  0xa1   : > { %2304 = vst [vmem:[%s3092_s17 + $0x3b0] sm:$0xff] %v1792_v37  ;;  %v1283_v47 = vmul.f32 %v771_v39, %v771_v39  ;;  %v1284_v48 = vmul.f32 %v772_v40, %v772_v40  ;;  %v776_v49 = vmul.f32 %v264_v36, %v264_v36  ;;  %2305 = vst [vmem:[%s3092_s17 + $0x3b8] sm:$0xff] %v1793_v42 }
  0xa2   : > { %v1285_v50 = vmul.f32 %v773_v43, %v773_v43  ;;  %v1286_v51 = vmul.f32 %v774_v44, %v774_v44  ;;  %v1287_v52 = vmul.f32 %v775_v45, %v775_v45  ;;  %v777_v53 = vmul.f32 %v265_v41, %v265_v41 }
  0xa3   : > { %v1794_v57 = vmul.f32 %v1282_v46, %v258_v22  ;;  %v1795_v58 = vmul.f32 %v1283_v47, %v259_v23  ;;  %v1796_v59 = vmul.f32 %v1284_v48, %v260_v24  ;;  %v1288_v60 = vmul.f32 %v776_v49, %v776_v49  ;;  %v274_v22 = vld [vmem:[%s3069_s30 + $0x440] sm:$0xff]  ;;  %v275_v23 = vld [vmem:[%s3069_s30 + $0x448] sm:$0xff]  ;;  %v276_v24 = vld [vmem:[%s3069_s30 + $0x450] sm:$0xff] }
  0xa4   : > { %v1797_v0 = vmul.f32 %v1285_v50, %v261_v29  ;;  %v1798_v1 = vmul.f32 %v1286_v51, %v262_v30  ;;  %v1799_v2 = vmul.f32 %v1287_v52, %v263_v31  ;;  %v1289_v3 = vmul.f32 %v777_v53, %v777_v53  ;;  %v277_v29 = vld [vmem:[%s3069_s30 + $0x458] sm:$0xff]  ;;  %v278_v30 = vld [vmem:[%s3069_s30 + $0x460] sm:$0xff]  ;;  %v279_v31 = vld [vmem:[%s3069_s30 + $0x468] sm:$0xff] }
  0xa5   : > { %2306 = vst [vmem:[%s3092_s17 + $0x3c0] sm:$0xff] %v1794_v57  ;;  %2307 = vst [vmem:[%s3092_s17 + $0x3c8] sm:$0xff] %v1795_v58  ;;  %v1800_v5 = vmul.f32 %v1288_v60, %v264_v36  ;;  %v778_v6 = vmul.f32 %v266_v54, %v266_v54  ;;  %v779_v7 = vmul.f32 %v267_v55, %v267_v55  ;;  %v280_v36 = vld [vmem:[%s3069_s30 + $0x470] sm:$0xff] }
  0xa6   : > { %2308 = vst [vmem:[%s3092_s17 + $0x3d0] sm:$0xff] %v1796_v59  ;;  %v780_v8 = vmul.f32 %v268_v56, %v268_v56  ;;  %2309 = vst [vmem:[%s3092_s17 + $0x3d8] sm:$0xff] %v1797_v0  ;;  %v1801_v10 = vmul.f32 %v1289_v3, %v265_v41  ;;  %v781_v11 = vmul.f32 %v269_v61, %v269_v61  ;;  %v281_v41 = vld [vmem:[%s3069_s30 + $0x478] sm:$0xff] }
  0xa7   : > { %2310 = vst [vmem:[%s3092_s17 + $0x3e0] sm:$0xff] %v1798_v1  ;;  %2311 = vst [vmem:[%s3092_s17 + $0x3e8] sm:$0xff] %v1799_v2  ;;  %v782_v12 = vmul.f32 %v270_v62, %v270_v62  ;;  %v783_v13 = vmul.f32 %v271_v63, %v271_v63  ;;  %v1290_v14 = vmul.f32 %v778_v6, %v778_v6 }
  0xa8   : > { %2312 = vst [vmem:[%s3092_s17 + $0x3f0] sm:$0xff] %v1800_v5  ;;  %v1291_v15 = vmul.f32 %v779_v7, %v779_v7  ;;  %v1292_v16 = vmul.f32 %v780_v8, %v780_v8  ;;  %v784_v17 = vmul.f32 %v272_v4, %v272_v4  ;;  %2313 = vst [vmem:[%s3092_s17 + $0x3f8] sm:$0xff] %v1801_v10 }
  0xa9   : > { %v1293_v18 = vmul.f32 %v781_v11, %v781_v11  ;;  %v1294_v19 = vmul.f32 %v782_v12, %v782_v12  ;;  %v1295_v20 = vmul.f32 %v783_v13, %v783_v13  ;;  %v785_v21 = vmul.f32 %v273_v9, %v273_v9 }
  0xaa   : > { %v1802_v25 = vmul.f32 %v1290_v14, %v266_v54  ;;  %v1803_v26 = vmul.f32 %v1291_v15, %v267_v55  ;;  %v1804_v27 = vmul.f32 %v1292_v16, %v268_v56  ;;  %v1296_v28 = vmul.f32 %v784_v17, %v784_v17  ;;  %v282_v54 = vld [vmem:[%s3069_s30 + $0x480] sm:$0xff]  ;;  %v283_v55 = vld [vmem:[%s3069_s30 + $0x488] sm:$0xff]  ;;  %v284_v56 = vld [vmem:[%s3069_s30 + $0x490] sm:$0xff] }
  0xab   : > { %v1805_v32 = vmul.f32 %v1293_v18, %v269_v61  ;;  %v1806_v33 = vmul.f32 %v1294_v19, %v270_v62  ;;  %v1807_v34 = vmul.f32 %v1295_v20, %v271_v63  ;;  %v1297_v35 = vmul.f32 %v785_v21, %v785_v21  ;;  %v285_v61 = vld [vmem:[%s3069_s30 + $0x498] sm:$0xff]  ;;  %v286_v62 = vld [vmem:[%s3069_s30 + $0x4a0] sm:$0xff]  ;;  %v287_v63 = vld [vmem:[%s3069_s30 + $0x4a8] sm:$0xff] }
  0xac   : > { %2314 = vst [vmem:[%s3092_s17 + $0x400] sm:$0xff] %v1802_v25  ;;  %2315 = vst [vmem:[%s3092_s17 + $0x408] sm:$0xff] %v1803_v26  ;;  %v1808_v37 = vmul.f32 %v1296_v28, %v272_v4  ;;  %v786_v38 = vmul.f32 %v274_v22, %v274_v22  ;;  %v787_v39 = vmul.f32 %v275_v23, %v275_v23  ;;  %v288_v4 = vld [vmem:[%s3069_s30 + $0x4b0] sm:$0xff] }
  0xad   : > { %2316 = vst [vmem:[%s3092_s17 + $0x410] sm:$0xff] %v1804_v27  ;;  %v788_v40 = vmul.f32 %v276_v24, %v276_v24  ;;  %2317 = vst [vmem:[%s3092_s17 + $0x418] sm:$0xff] %v1805_v32  ;;  %v1809_v42 = vmul.f32 %v1297_v35, %v273_v9  ;;  %v789_v43 = vmul.f32 %v277_v29, %v277_v29  ;;  %v289_v9 = vld [vmem:[%s3069_s30 + $0x4b8] sm:$0xff] }
  0xae   : > { %2318 = vst [vmem:[%s3092_s17 + $0x420] sm:$0xff] %v1806_v33  ;;  %2319 = vst [vmem:[%s3092_s17 + $0x428] sm:$0xff] %v1807_v34  ;;  %v790_v44 = vmul.f32 %v278_v30, %v278_v30  ;;  %v791_v45 = vmul.f32 %v279_v31, %v279_v31  ;;  %v1298_v46 = vmul.f32 %v786_v38, %v786_v38 }
  0xaf   : > { %2320 = vst [vmem:[%s3092_s17 + $0x430] sm:$0xff] %v1808_v37  ;;  %v1299_v47 = vmul.f32 %v787_v39, %v787_v39  ;;  %v1300_v48 = vmul.f32 %v788_v40, %v788_v40  ;;  %v792_v49 = vmul.f32 %v280_v36, %v280_v36  ;;  %2321 = vst [vmem:[%s3092_s17 + $0x438] sm:$0xff] %v1809_v42 }
  0xb0   : > { %v1301_v50 = vmul.f32 %v789_v43, %v789_v43  ;;  %v1302_v51 = vmul.f32 %v790_v44, %v790_v44  ;;  %v1303_v52 = vmul.f32 %v791_v45, %v791_v45  ;;  %v793_v53 = vmul.f32 %v281_v41, %v281_v41 }
  0xb1   : > { %v1810_v57 = vmul.f32 %v1298_v46, %v274_v22  ;;  %v1811_v58 = vmul.f32 %v1299_v47, %v275_v23  ;;  %v1812_v59 = vmul.f32 %v1300_v48, %v276_v24  ;;  %v1304_v60 = vmul.f32 %v792_v49, %v792_v49  ;;  %v290_v22 = vld [vmem:[%s3069_s30 + $0x4c0] sm:$0xff]  ;;  %v291_v23 = vld [vmem:[%s3069_s30 + $0x4c8] sm:$0xff]  ;;  %v292_v24 = vld [vmem:[%s3069_s30 + $0x4d0] sm:$0xff] }
  0xb2   : > { %v1813_v0 = vmul.f32 %v1301_v50, %v277_v29  ;;  %v1814_v1 = vmul.f32 %v1302_v51, %v278_v30  ;;  %v1815_v2 = vmul.f32 %v1303_v52, %v279_v31  ;;  %v1305_v3 = vmul.f32 %v793_v53, %v793_v53  ;;  %v293_v29 = vld [vmem:[%s3069_s30 + $0x4d8] sm:$0xff]  ;;  %v294_v30 = vld [vmem:[%s3069_s30 + $0x4e0] sm:$0xff]  ;;  %v295_v31 = vld [vmem:[%s3069_s30 + $0x4e8] sm:$0xff] }
  0xb3   : > { %2322 = vst [vmem:[%s3092_s17 + $0x440] sm:$0xff] %v1810_v57  ;;  %2323 = vst [vmem:[%s3092_s17 + $0x448] sm:$0xff] %v1811_v58  ;;  %v1816_v5 = vmul.f32 %v1304_v60, %v280_v36  ;;  %v794_v6 = vmul.f32 %v282_v54, %v282_v54  ;;  %v795_v7 = vmul.f32 %v283_v55, %v283_v55  ;;  %v296_v36 = vld [vmem:[%s3069_s30 + $0x4f0] sm:$0xff] }
  0xb4   : > { %2324 = vst [vmem:[%s3092_s17 + $0x450] sm:$0xff] %v1812_v59  ;;  %v796_v8 = vmul.f32 %v284_v56, %v284_v56  ;;  %2325 = vst [vmem:[%s3092_s17 + $0x458] sm:$0xff] %v1813_v0  ;;  %v1817_v10 = vmul.f32 %v1305_v3, %v281_v41  ;;  %v797_v11 = vmul.f32 %v285_v61, %v285_v61  ;;  %v297_v41 = vld [vmem:[%s3069_s30 + $0x4f8] sm:$0xff] }
  0xb5   : > { %2326 = vst [vmem:[%s3092_s17 + $0x460] sm:$0xff] %v1814_v1  ;;  %2327 = vst [vmem:[%s3092_s17 + $0x468] sm:$0xff] %v1815_v2  ;;  %v798_v12 = vmul.f32 %v286_v62, %v286_v62  ;;  %v799_v13 = vmul.f32 %v287_v63, %v287_v63  ;;  %v1306_v14 = vmul.f32 %v794_v6, %v794_v6 }
  0xb6   : > { %2328 = vst [vmem:[%s3092_s17 + $0x470] sm:$0xff] %v1816_v5  ;;  %v1307_v15 = vmul.f32 %v795_v7, %v795_v7  ;;  %v1308_v16 = vmul.f32 %v796_v8, %v796_v8  ;;  %v800_v17 = vmul.f32 %v288_v4, %v288_v4  ;;  %2329 = vst [vmem:[%s3092_s17 + $0x478] sm:$0xff] %v1817_v10 }
  0xb7   : > { %v1309_v18 = vmul.f32 %v797_v11, %v797_v11  ;;  %v1310_v19 = vmul.f32 %v798_v12, %v798_v12  ;;  %v1311_v20 = vmul.f32 %v799_v13, %v799_v13  ;;  %v801_v21 = vmul.f32 %v289_v9, %v289_v9 }
  0xb8   : > { %v1818_v25 = vmul.f32 %v1306_v14, %v282_v54  ;;  %v1819_v26 = vmul.f32 %v1307_v15, %v283_v55  ;;  %v1820_v27 = vmul.f32 %v1308_v16, %v284_v56  ;;  %v1312_v28 = vmul.f32 %v800_v17, %v800_v17  ;;  %v298_v54 = vld [vmem:[%s3069_s30 + $0x500] sm:$0xff]  ;;  %v299_v55 = vld [vmem:[%s3069_s30 + $0x508] sm:$0xff]  ;;  %v300_v56 = vld [vmem:[%s3069_s30 + $0x510] sm:$0xff] }
  0xb9   : > { %v1821_v32 = vmul.f32 %v1309_v18, %v285_v61  ;;  %v1822_v33 = vmul.f32 %v1310_v19, %v286_v62  ;;  %v1823_v34 = vmul.f32 %v1311_v20, %v287_v63  ;;  %v1313_v35 = vmul.f32 %v801_v21, %v801_v21  ;;  %v301_v61 = vld [vmem:[%s3069_s30 + $0x518] sm:$0xff]  ;;  %v302_v62 = vld [vmem:[%s3069_s30 + $0x520] sm:$0xff]  ;;  %v303_v63 = vld [vmem:[%s3069_s30 + $0x528] sm:$0xff] }
  0xba   : > { %2330 = vst [vmem:[%s3092_s17 + $0x480] sm:$0xff] %v1818_v25  ;;  %2331 = vst [vmem:[%s3092_s17 + $0x488] sm:$0xff] %v1819_v26  ;;  %v1824_v37 = vmul.f32 %v1312_v28, %v288_v4  ;;  %v802_v38 = vmul.f32 %v290_v22, %v290_v22  ;;  %v803_v39 = vmul.f32 %v291_v23, %v291_v23  ;;  %v304_v4 = vld [vmem:[%s3069_s30 + $0x530] sm:$0xff] }
  0xbb   : > { %2332 = vst [vmem:[%s3092_s17 + $0x490] sm:$0xff] %v1820_v27  ;;  %v804_v40 = vmul.f32 %v292_v24, %v292_v24  ;;  %2333 = vst [vmem:[%s3092_s17 + $0x498] sm:$0xff] %v1821_v32  ;;  %v1825_v42 = vmul.f32 %v1313_v35, %v289_v9  ;;  %v805_v43 = vmul.f32 %v293_v29, %v293_v29  ;;  %v305_v9 = vld [vmem:[%s3069_s30 + $0x538] sm:$0xff] }
  0xbc   : > { %2334 = vst [vmem:[%s3092_s17 + $0x4a0] sm:$0xff] %v1822_v33  ;;  %2335 = vst [vmem:[%s3092_s17 + $0x4a8] sm:$0xff] %v1823_v34  ;;  %v806_v44 = vmul.f32 %v294_v30, %v294_v30  ;;  %v807_v45 = vmul.f32 %v295_v31, %v295_v31  ;;  %v1314_v46 = vmul.f32 %v802_v38, %v802_v38 }
  0xbd   : > { %2336 = vst [vmem:[%s3092_s17 + $0x4b0] sm:$0xff] %v1824_v37  ;;  %v1315_v47 = vmul.f32 %v803_v39, %v803_v39  ;;  %v1316_v48 = vmul.f32 %v804_v40, %v804_v40  ;;  %v808_v49 = vmul.f32 %v296_v36, %v296_v36  ;;  %2337 = vst [vmem:[%s3092_s17 + $0x4b8] sm:$0xff] %v1825_v42 }
  0xbe   : > { %v1317_v50 = vmul.f32 %v805_v43, %v805_v43  ;;  %v1318_v51 = vmul.f32 %v806_v44, %v806_v44  ;;  %v1319_v52 = vmul.f32 %v807_v45, %v807_v45  ;;  %v809_v53 = vmul.f32 %v297_v41, %v297_v41 }
  0xbf   : > { %v1826_v57 = vmul.f32 %v1314_v46, %v290_v22  ;;  %v1827_v58 = vmul.f32 %v1315_v47, %v291_v23  ;;  %v1828_v59 = vmul.f32 %v1316_v48, %v292_v24  ;;  %v1320_v60 = vmul.f32 %v808_v49, %v808_v49  ;;  %v306_v22 = vld [vmem:[%s3069_s30 + $0x540] sm:$0xff]  ;;  %v307_v23 = vld [vmem:[%s3069_s30 + $0x548] sm:$0xff]  ;;  %v308_v24 = vld [vmem:[%s3069_s30 + $0x550] sm:$0xff] }
  0xc0   : > { %v1829_v0 = vmul.f32 %v1317_v50, %v293_v29  ;;  %v1830_v1 = vmul.f32 %v1318_v51, %v294_v30  ;;  %v1831_v2 = vmul.f32 %v1319_v52, %v295_v31  ;;  %v1321_v3 = vmul.f32 %v809_v53, %v809_v53  ;;  %v309_v29 = vld [vmem:[%s3069_s30 + $0x558] sm:$0xff]  ;;  %v310_v30 = vld [vmem:[%s3069_s30 + $0x560] sm:$0xff]  ;;  %v311_v31 = vld [vmem:[%s3069_s30 + $0x568] sm:$0xff] }
  0xc1   : > { %2338 = vst [vmem:[%s3092_s17 + $0x4c0] sm:$0xff] %v1826_v57  ;;  %2339 = vst [vmem:[%s3092_s17 + $0x4c8] sm:$0xff] %v1827_v58  ;;  %v1832_v5 = vmul.f32 %v1320_v60, %v296_v36  ;;  %v810_v6 = vmul.f32 %v298_v54, %v298_v54  ;;  %v811_v7 = vmul.f32 %v299_v55, %v299_v55  ;;  %v312_v36 = vld [vmem:[%s3069_s30 + $0x570] sm:$0xff] }
  0xc2   : > { %2340 = vst [vmem:[%s3092_s17 + $0x4d0] sm:$0xff] %v1828_v59  ;;  %v812_v8 = vmul.f32 %v300_v56, %v300_v56  ;;  %2341 = vst [vmem:[%s3092_s17 + $0x4d8] sm:$0xff] %v1829_v0  ;;  %v1833_v10 = vmul.f32 %v1321_v3, %v297_v41  ;;  %v813_v11 = vmul.f32 %v301_v61, %v301_v61  ;;  %v313_v41 = vld [vmem:[%s3069_s30 + $0x578] sm:$0xff] }
  0xc3   : > { %2342 = vst [vmem:[%s3092_s17 + $0x4e0] sm:$0xff] %v1830_v1  ;;  %2343 = vst [vmem:[%s3092_s17 + $0x4e8] sm:$0xff] %v1831_v2  ;;  %v814_v12 = vmul.f32 %v302_v62, %v302_v62  ;;  %v815_v13 = vmul.f32 %v303_v63, %v303_v63  ;;  %v1322_v14 = vmul.f32 %v810_v6, %v810_v6 }
  0xc4   : > { %2344 = vst [vmem:[%s3092_s17 + $0x4f0] sm:$0xff] %v1832_v5  ;;  %v1323_v15 = vmul.f32 %v811_v7, %v811_v7  ;;  %v1324_v16 = vmul.f32 %v812_v8, %v812_v8  ;;  %v816_v17 = vmul.f32 %v304_v4, %v304_v4  ;;  %2345 = vst [vmem:[%s3092_s17 + $0x4f8] sm:$0xff] %v1833_v10 }
  0xc5   : > { %v1325_v18 = vmul.f32 %v813_v11, %v813_v11  ;;  %v1326_v19 = vmul.f32 %v814_v12, %v814_v12  ;;  %v1327_v20 = vmul.f32 %v815_v13, %v815_v13  ;;  %v817_v21 = vmul.f32 %v305_v9, %v305_v9 }
  0xc6   : > { %v1834_v25 = vmul.f32 %v1322_v14, %v298_v54  ;;  %v1835_v26 = vmul.f32 %v1323_v15, %v299_v55  ;;  %v1836_v27 = vmul.f32 %v1324_v16, %v300_v56  ;;  %v1328_v28 = vmul.f32 %v816_v17, %v816_v17  ;;  %v314_v54 = vld [vmem:[%s3069_s30 + $0x580] sm:$0xff]  ;;  %v315_v55 = vld [vmem:[%s3069_s30 + $0x588] sm:$0xff]  ;;  %v316_v56 = vld [vmem:[%s3069_s30 + $0x590] sm:$0xff] }
  0xc7   : > { %v1837_v32 = vmul.f32 %v1325_v18, %v301_v61  ;;  %v1838_v33 = vmul.f32 %v1326_v19, %v302_v62  ;;  %v1839_v34 = vmul.f32 %v1327_v20, %v303_v63  ;;  %v1329_v35 = vmul.f32 %v817_v21, %v817_v21  ;;  %v317_v61 = vld [vmem:[%s3069_s30 + $0x598] sm:$0xff]  ;;  %v318_v62 = vld [vmem:[%s3069_s30 + $0x5a0] sm:$0xff]  ;;  %v319_v63 = vld [vmem:[%s3069_s30 + $0x5a8] sm:$0xff] }
  0xc8   : > { %2346 = vst [vmem:[%s3092_s17 + $0x500] sm:$0xff] %v1834_v25  ;;  %2347 = vst [vmem:[%s3092_s17 + $0x508] sm:$0xff] %v1835_v26  ;;  %v1840_v37 = vmul.f32 %v1328_v28, %v304_v4  ;;  %v818_v38 = vmul.f32 %v306_v22, %v306_v22  ;;  %v819_v39 = vmul.f32 %v307_v23, %v307_v23  ;;  %v320_v4 = vld [vmem:[%s3069_s30 + $0x5b0] sm:$0xff] }
  0xc9   : > { %2348 = vst [vmem:[%s3092_s17 + $0x510] sm:$0xff] %v1836_v27  ;;  %v820_v40 = vmul.f32 %v308_v24, %v308_v24  ;;  %2349 = vst [vmem:[%s3092_s17 + $0x518] sm:$0xff] %v1837_v32  ;;  %v1841_v42 = vmul.f32 %v1329_v35, %v305_v9  ;;  %v821_v43 = vmul.f32 %v309_v29, %v309_v29  ;;  %v321_v9 = vld [vmem:[%s3069_s30 + $0x5b8] sm:$0xff] }
  0xca   : > { %2350 = vst [vmem:[%s3092_s17 + $0x520] sm:$0xff] %v1838_v33  ;;  %2351 = vst [vmem:[%s3092_s17 + $0x528] sm:$0xff] %v1839_v34  ;;  %v822_v44 = vmul.f32 %v310_v30, %v310_v30  ;;  %v823_v45 = vmul.f32 %v311_v31, %v311_v31  ;;  %v1330_v46 = vmul.f32 %v818_v38, %v818_v38 }
  0xcb   : > { %2352 = vst [vmem:[%s3092_s17 + $0x530] sm:$0xff] %v1840_v37  ;;  %v1331_v47 = vmul.f32 %v819_v39, %v819_v39  ;;  %v1332_v48 = vmul.f32 %v820_v40, %v820_v40  ;;  %v824_v49 = vmul.f32 %v312_v36, %v312_v36  ;;  %2353 = vst [vmem:[%s3092_s17 + $0x538] sm:$0xff] %v1841_v42 }
  0xcc   : > { %v1333_v50 = vmul.f32 %v821_v43, %v821_v43  ;;  %v1334_v51 = vmul.f32 %v822_v44, %v822_v44  ;;  %v1335_v52 = vmul.f32 %v823_v45, %v823_v45  ;;  %v825_v53 = vmul.f32 %v313_v41, %v313_v41 }
  0xcd   : > { %v1842_v57 = vmul.f32 %v1330_v46, %v306_v22  ;;  %v1843_v58 = vmul.f32 %v1331_v47, %v307_v23  ;;  %v1844_v59 = vmul.f32 %v1332_v48, %v308_v24  ;;  %v1336_v60 = vmul.f32 %v824_v49, %v824_v49  ;;  %v322_v22 = vld [vmem:[%s3069_s30 + $0x5c0] sm:$0xff]  ;;  %v323_v23 = vld [vmem:[%s3069_s30 + $0x5c8] sm:$0xff]  ;;  %v324_v24 = vld [vmem:[%s3069_s30 + $0x5d0] sm:$0xff] }
  0xce   : > { %v1845_v0 = vmul.f32 %v1333_v50, %v309_v29  ;;  %v1846_v1 = vmul.f32 %v1334_v51, %v310_v30  ;;  %v1847_v2 = vmul.f32 %v1335_v52, %v311_v31  ;;  %v1337_v3 = vmul.f32 %v825_v53, %v825_v53  ;;  %v325_v29 = vld [vmem:[%s3069_s30 + $0x5d8] sm:$0xff]  ;;  %v326_v30 = vld [vmem:[%s3069_s30 + $0x5e0] sm:$0xff]  ;;  %v327_v31 = vld [vmem:[%s3069_s30 + $0x5e8] sm:$0xff] }
  0xcf   : > { %2354 = vst [vmem:[%s3092_s17 + $0x540] sm:$0xff] %v1842_v57  ;;  %2355 = vst [vmem:[%s3092_s17 + $0x548] sm:$0xff] %v1843_v58  ;;  %v1848_v5 = vmul.f32 %v1336_v60, %v312_v36  ;;  %v826_v6 = vmul.f32 %v314_v54, %v314_v54  ;;  %v827_v7 = vmul.f32 %v315_v55, %v315_v55  ;;  %v328_v36 = vld [vmem:[%s3069_s30 + $0x5f0] sm:$0xff] }
  0xd0   : > { %2356 = vst [vmem:[%s3092_s17 + $0x550] sm:$0xff] %v1844_v59  ;;  %v828_v8 = vmul.f32 %v316_v56, %v316_v56  ;;  %2357 = vst [vmem:[%s3092_s17 + $0x558] sm:$0xff] %v1845_v0  ;;  %v1849_v10 = vmul.f32 %v1337_v3, %v313_v41  ;;  %v829_v11 = vmul.f32 %v317_v61, %v317_v61  ;;  %v329_v41 = vld [vmem:[%s3069_s30 + $0x5f8] sm:$0xff] }
  0xd1   : > { %2358 = vst [vmem:[%s3092_s17 + $0x560] sm:$0xff] %v1846_v1  ;;  %2359 = vst [vmem:[%s3092_s17 + $0x568] sm:$0xff] %v1847_v2  ;;  %v830_v12 = vmul.f32 %v318_v62, %v318_v62  ;;  %v831_v13 = vmul.f32 %v319_v63, %v319_v63  ;;  %v1338_v14 = vmul.f32 %v826_v6, %v826_v6 }
  0xd2   : > { %2360 = vst [vmem:[%s3092_s17 + $0x570] sm:$0xff] %v1848_v5  ;;  %v1339_v15 = vmul.f32 %v827_v7, %v827_v7  ;;  %v1340_v16 = vmul.f32 %v828_v8, %v828_v8  ;;  %v832_v17 = vmul.f32 %v320_v4, %v320_v4  ;;  %2361 = vst [vmem:[%s3092_s17 + $0x578] sm:$0xff] %v1849_v10 }
  0xd3   : > { %v1341_v18 = vmul.f32 %v829_v11, %v829_v11  ;;  %v1342_v19 = vmul.f32 %v830_v12, %v830_v12  ;;  %v1343_v20 = vmul.f32 %v831_v13, %v831_v13  ;;  %v833_v21 = vmul.f32 %v321_v9, %v321_v9 }
  0xd4   : > { %v1850_v25 = vmul.f32 %v1338_v14, %v314_v54  ;;  %v1851_v26 = vmul.f32 %v1339_v15, %v315_v55  ;;  %v1852_v27 = vmul.f32 %v1340_v16, %v316_v56  ;;  %v1344_v28 = vmul.f32 %v832_v17, %v832_v17  ;;  %v330_v54 = vld [vmem:[%s3069_s30 + $0x600] sm:$0xff]  ;;  %v331_v55 = vld [vmem:[%s3069_s30 + $0x608] sm:$0xff]  ;;  %v332_v56 = vld [vmem:[%s3069_s30 + $0x610] sm:$0xff] }
  0xd5   : > { %v1853_v32 = vmul.f32 %v1341_v18, %v317_v61  ;;  %v1854_v33 = vmul.f32 %v1342_v19, %v318_v62  ;;  %v1855_v34 = vmul.f32 %v1343_v20, %v319_v63  ;;  %v1345_v35 = vmul.f32 %v833_v21, %v833_v21  ;;  %v333_v61 = vld [vmem:[%s3069_s30 + $0x618] sm:$0xff]  ;;  %v334_v62 = vld [vmem:[%s3069_s30 + $0x620] sm:$0xff]  ;;  %v335_v63 = vld [vmem:[%s3069_s30 + $0x628] sm:$0xff] }
  0xd6   : > { %2362 = vst [vmem:[%s3092_s17 + $0x580] sm:$0xff] %v1850_v25  ;;  %2363 = vst [vmem:[%s3092_s17 + $0x588] sm:$0xff] %v1851_v26  ;;  %v1856_v37 = vmul.f32 %v1344_v28, %v320_v4  ;;  %v834_v38 = vmul.f32 %v322_v22, %v322_v22  ;;  %v835_v39 = vmul.f32 %v323_v23, %v323_v23  ;;  %v336_v4 = vld [vmem:[%s3069_s30 + $0x630] sm:$0xff] }
  0xd7   : > { %2364 = vst [vmem:[%s3092_s17 + $0x590] sm:$0xff] %v1852_v27  ;;  %v836_v40 = vmul.f32 %v324_v24, %v324_v24  ;;  %2365 = vst [vmem:[%s3092_s17 + $0x598] sm:$0xff] %v1853_v32  ;;  %v1857_v42 = vmul.f32 %v1345_v35, %v321_v9  ;;  %v837_v43 = vmul.f32 %v325_v29, %v325_v29  ;;  %v337_v9 = vld [vmem:[%s3069_s30 + $0x638] sm:$0xff] }
  0xd8   : > { %2366 = vst [vmem:[%s3092_s17 + $0x5a0] sm:$0xff] %v1854_v33  ;;  %2367 = vst [vmem:[%s3092_s17 + $0x5a8] sm:$0xff] %v1855_v34  ;;  %v838_v44 = vmul.f32 %v326_v30, %v326_v30  ;;  %v839_v45 = vmul.f32 %v327_v31, %v327_v31  ;;  %v1346_v46 = vmul.f32 %v834_v38, %v834_v38 }
  0xd9   : > { %2368 = vst [vmem:[%s3092_s17 + $0x5b0] sm:$0xff] %v1856_v37  ;;  %v1347_v47 = vmul.f32 %v835_v39, %v835_v39  ;;  %v1348_v48 = vmul.f32 %v836_v40, %v836_v40  ;;  %v840_v49 = vmul.f32 %v328_v36, %v328_v36  ;;  %2369 = vst [vmem:[%s3092_s17 + $0x5b8] sm:$0xff] %v1857_v42 }
  0xda   : > { %v1349_v50 = vmul.f32 %v837_v43, %v837_v43  ;;  %v1350_v51 = vmul.f32 %v838_v44, %v838_v44  ;;  %v1351_v52 = vmul.f32 %v839_v45, %v839_v45  ;;  %v841_v53 = vmul.f32 %v329_v41, %v329_v41 }
  0xdb   : > { %v1858_v57 = vmul.f32 %v1346_v46, %v322_v22  ;;  %v1859_v58 = vmul.f32 %v1347_v47, %v323_v23  ;;  %v1860_v59 = vmul.f32 %v1348_v48, %v324_v24  ;;  %v1352_v60 = vmul.f32 %v840_v49, %v840_v49  ;;  %v338_v22 = vld [vmem:[%s3069_s30 + $0x640] sm:$0xff]  ;;  %v339_v23 = vld [vmem:[%s3069_s30 + $0x648] sm:$0xff]  ;;  %v340_v24 = vld [vmem:[%s3069_s30 + $0x650] sm:$0xff] }
  0xdc   : > { %v1861_v0 = vmul.f32 %v1349_v50, %v325_v29  ;;  %v1862_v1 = vmul.f32 %v1350_v51, %v326_v30  ;;  %v1863_v2 = vmul.f32 %v1351_v52, %v327_v31  ;;  %v1353_v3 = vmul.f32 %v841_v53, %v841_v53  ;;  %v341_v29 = vld [vmem:[%s3069_s30 + $0x658] sm:$0xff]  ;;  %v342_v30 = vld [vmem:[%s3069_s30 + $0x660] sm:$0xff]  ;;  %v343_v31 = vld [vmem:[%s3069_s30 + $0x668] sm:$0xff] }
  0xdd   : > { %2370 = vst [vmem:[%s3092_s17 + $0x5c0] sm:$0xff] %v1858_v57  ;;  %2371 = vst [vmem:[%s3092_s17 + $0x5c8] sm:$0xff] %v1859_v58  ;;  %v1864_v5 = vmul.f32 %v1352_v60, %v328_v36  ;;  %v842_v6 = vmul.f32 %v330_v54, %v330_v54  ;;  %v843_v7 = vmul.f32 %v331_v55, %v331_v55  ;;  %v344_v36 = vld [vmem:[%s3069_s30 + $0x670] sm:$0xff] }
  0xde   : > { %2372 = vst [vmem:[%s3092_s17 + $0x5d0] sm:$0xff] %v1860_v59  ;;  %v844_v8 = vmul.f32 %v332_v56, %v332_v56  ;;  %2373 = vst [vmem:[%s3092_s17 + $0x5d8] sm:$0xff] %v1861_v0  ;;  %v1865_v10 = vmul.f32 %v1353_v3, %v329_v41  ;;  %v845_v11 = vmul.f32 %v333_v61, %v333_v61  ;;  %v345_v41 = vld [vmem:[%s3069_s30 + $0x678] sm:$0xff] }
  0xdf   : > { %2374 = vst [vmem:[%s3092_s17 + $0x5e0] sm:$0xff] %v1862_v1  ;;  %2375 = vst [vmem:[%s3092_s17 + $0x5e8] sm:$0xff] %v1863_v2  ;;  %v846_v12 = vmul.f32 %v334_v62, %v334_v62  ;;  %v847_v13 = vmul.f32 %v335_v63, %v335_v63  ;;  %v1354_v14 = vmul.f32 %v842_v6, %v842_v6 }
  0xe0   : > { %2376 = vst [vmem:[%s3092_s17 + $0x5f0] sm:$0xff] %v1864_v5  ;;  %v1355_v15 = vmul.f32 %v843_v7, %v843_v7  ;;  %v1356_v16 = vmul.f32 %v844_v8, %v844_v8  ;;  %v848_v17 = vmul.f32 %v336_v4, %v336_v4  ;;  %2377 = vst [vmem:[%s3092_s17 + $0x5f8] sm:$0xff] %v1865_v10 }
  0xe1   : > { %v1357_v18 = vmul.f32 %v845_v11, %v845_v11  ;;  %v1358_v19 = vmul.f32 %v846_v12, %v846_v12  ;;  %v1359_v20 = vmul.f32 %v847_v13, %v847_v13  ;;  %v849_v21 = vmul.f32 %v337_v9, %v337_v9 }
  0xe2   : > { %v1866_v25 = vmul.f32 %v1354_v14, %v330_v54  ;;  %v1867_v26 = vmul.f32 %v1355_v15, %v331_v55  ;;  %v1868_v27 = vmul.f32 %v1356_v16, %v332_v56  ;;  %v1360_v28 = vmul.f32 %v848_v17, %v848_v17  ;;  %v346_v54 = vld [vmem:[%s3069_s30 + $0x680] sm:$0xff]  ;;  %v347_v55 = vld [vmem:[%s3069_s30 + $0x688] sm:$0xff]  ;;  %v348_v56 = vld [vmem:[%s3069_s30 + $0x690] sm:$0xff] }
  0xe3   : > { %v1869_v32 = vmul.f32 %v1357_v18, %v333_v61  ;;  %v1870_v33 = vmul.f32 %v1358_v19, %v334_v62  ;;  %v1871_v34 = vmul.f32 %v1359_v20, %v335_v63  ;;  %v1361_v35 = vmul.f32 %v849_v21, %v849_v21  ;;  %v349_v61 = vld [vmem:[%s3069_s30 + $0x698] sm:$0xff]  ;;  %v350_v62 = vld [vmem:[%s3069_s30 + $0x6a0] sm:$0xff]  ;;  %v351_v63 = vld [vmem:[%s3069_s30 + $0x6a8] sm:$0xff] }
  0xe4   : > { %2378 = vst [vmem:[%s3092_s17 + $0x600] sm:$0xff] %v1866_v25  ;;  %2379 = vst [vmem:[%s3092_s17 + $0x608] sm:$0xff] %v1867_v26  ;;  %v1872_v37 = vmul.f32 %v1360_v28, %v336_v4  ;;  %v850_v38 = vmul.f32 %v338_v22, %v338_v22  ;;  %v851_v39 = vmul.f32 %v339_v23, %v339_v23  ;;  %v352_v4 = vld [vmem:[%s3069_s30 + $0x6b0] sm:$0xff] }
  0xe5   : > { %2380 = vst [vmem:[%s3092_s17 + $0x610] sm:$0xff] %v1868_v27  ;;  %v852_v40 = vmul.f32 %v340_v24, %v340_v24  ;;  %2381 = vst [vmem:[%s3092_s17 + $0x618] sm:$0xff] %v1869_v32  ;;  %v1873_v42 = vmul.f32 %v1361_v35, %v337_v9  ;;  %v853_v43 = vmul.f32 %v341_v29, %v341_v29  ;;  %v353_v9 = vld [vmem:[%s3069_s30 + $0x6b8] sm:$0xff] }
  0xe6   : > { %2382 = vst [vmem:[%s3092_s17 + $0x620] sm:$0xff] %v1870_v33  ;;  %2383 = vst [vmem:[%s3092_s17 + $0x628] sm:$0xff] %v1871_v34  ;;  %v854_v44 = vmul.f32 %v342_v30, %v342_v30  ;;  %v855_v45 = vmul.f32 %v343_v31, %v343_v31  ;;  %v1362_v46 = vmul.f32 %v850_v38, %v850_v38 }
  0xe7   : > { %2384 = vst [vmem:[%s3092_s17 + $0x630] sm:$0xff] %v1872_v37  ;;  %v1363_v47 = vmul.f32 %v851_v39, %v851_v39  ;;  %v1364_v48 = vmul.f32 %v852_v40, %v852_v40  ;;  %v856_v49 = vmul.f32 %v344_v36, %v344_v36  ;;  %2385 = vst [vmem:[%s3092_s17 + $0x638] sm:$0xff] %v1873_v42 }
  0xe8   : > { %v1365_v50 = vmul.f32 %v853_v43, %v853_v43  ;;  %v1366_v51 = vmul.f32 %v854_v44, %v854_v44  ;;  %v1367_v52 = vmul.f32 %v855_v45, %v855_v45  ;;  %v857_v53 = vmul.f32 %v345_v41, %v345_v41 }
  0xe9   : > { %v1874_v57 = vmul.f32 %v1362_v46, %v338_v22  ;;  %v1875_v58 = vmul.f32 %v1363_v47, %v339_v23  ;;  %v1876_v59 = vmul.f32 %v1364_v48, %v340_v24  ;;  %v1368_v60 = vmul.f32 %v856_v49, %v856_v49  ;;  %v354_v22 = vld [vmem:[%s3069_s30 + $0x6c0] sm:$0xff]  ;;  %v355_v23 = vld [vmem:[%s3069_s30 + $0x6c8] sm:$0xff]  ;;  %v356_v24 = vld [vmem:[%s3069_s30 + $0x6d0] sm:$0xff] }
  0xea   : > { %v1877_v0 = vmul.f32 %v1365_v50, %v341_v29  ;;  %v1878_v1 = vmul.f32 %v1366_v51, %v342_v30  ;;  %v1879_v2 = vmul.f32 %v1367_v52, %v343_v31  ;;  %v1369_v3 = vmul.f32 %v857_v53, %v857_v53  ;;  %v357_v29 = vld [vmem:[%s3069_s30 + $0x6d8] sm:$0xff]  ;;  %v358_v30 = vld [vmem:[%s3069_s30 + $0x6e0] sm:$0xff]  ;;  %v359_v31 = vld [vmem:[%s3069_s30 + $0x6e8] sm:$0xff] }
  0xeb   : > { %2386 = vst [vmem:[%s3092_s17 + $0x640] sm:$0xff] %v1874_v57  ;;  %2387 = vst [vmem:[%s3092_s17 + $0x648] sm:$0xff] %v1875_v58  ;;  %v1880_v5 = vmul.f32 %v1368_v60, %v344_v36  ;;  %v858_v6 = vmul.f32 %v346_v54, %v346_v54  ;;  %v859_v7 = vmul.f32 %v347_v55, %v347_v55  ;;  %v360_v36 = vld [vmem:[%s3069_s30 + $0x6f0] sm:$0xff] }
  0xec   : > { %2388 = vst [vmem:[%s3092_s17 + $0x650] sm:$0xff] %v1876_v59  ;;  %v860_v8 = vmul.f32 %v348_v56, %v348_v56  ;;  %2389 = vst [vmem:[%s3092_s17 + $0x658] sm:$0xff] %v1877_v0  ;;  %v1881_v10 = vmul.f32 %v1369_v3, %v345_v41  ;;  %v861_v11 = vmul.f32 %v349_v61, %v349_v61  ;;  %v361_v41 = vld [vmem:[%s3069_s30 + $0x6f8] sm:$0xff] }
  0xed   : > { %2390 = vst [vmem:[%s3092_s17 + $0x660] sm:$0xff] %v1878_v1  ;;  %2391 = vst [vmem:[%s3092_s17 + $0x668] sm:$0xff] %v1879_v2  ;;  %v862_v12 = vmul.f32 %v350_v62, %v350_v62  ;;  %v863_v13 = vmul.f32 %v351_v63, %v351_v63  ;;  %v1370_v14 = vmul.f32 %v858_v6, %v858_v6 }
  0xee   : > { %2392 = vst [vmem:[%s3092_s17 + $0x670] sm:$0xff] %v1880_v5  ;;  %v1371_v15 = vmul.f32 %v859_v7, %v859_v7  ;;  %v1372_v16 = vmul.f32 %v860_v8, %v860_v8  ;;  %v864_v17 = vmul.f32 %v352_v4, %v352_v4  ;;  %2393 = vst [vmem:[%s3092_s17 + $0x678] sm:$0xff] %v1881_v10 }
  0xef   : > { %v1373_v18 = vmul.f32 %v861_v11, %v861_v11  ;;  %v1374_v19 = vmul.f32 %v862_v12, %v862_v12  ;;  %v1375_v20 = vmul.f32 %v863_v13, %v863_v13  ;;  %v865_v21 = vmul.f32 %v353_v9, %v353_v9 }
  0xf0   : > { %v1882_v25 = vmul.f32 %v1370_v14, %v346_v54  ;;  %v1883_v26 = vmul.f32 %v1371_v15, %v347_v55  ;;  %v1884_v27 = vmul.f32 %v1372_v16, %v348_v56  ;;  %v1376_v28 = vmul.f32 %v864_v17, %v864_v17  ;;  %v362_v54 = vld [vmem:[%s3069_s30 + $0x700] sm:$0xff]  ;;  %v363_v55 = vld [vmem:[%s3069_s30 + $0x708] sm:$0xff]  ;;  %v364_v56 = vld [vmem:[%s3069_s30 + $0x710] sm:$0xff] }
  0xf1   : > { %v1885_v32 = vmul.f32 %v1373_v18, %v349_v61  ;;  %v1886_v33 = vmul.f32 %v1374_v19, %v350_v62  ;;  %v1887_v34 = vmul.f32 %v1375_v20, %v351_v63  ;;  %v1377_v35 = vmul.f32 %v865_v21, %v865_v21  ;;  %v365_v61 = vld [vmem:[%s3069_s30 + $0x718] sm:$0xff]  ;;  %v366_v62 = vld [vmem:[%s3069_s30 + $0x720] sm:$0xff]  ;;  %v367_v63 = vld [vmem:[%s3069_s30 + $0x728] sm:$0xff] }
  0xf2   : > { %2394 = vst [vmem:[%s3092_s17 + $0x680] sm:$0xff] %v1882_v25  ;;  %2395 = vst [vmem:[%s3092_s17 + $0x688] sm:$0xff] %v1883_v26  ;;  %v1888_v37 = vmul.f32 %v1376_v28, %v352_v4  ;;  %v866_v38 = vmul.f32 %v354_v22, %v354_v22  ;;  %v867_v39 = vmul.f32 %v355_v23, %v355_v23  ;;  %v368_v4 = vld [vmem:[%s3069_s30 + $0x730] sm:$0xff] }
  0xf3   : > { %2396 = vst [vmem:[%s3092_s17 + $0x690] sm:$0xff] %v1884_v27  ;;  %v868_v40 = vmul.f32 %v356_v24, %v356_v24  ;;  %2397 = vst [vmem:[%s3092_s17 + $0x698] sm:$0xff] %v1885_v32  ;;  %v1889_v42 = vmul.f32 %v1377_v35, %v353_v9  ;;  %v869_v43 = vmul.f32 %v357_v29, %v357_v29  ;;  %v369_v9 = vld [vmem:[%s3069_s30 + $0x738] sm:$0xff] }
  0xf4   : > { %2398 = vst [vmem:[%s3092_s17 + $0x6a0] sm:$0xff] %v1886_v33  ;;  %2399 = vst [vmem:[%s3092_s17 + $0x6a8] sm:$0xff] %v1887_v34  ;;  %v870_v44 = vmul.f32 %v358_v30, %v358_v30  ;;  %v871_v45 = vmul.f32 %v359_v31, %v359_v31  ;;  %v1378_v46 = vmul.f32 %v866_v38, %v866_v38 }
  0xf5   : > { %2400 = vst [vmem:[%s3092_s17 + $0x6b0] sm:$0xff] %v1888_v37  ;;  %v1379_v47 = vmul.f32 %v867_v39, %v867_v39  ;;  %v1380_v48 = vmul.f32 %v868_v40, %v868_v40  ;;  %v872_v49 = vmul.f32 %v360_v36, %v360_v36  ;;  %2401 = vst [vmem:[%s3092_s17 + $0x6b8] sm:$0xff] %v1889_v42 }
  0xf6   : > { %v1381_v50 = vmul.f32 %v869_v43, %v869_v43  ;;  %v1382_v51 = vmul.f32 %v870_v44, %v870_v44  ;;  %v1383_v52 = vmul.f32 %v871_v45, %v871_v45  ;;  %v873_v53 = vmul.f32 %v361_v41, %v361_v41 }
  0xf7   : > { %v1890_v57 = vmul.f32 %v1378_v46, %v354_v22  ;;  %v1891_v58 = vmul.f32 %v1379_v47, %v355_v23  ;;  %v1892_v59 = vmul.f32 %v1380_v48, %v356_v24  ;;  %v1384_v60 = vmul.f32 %v872_v49, %v872_v49  ;;  %v370_v22 = vld [vmem:[%s3069_s30 + $0x740] sm:$0xff]  ;;  %v371_v23 = vld [vmem:[%s3069_s30 + $0x748] sm:$0xff]  ;;  %v372_v24 = vld [vmem:[%s3069_s30 + $0x750] sm:$0xff] }
  0xf8   : > { %v1893_v0 = vmul.f32 %v1381_v50, %v357_v29  ;;  %v1894_v1 = vmul.f32 %v1382_v51, %v358_v30  ;;  %v1895_v2 = vmul.f32 %v1383_v52, %v359_v31  ;;  %v1385_v3 = vmul.f32 %v873_v53, %v873_v53  ;;  %v373_v29 = vld [vmem:[%s3069_s30 + $0x758] sm:$0xff]  ;;  %v374_v30 = vld [vmem:[%s3069_s30 + $0x760] sm:$0xff]  ;;  %v375_v31 = vld [vmem:[%s3069_s30 + $0x768] sm:$0xff] }
  0xf9   : > { %2402 = vst [vmem:[%s3092_s17 + $0x6c0] sm:$0xff] %v1890_v57  ;;  %2403 = vst [vmem:[%s3092_s17 + $0x6c8] sm:$0xff] %v1891_v58  ;;  %v1896_v5 = vmul.f32 %v1384_v60, %v360_v36  ;;  %v874_v6 = vmul.f32 %v362_v54, %v362_v54  ;;  %v875_v7 = vmul.f32 %v363_v55, %v363_v55  ;;  %v376_v36 = vld [vmem:[%s3069_s30 + $0x770] sm:$0xff] }
  0xfa   : > { %2404 = vst [vmem:[%s3092_s17 + $0x6d0] sm:$0xff] %v1892_v59  ;;  %v876_v8 = vmul.f32 %v364_v56, %v364_v56  ;;  %2405 = vst [vmem:[%s3092_s17 + $0x6d8] sm:$0xff] %v1893_v0  ;;  %v1897_v10 = vmul.f32 %v1385_v3, %v361_v41  ;;  %v877_v11 = vmul.f32 %v365_v61, %v365_v61  ;;  %v377_v41 = vld [vmem:[%s3069_s30 + $0x778] sm:$0xff] }
  0xfb   : > { %2406 = vst [vmem:[%s3092_s17 + $0x6e0] sm:$0xff] %v1894_v1  ;;  %2407 = vst [vmem:[%s3092_s17 + $0x6e8] sm:$0xff] %v1895_v2  ;;  %v878_v12 = vmul.f32 %v366_v62, %v366_v62  ;;  %v879_v13 = vmul.f32 %v367_v63, %v367_v63  ;;  %v1386_v14 = vmul.f32 %v874_v6, %v874_v6 }
  0xfc   : > { %2408 = vst [vmem:[%s3092_s17 + $0x6f0] sm:$0xff] %v1896_v5  ;;  %v1387_v15 = vmul.f32 %v875_v7, %v875_v7  ;;  %v1388_v16 = vmul.f32 %v876_v8, %v876_v8  ;;  %v880_v17 = vmul.f32 %v368_v4, %v368_v4  ;;  %2409 = vst [vmem:[%s3092_s17 + $0x6f8] sm:$0xff] %v1897_v10 }
  0xfd   : > { %v1389_v18 = vmul.f32 %v877_v11, %v877_v11  ;;  %v1390_v19 = vmul.f32 %v878_v12, %v878_v12  ;;  %v1391_v20 = vmul.f32 %v879_v13, %v879_v13  ;;  %v881_v21 = vmul.f32 %v369_v9, %v369_v9 }
  0xfe   : > { %v1898_v25 = vmul.f32 %v1386_v14, %v362_v54  ;;  %v1899_v26 = vmul.f32 %v1387_v15, %v363_v55  ;;  %v1900_v27 = vmul.f32 %v1388_v16, %v364_v56  ;;  %v1392_v28 = vmul.f32 %v880_v17, %v880_v17  ;;  %v378_v54 = vld [vmem:[%s3069_s30 + $0x780] sm:$0xff]  ;;  %v379_v55 = vld [vmem:[%s3069_s30 + $0x788] sm:$0xff]  ;;  %v380_v56 = vld [vmem:[%s3069_s30 + $0x790] sm:$0xff] }
  0xff   : > { %v1901_v32 = vmul.f32 %v1389_v18, %v365_v61  ;;  %v1902_v33 = vmul.f32 %v1390_v19, %v366_v62  ;;  %v1903_v34 = vmul.f32 %v1391_v20, %v367_v63  ;;  %v1393_v35 = vmul.f32 %v881_v21, %v881_v21  ;;  %v381_v61 = vld [vmem:[%s3069_s30 + $0x798] sm:$0xff]  ;;  %v382_v62 = vld [vmem:[%s3069_s30 + $0x7a0] sm:$0xff]  ;;  %v383_v63 = vld [vmem:[%s3069_s30 + $0x7a8] sm:$0xff] }
 0x100   : > { %2410 = vst [vmem:[%s3092_s17 + $0x700] sm:$0xff] %v1898_v25  ;;  %2411 = vst [vmem:[%s3092_s17 + $0x708] sm:$0xff] %v1899_v26  ;;  %v1904_v37 = vmul.f32 %v1392_v28, %v368_v4  ;;  %v882_v38 = vmul.f32 %v370_v22, %v370_v22  ;;  %v883_v39 = vmul.f32 %v371_v23, %v371_v23  ;;  %v384_v4 = vld [vmem:[%s3069_s30 + $0x7b0] sm:$0xff] }
 0x101   : > { %2412 = vst [vmem:[%s3092_s17 + $0x710] sm:$0xff] %v1900_v27  ;;  %v884_v40 = vmul.f32 %v372_v24, %v372_v24  ;;  %2413 = vst [vmem:[%s3092_s17 + $0x718] sm:$0xff] %v1901_v32  ;;  %v1905_v42 = vmul.f32 %v1393_v35, %v369_v9  ;;  %v885_v43 = vmul.f32 %v373_v29, %v373_v29  ;;  %v385_v9 = vld [vmem:[%s3069_s30 + $0x7b8] sm:$0xff] }
 0x102   : > { %2414 = vst [vmem:[%s3092_s17 + $0x720] sm:$0xff] %v1902_v33  ;;  %2415 = vst [vmem:[%s3092_s17 + $0x728] sm:$0xff] %v1903_v34  ;;  %v886_v44 = vmul.f32 %v374_v30, %v374_v30  ;;  %v887_v45 = vmul.f32 %v375_v31, %v375_v31  ;;  %v1394_v46 = vmul.f32 %v882_v38, %v882_v38 }
 0x103   : > { %2416 = vst [vmem:[%s3092_s17 + $0x730] sm:$0xff] %v1904_v37  ;;  %v1395_v47 = vmul.f32 %v883_v39, %v883_v39  ;;  %v1396_v48 = vmul.f32 %v884_v40, %v884_v40  ;;  %v888_v49 = vmul.f32 %v376_v36, %v376_v36  ;;  %2417 = vst [vmem:[%s3092_s17 + $0x738] sm:$0xff] %v1905_v42 }
 0x104   : > { %v1397_v50 = vmul.f32 %v885_v43, %v885_v43  ;;  %v1398_v51 = vmul.f32 %v886_v44, %v886_v44  ;;  %v1399_v52 = vmul.f32 %v887_v45, %v887_v45  ;;  %v889_v53 = vmul.f32 %v377_v41, %v377_v41 }
 0x105   : > { %v1906_v57 = vmul.f32 %v1394_v46, %v370_v22  ;;  %v1907_v58 = vmul.f32 %v1395_v47, %v371_v23  ;;  %v1908_v59 = vmul.f32 %v1396_v48, %v372_v24  ;;  %v1400_v60 = vmul.f32 %v888_v49, %v888_v49  ;;  %v386_v22 = vld [vmem:[%s3069_s30 + $0x7c0] sm:$0xff]  ;;  %v387_v23 = vld [vmem:[%s3069_s30 + $0x7c8] sm:$0xff]  ;;  %v388_v24 = vld [vmem:[%s3069_s30 + $0x7d0] sm:$0xff] }
 0x106   : > { %v1909_v0 = vmul.f32 %v1397_v50, %v373_v29  ;;  %v1910_v1 = vmul.f32 %v1398_v51, %v374_v30  ;;  %v1911_v2 = vmul.f32 %v1399_v52, %v375_v31  ;;  %v1401_v3 = vmul.f32 %v889_v53, %v889_v53  ;;  %v389_v29 = vld [vmem:[%s3069_s30 + $0x7d8] sm:$0xff]  ;;  %v390_v30 = vld [vmem:[%s3069_s30 + $0x7e0] sm:$0xff]  ;;  %v391_v31 = vld [vmem:[%s3069_s30 + $0x7e8] sm:$0xff] }
 0x107   : > { %2418 = vst [vmem:[%s3092_s17 + $0x740] sm:$0xff] %v1906_v57  ;;  %2419 = vst [vmem:[%s3092_s17 + $0x748] sm:$0xff] %v1907_v58  ;;  %v1912_v5 = vmul.f32 %v1400_v60, %v376_v36  ;;  %v890_v6 = vmul.f32 %v378_v54, %v378_v54  ;;  %v891_v7 = vmul.f32 %v379_v55, %v379_v55  ;;  %v392_v36 = vld [vmem:[%s3069_s30 + $0x7f0] sm:$0xff] }
 0x108   : > { %2420 = vst [vmem:[%s3092_s17 + $0x750] sm:$0xff] %v1908_v59  ;;  %v892_v8 = vmul.f32 %v380_v56, %v380_v56  ;;  %2421 = vst [vmem:[%s3092_s17 + $0x758] sm:$0xff] %v1909_v0  ;;  %v1913_v10 = vmul.f32 %v1401_v3, %v377_v41  ;;  %v893_v11 = vmul.f32 %v381_v61, %v381_v61  ;;  %v393_v41 = vld [vmem:[%s3069_s30 + $0x7f8] sm:$0xff] }
 0x109   : > { %2422 = vst [vmem:[%s3092_s17 + $0x760] sm:$0xff] %v1910_v1  ;;  %2423 = vst [vmem:[%s3092_s17 + $0x768] sm:$0xff] %v1911_v2  ;;  %v894_v12 = vmul.f32 %v382_v62, %v382_v62  ;;  %v895_v13 = vmul.f32 %v383_v63, %v383_v63  ;;  %v1402_v14 = vmul.f32 %v890_v6, %v890_v6 }
 0x10a   : > { %2424 = vst [vmem:[%s3092_s17 + $0x770] sm:$0xff] %v1912_v5  ;;  %v1403_v15 = vmul.f32 %v891_v7, %v891_v7  ;;  %v1404_v16 = vmul.f32 %v892_v8, %v892_v8  ;;  %v896_v17 = vmul.f32 %v384_v4, %v384_v4  ;;  %2425 = vst [vmem:[%s3092_s17 + $0x778] sm:$0xff] %v1913_v10 }
 0x10b   : > { %v1405_v18 = vmul.f32 %v893_v11, %v893_v11  ;;  %v1406_v19 = vmul.f32 %v894_v12, %v894_v12  ;;  %v1407_v20 = vmul.f32 %v895_v13, %v895_v13  ;;  %v897_v21 = vmul.f32 %v385_v9, %v385_v9 }
 0x10c   : > { %v1914_v25 = vmul.f32 %v1402_v14, %v378_v54  ;;  %v1915_v26 = vmul.f32 %v1403_v15, %v379_v55  ;;  %v1916_v27 = vmul.f32 %v1404_v16, %v380_v56  ;;  %v1408_v28 = vmul.f32 %v896_v17, %v896_v17  ;;  %v394_v54 = vld [vmem:[%s3069_s30 + $0x800] sm:$0xff]  ;;  %v395_v55 = vld [vmem:[%s3069_s30 + $0x808] sm:$0xff]  ;;  %v396_v56 = vld [vmem:[%s3069_s30 + $0x810] sm:$0xff] }
 0x10d   : > { %v1917_v32 = vmul.f32 %v1405_v18, %v381_v61  ;;  %v1918_v33 = vmul.f32 %v1406_v19, %v382_v62  ;;  %v1919_v34 = vmul.f32 %v1407_v20, %v383_v63  ;;  %v1409_v35 = vmul.f32 %v897_v21, %v897_v21  ;;  %v397_v61 = vld [vmem:[%s3069_s30 + $0x818] sm:$0xff]  ;;  %v398_v62 = vld [vmem:[%s3069_s30 + $0x820] sm:$0xff]  ;;  %v399_v63 = vld [vmem:[%s3069_s30 + $0x828] sm:$0xff] }
 0x10e   : > { %2426 = vst [vmem:[%s3092_s17 + $0x780] sm:$0xff] %v1914_v25  ;;  %2427 = vst [vmem:[%s3092_s17 + $0x788] sm:$0xff] %v1915_v26  ;;  %v1920_v37 = vmul.f32 %v1408_v28, %v384_v4  ;;  %v898_v38 = vmul.f32 %v386_v22, %v386_v22  ;;  %v899_v39 = vmul.f32 %v387_v23, %v387_v23  ;;  %v400_v4 = vld [vmem:[%s3069_s30 + $0x830] sm:$0xff] }
 0x10f   : > { %2428 = vst [vmem:[%s3092_s17 + $0x790] sm:$0xff] %v1916_v27  ;;  %v900_v40 = vmul.f32 %v388_v24, %v388_v24  ;;  %2429 = vst [vmem:[%s3092_s17 + $0x798] sm:$0xff] %v1917_v32  ;;  %v1921_v42 = vmul.f32 %v1409_v35, %v385_v9  ;;  %v901_v43 = vmul.f32 %v389_v29, %v389_v29  ;;  %v401_v9 = vld [vmem:[%s3069_s30 + $0x838] sm:$0xff] }
 0x110   : > { %2430 = vst [vmem:[%s3092_s17 + $0x7a0] sm:$0xff] %v1918_v33  ;;  %2431 = vst [vmem:[%s3092_s17 + $0x7a8] sm:$0xff] %v1919_v34  ;;  %v902_v44 = vmul.f32 %v390_v30, %v390_v30  ;;  %v903_v45 = vmul.f32 %v391_v31, %v391_v31  ;;  %v1410_v46 = vmul.f32 %v898_v38, %v898_v38 }
 0x111   : > { %2432 = vst [vmem:[%s3092_s17 + $0x7b0] sm:$0xff] %v1920_v37  ;;  %v1411_v47 = vmul.f32 %v899_v39, %v899_v39  ;;  %v1412_v48 = vmul.f32 %v900_v40, %v900_v40  ;;  %v904_v49 = vmul.f32 %v392_v36, %v392_v36  ;;  %2433 = vst [vmem:[%s3092_s17 + $0x7b8] sm:$0xff] %v1921_v42 }
 0x112   : > { %v1413_v50 = vmul.f32 %v901_v43, %v901_v43  ;;  %v1414_v51 = vmul.f32 %v902_v44, %v902_v44  ;;  %v1415_v52 = vmul.f32 %v903_v45, %v903_v45  ;;  %v905_v53 = vmul.f32 %v393_v41, %v393_v41 }
 0x113   : > { %v1922_v57 = vmul.f32 %v1410_v46, %v386_v22  ;;  %v1923_v58 = vmul.f32 %v1411_v47, %v387_v23  ;;  %v1924_v59 = vmul.f32 %v1412_v48, %v388_v24  ;;  %v1416_v60 = vmul.f32 %v904_v49, %v904_v49  ;;  %v402_v22 = vld [vmem:[%s3069_s30 + $0x840] sm:$0xff]  ;;  %v403_v23 = vld [vmem:[%s3069_s30 + $0x848] sm:$0xff]  ;;  %v404_v24 = vld [vmem:[%s3069_s30 + $0x850] sm:$0xff] }
 0x114   : > { %v1925_v0 = vmul.f32 %v1413_v50, %v389_v29  ;;  %v1926_v1 = vmul.f32 %v1414_v51, %v390_v30  ;;  %v1927_v2 = vmul.f32 %v1415_v52, %v391_v31  ;;  %v1417_v3 = vmul.f32 %v905_v53, %v905_v53  ;;  %v405_v29 = vld [vmem:[%s3069_s30 + $0x858] sm:$0xff]  ;;  %v406_v30 = vld [vmem:[%s3069_s30 + $0x860] sm:$0xff]  ;;  %v407_v31 = vld [vmem:[%s3069_s30 + $0x868] sm:$0xff] }
 0x115   : > { %2434 = vst [vmem:[%s3092_s17 + $0x7c0] sm:$0xff] %v1922_v57  ;;  %2435 = vst [vmem:[%s3092_s17 + $0x7c8] sm:$0xff] %v1923_v58  ;;  %v1928_v5 = vmul.f32 %v1416_v60, %v392_v36  ;;  %v906_v6 = vmul.f32 %v394_v54, %v394_v54  ;;  %v907_v7 = vmul.f32 %v395_v55, %v395_v55  ;;  %v408_v36 = vld [vmem:[%s3069_s30 + $0x870] sm:$0xff] }
 0x116   : > { %2436 = vst [vmem:[%s3092_s17 + $0x7d0] sm:$0xff] %v1924_v59  ;;  %v908_v8 = vmul.f32 %v396_v56, %v396_v56  ;;  %2437 = vst [vmem:[%s3092_s17 + $0x7d8] sm:$0xff] %v1925_v0  ;;  %v1929_v10 = vmul.f32 %v1417_v3, %v393_v41  ;;  %v909_v11 = vmul.f32 %v397_v61, %v397_v61  ;;  %v409_v41 = vld [vmem:[%s3069_s30 + $0x878] sm:$0xff] }
 0x117   : > { %2438 = vst [vmem:[%s3092_s17 + $0x7e0] sm:$0xff] %v1926_v1  ;;  %2439 = vst [vmem:[%s3092_s17 + $0x7e8] sm:$0xff] %v1927_v2  ;;  %v910_v12 = vmul.f32 %v398_v62, %v398_v62  ;;  %v911_v13 = vmul.f32 %v399_v63, %v399_v63  ;;  %v1418_v14 = vmul.f32 %v906_v6, %v906_v6 }
 0x118   : > { %2440 = vst [vmem:[%s3092_s17 + $0x7f0] sm:$0xff] %v1928_v5  ;;  %v1419_v15 = vmul.f32 %v907_v7, %v907_v7  ;;  %v1420_v16 = vmul.f32 %v908_v8, %v908_v8  ;;  %v912_v17 = vmul.f32 %v400_v4, %v400_v4  ;;  %2441 = vst [vmem:[%s3092_s17 + $0x7f8] sm:$0xff] %v1929_v10 }
 0x119   : > { %v1421_v18 = vmul.f32 %v909_v11, %v909_v11  ;;  %v1422_v19 = vmul.f32 %v910_v12, %v910_v12  ;;  %v1423_v20 = vmul.f32 %v911_v13, %v911_v13  ;;  %v913_v21 = vmul.f32 %v401_v9, %v401_v9 }
 0x11a   : > { %v1930_v25 = vmul.f32 %v1418_v14, %v394_v54  ;;  %v1931_v26 = vmul.f32 %v1419_v15, %v395_v55  ;;  %v1932_v27 = vmul.f32 %v1420_v16, %v396_v56  ;;  %v1424_v28 = vmul.f32 %v912_v17, %v912_v17  ;;  %v410_v54 = vld [vmem:[%s3069_s30 + $0x880] sm:$0xff]  ;;  %v411_v55 = vld [vmem:[%s3069_s30 + $0x888] sm:$0xff]  ;;  %v412_v56 = vld [vmem:[%s3069_s30 + $0x890] sm:$0xff] }
 0x11b   : > { %v1933_v32 = vmul.f32 %v1421_v18, %v397_v61  ;;  %v1934_v33 = vmul.f32 %v1422_v19, %v398_v62  ;;  %v1935_v34 = vmul.f32 %v1423_v20, %v399_v63  ;;  %v1425_v35 = vmul.f32 %v913_v21, %v913_v21  ;;  %v413_v61 = vld [vmem:[%s3069_s30 + $0x898] sm:$0xff]  ;;  %v414_v62 = vld [vmem:[%s3069_s30 + $0x8a0] sm:$0xff]  ;;  %v415_v63 = vld [vmem:[%s3069_s30 + $0x8a8] sm:$0xff] }
 0x11c   : > { %2442 = vst [vmem:[%s3092_s17 + $0x800] sm:$0xff] %v1930_v25  ;;  %2443 = vst [vmem:[%s3092_s17 + $0x808] sm:$0xff] %v1931_v26  ;;  %v1936_v37 = vmul.f32 %v1424_v28, %v400_v4  ;;  %v914_v38 = vmul.f32 %v402_v22, %v402_v22  ;;  %v915_v39 = vmul.f32 %v403_v23, %v403_v23  ;;  %v416_v4 = vld [vmem:[%s3069_s30 + $0x8b0] sm:$0xff] }
 0x11d   : > { %2444 = vst [vmem:[%s3092_s17 + $0x810] sm:$0xff] %v1932_v27  ;;  %v916_v40 = vmul.f32 %v404_v24, %v404_v24  ;;  %2445 = vst [vmem:[%s3092_s17 + $0x818] sm:$0xff] %v1933_v32  ;;  %v1937_v42 = vmul.f32 %v1425_v35, %v401_v9  ;;  %v917_v43 = vmul.f32 %v405_v29, %v405_v29  ;;  %v417_v9 = vld [vmem:[%s3069_s30 + $0x8b8] sm:$0xff] }
 0x11e   : > { %2446 = vst [vmem:[%s3092_s17 + $0x820] sm:$0xff] %v1934_v33  ;;  %2447 = vst [vmem:[%s3092_s17 + $0x828] sm:$0xff] %v1935_v34  ;;  %v918_v44 = vmul.f32 %v406_v30, %v406_v30  ;;  %v919_v45 = vmul.f32 %v407_v31, %v407_v31  ;;  %v1426_v46 = vmul.f32 %v914_v38, %v914_v38 }
 0x11f   : > { %2448 = vst [vmem:[%s3092_s17 + $0x830] sm:$0xff] %v1936_v37  ;;  %v1427_v47 = vmul.f32 %v915_v39, %v915_v39  ;;  %v1428_v48 = vmul.f32 %v916_v40, %v916_v40  ;;  %v920_v49 = vmul.f32 %v408_v36, %v408_v36  ;;  %2449 = vst [vmem:[%s3092_s17 + $0x838] sm:$0xff] %v1937_v42 }
 0x120   : > { %v1429_v50 = vmul.f32 %v917_v43, %v917_v43  ;;  %v1430_v51 = vmul.f32 %v918_v44, %v918_v44  ;;  %v1431_v52 = vmul.f32 %v919_v45, %v919_v45  ;;  %v921_v53 = vmul.f32 %v409_v41, %v409_v41 }
 0x121   : > { %v1938_v57 = vmul.f32 %v1426_v46, %v402_v22  ;;  %v1939_v58 = vmul.f32 %v1427_v47, %v403_v23  ;;  %v1940_v59 = vmul.f32 %v1428_v48, %v404_v24  ;;  %v1432_v60 = vmul.f32 %v920_v49, %v920_v49  ;;  %v418_v22 = vld [vmem:[%s3069_s30 + $0x8c0] sm:$0xff]  ;;  %v419_v23 = vld [vmem:[%s3069_s30 + $0x8c8] sm:$0xff]  ;;  %v420_v24 = vld [vmem:[%s3069_s30 + $0x8d0] sm:$0xff] }
 0x122   : > { %v1941_v0 = vmul.f32 %v1429_v50, %v405_v29  ;;  %v1942_v1 = vmul.f32 %v1430_v51, %v406_v30  ;;  %v1943_v2 = vmul.f32 %v1431_v52, %v407_v31  ;;  %v1433_v3 = vmul.f32 %v921_v53, %v921_v53  ;;  %v421_v29 = vld [vmem:[%s3069_s30 + $0x8d8] sm:$0xff]  ;;  %v422_v30 = vld [vmem:[%s3069_s30 + $0x8e0] sm:$0xff]  ;;  %v423_v31 = vld [vmem:[%s3069_s30 + $0x8e8] sm:$0xff] }
 0x123   : > { %2450 = vst [vmem:[%s3092_s17 + $0x840] sm:$0xff] %v1938_v57  ;;  %2451 = vst [vmem:[%s3092_s17 + $0x848] sm:$0xff] %v1939_v58  ;;  %v1944_v5 = vmul.f32 %v1432_v60, %v408_v36  ;;  %v922_v6 = vmul.f32 %v410_v54, %v410_v54  ;;  %v923_v7 = vmul.f32 %v411_v55, %v411_v55  ;;  %v424_v36 = vld [vmem:[%s3069_s30 + $0x8f0] sm:$0xff] }
 0x124   : > { %2452 = vst [vmem:[%s3092_s17 + $0x850] sm:$0xff] %v1940_v59  ;;  %v924_v8 = vmul.f32 %v412_v56, %v412_v56  ;;  %2453 = vst [vmem:[%s3092_s17 + $0x858] sm:$0xff] %v1941_v0  ;;  %v1945_v10 = vmul.f32 %v1433_v3, %v409_v41  ;;  %v925_v11 = vmul.f32 %v413_v61, %v413_v61  ;;  %v425_v41 = vld [vmem:[%s3069_s30 + $0x8f8] sm:$0xff] }
 0x125   : > { %2454 = vst [vmem:[%s3092_s17 + $0x860] sm:$0xff] %v1942_v1  ;;  %2455 = vst [vmem:[%s3092_s17 + $0x868] sm:$0xff] %v1943_v2  ;;  %v926_v12 = vmul.f32 %v414_v62, %v414_v62  ;;  %v927_v13 = vmul.f32 %v415_v63, %v415_v63  ;;  %v1434_v14 = vmul.f32 %v922_v6, %v922_v6 }
 0x126   : > { %2456 = vst [vmem:[%s3092_s17 + $0x870] sm:$0xff] %v1944_v5  ;;  %v1435_v15 = vmul.f32 %v923_v7, %v923_v7  ;;  %v1436_v16 = vmul.f32 %v924_v8, %v924_v8  ;;  %v928_v17 = vmul.f32 %v416_v4, %v416_v4  ;;  %2457 = vst [vmem:[%s3092_s17 + $0x878] sm:$0xff] %v1945_v10 }
 0x127   : > { %v1437_v18 = vmul.f32 %v925_v11, %v925_v11  ;;  %v1438_v19 = vmul.f32 %v926_v12, %v926_v12  ;;  %v1439_v20 = vmul.f32 %v927_v13, %v927_v13  ;;  %v929_v21 = vmul.f32 %v417_v9, %v417_v9 }
 0x128   : > { %v1946_v25 = vmul.f32 %v1434_v14, %v410_v54  ;;  %v1947_v26 = vmul.f32 %v1435_v15, %v411_v55  ;;  %v1948_v27 = vmul.f32 %v1436_v16, %v412_v56  ;;  %v1440_v28 = vmul.f32 %v928_v17, %v928_v17  ;;  %v426_v54 = vld [vmem:[%s3069_s30 + $0x900] sm:$0xff]  ;;  %v427_v55 = vld [vmem:[%s3069_s30 + $0x908] sm:$0xff]  ;;  %v428_v56 = vld [vmem:[%s3069_s30 + $0x910] sm:$0xff] }
 0x129   : > { %v1949_v32 = vmul.f32 %v1437_v18, %v413_v61  ;;  %v1950_v33 = vmul.f32 %v1438_v19, %v414_v62  ;;  %v1951_v34 = vmul.f32 %v1439_v20, %v415_v63  ;;  %v1441_v35 = vmul.f32 %v929_v21, %v929_v21  ;;  %v429_v61 = vld [vmem:[%s3069_s30 + $0x918] sm:$0xff]  ;;  %v430_v62 = vld [vmem:[%s3069_s30 + $0x920] sm:$0xff]  ;;  %v431_v63 = vld [vmem:[%s3069_s30 + $0x928] sm:$0xff] }
 0x12a   : > { %2458 = vst [vmem:[%s3092_s17 + $0x880] sm:$0xff] %v1946_v25  ;;  %2459 = vst [vmem:[%s3092_s17 + $0x888] sm:$0xff] %v1947_v26  ;;  %v1952_v37 = vmul.f32 %v1440_v28, %v416_v4  ;;  %v930_v38 = vmul.f32 %v418_v22, %v418_v22  ;;  %v931_v39 = vmul.f32 %v419_v23, %v419_v23  ;;  %v432_v4 = vld [vmem:[%s3069_s30 + $0x930] sm:$0xff] }
 0x12b   : > { %2460 = vst [vmem:[%s3092_s17 + $0x890] sm:$0xff] %v1948_v27  ;;  %v932_v40 = vmul.f32 %v420_v24, %v420_v24  ;;  %2461 = vst [vmem:[%s3092_s17 + $0x898] sm:$0xff] %v1949_v32  ;;  %v1953_v42 = vmul.f32 %v1441_v35, %v417_v9  ;;  %v933_v43 = vmul.f32 %v421_v29, %v421_v29  ;;  %v433_v9 = vld [vmem:[%s3069_s30 + $0x938] sm:$0xff] }
 0x12c   : > { %2462 = vst [vmem:[%s3092_s17 + $0x8a0] sm:$0xff] %v1950_v33  ;;  %2463 = vst [vmem:[%s3092_s17 + $0x8a8] sm:$0xff] %v1951_v34  ;;  %v934_v44 = vmul.f32 %v422_v30, %v422_v30  ;;  %v935_v45 = vmul.f32 %v423_v31, %v423_v31  ;;  %v1442_v46 = vmul.f32 %v930_v38, %v930_v38 }
 0x12d   : > { %2464 = vst [vmem:[%s3092_s17 + $0x8b0] sm:$0xff] %v1952_v37  ;;  %v1443_v47 = vmul.f32 %v931_v39, %v931_v39  ;;  %v1444_v48 = vmul.f32 %v932_v40, %v932_v40  ;;  %v936_v49 = vmul.f32 %v424_v36, %v424_v36  ;;  %2465 = vst [vmem:[%s3092_s17 + $0x8b8] sm:$0xff] %v1953_v42 }
 0x12e   : > { %v1445_v50 = vmul.f32 %v933_v43, %v933_v43  ;;  %v1446_v51 = vmul.f32 %v934_v44, %v934_v44  ;;  %v1447_v52 = vmul.f32 %v935_v45, %v935_v45  ;;  %v937_v53 = vmul.f32 %v425_v41, %v425_v41 }
 0x12f   : > { %v1954_v57 = vmul.f32 %v1442_v46, %v418_v22  ;;  %v1955_v58 = vmul.f32 %v1443_v47, %v419_v23  ;;  %v1956_v59 = vmul.f32 %v1444_v48, %v420_v24  ;;  %v1448_v60 = vmul.f32 %v936_v49, %v936_v49  ;;  %v434_v22 = vld [vmem:[%s3069_s30 + $0x940] sm:$0xff]  ;;  %v435_v23 = vld [vmem:[%s3069_s30 + $0x948] sm:$0xff]  ;;  %v436_v24 = vld [vmem:[%s3069_s30 + $0x950] sm:$0xff] }
 0x130   : > { %v1957_v0 = vmul.f32 %v1445_v50, %v421_v29  ;;  %v1958_v1 = vmul.f32 %v1446_v51, %v422_v30  ;;  %v1959_v2 = vmul.f32 %v1447_v52, %v423_v31  ;;  %v1449_v3 = vmul.f32 %v937_v53, %v937_v53  ;;  %v437_v29 = vld [vmem:[%s3069_s30 + $0x958] sm:$0xff]  ;;  %v438_v30 = vld [vmem:[%s3069_s30 + $0x960] sm:$0xff]  ;;  %v439_v31 = vld [vmem:[%s3069_s30 + $0x968] sm:$0xff] }
 0x131   : > { %2466 = vst [vmem:[%s3092_s17 + $0x8c0] sm:$0xff] %v1954_v57  ;;  %2467 = vst [vmem:[%s3092_s17 + $0x8c8] sm:$0xff] %v1955_v58  ;;  %v1960_v5 = vmul.f32 %v1448_v60, %v424_v36  ;;  %v938_v6 = vmul.f32 %v426_v54, %v426_v54  ;;  %v939_v7 = vmul.f32 %v427_v55, %v427_v55  ;;  %v440_v36 = vld [vmem:[%s3069_s30 + $0x970] sm:$0xff] }
 0x132   : > { %2468 = vst [vmem:[%s3092_s17 + $0x8d0] sm:$0xff] %v1956_v59  ;;  %v940_v8 = vmul.f32 %v428_v56, %v428_v56  ;;  %2469 = vst [vmem:[%s3092_s17 + $0x8d8] sm:$0xff] %v1957_v0  ;;  %v1961_v10 = vmul.f32 %v1449_v3, %v425_v41  ;;  %v941_v11 = vmul.f32 %v429_v61, %v429_v61  ;;  %v441_v41 = vld [vmem:[%s3069_s30 + $0x978] sm:$0xff] }
 0x133   : > { %2470 = vst [vmem:[%s3092_s17 + $0x8e0] sm:$0xff] %v1958_v1  ;;  %2471 = vst [vmem:[%s3092_s17 + $0x8e8] sm:$0xff] %v1959_v2  ;;  %v942_v12 = vmul.f32 %v430_v62, %v430_v62  ;;  %v943_v13 = vmul.f32 %v431_v63, %v431_v63  ;;  %v1450_v14 = vmul.f32 %v938_v6, %v938_v6 }
 0x134   : > { %2472 = vst [vmem:[%s3092_s17 + $0x8f0] sm:$0xff] %v1960_v5  ;;  %v1451_v15 = vmul.f32 %v939_v7, %v939_v7  ;;  %v1452_v16 = vmul.f32 %v940_v8, %v940_v8  ;;  %v944_v17 = vmul.f32 %v432_v4, %v432_v4  ;;  %2473 = vst [vmem:[%s3092_s17 + $0x8f8] sm:$0xff] %v1961_v10 }
 0x135   : > { %v1453_v18 = vmul.f32 %v941_v11, %v941_v11  ;;  %v1454_v19 = vmul.f32 %v942_v12, %v942_v12  ;;  %v1455_v20 = vmul.f32 %v943_v13, %v943_v13  ;;  %v945_v21 = vmul.f32 %v433_v9, %v433_v9 }
 0x136   : > { %v1962_v25 = vmul.f32 %v1450_v14, %v426_v54  ;;  %v1963_v26 = vmul.f32 %v1451_v15, %v427_v55  ;;  %v1964_v27 = vmul.f32 %v1452_v16, %v428_v56  ;;  %v1456_v28 = vmul.f32 %v944_v17, %v944_v17  ;;  %v442_v54 = vld [vmem:[%s3069_s30 + $0x980] sm:$0xff]  ;;  %v443_v55 = vld [vmem:[%s3069_s30 + $0x988] sm:$0xff]  ;;  %v444_v56 = vld [vmem:[%s3069_s30 + $0x990] sm:$0xff] }
 0x137   : > { %v1965_v32 = vmul.f32 %v1453_v18, %v429_v61  ;;  %v1966_v33 = vmul.f32 %v1454_v19, %v430_v62  ;;  %v1967_v34 = vmul.f32 %v1455_v20, %v431_v63  ;;  %v1457_v35 = vmul.f32 %v945_v21, %v945_v21  ;;  %v445_v61 = vld [vmem:[%s3069_s30 + $0x998] sm:$0xff]  ;;  %v446_v62 = vld [vmem:[%s3069_s30 + $0x9a0] sm:$0xff]  ;;  %v447_v63 = vld [vmem:[%s3069_s30 + $0x9a8] sm:$0xff] }
 0x138   : > { %2474 = vst [vmem:[%s3092_s17 + $0x900] sm:$0xff] %v1962_v25  ;;  %2475 = vst [vmem:[%s3092_s17 + $0x908] sm:$0xff] %v1963_v26  ;;  %v1968_v37 = vmul.f32 %v1456_v28, %v432_v4  ;;  %v946_v38 = vmul.f32 %v434_v22, %v434_v22  ;;  %v947_v39 = vmul.f32 %v435_v23, %v435_v23  ;;  %v448_v4 = vld [vmem:[%s3069_s30 + $0x9b0] sm:$0xff] }
 0x139   : > { %2476 = vst [vmem:[%s3092_s17 + $0x910] sm:$0xff] %v1964_v27  ;;  %v948_v40 = vmul.f32 %v436_v24, %v436_v24  ;;  %2477 = vst [vmem:[%s3092_s17 + $0x918] sm:$0xff] %v1965_v32  ;;  %v1969_v42 = vmul.f32 %v1457_v35, %v433_v9  ;;  %v949_v43 = vmul.f32 %v437_v29, %v437_v29  ;;  %v449_v9 = vld [vmem:[%s3069_s30 + $0x9b8] sm:$0xff] }
 0x13a   : > { %2478 = vst [vmem:[%s3092_s17 + $0x920] sm:$0xff] %v1966_v33  ;;  %2479 = vst [vmem:[%s3092_s17 + $0x928] sm:$0xff] %v1967_v34  ;;  %v950_v44 = vmul.f32 %v438_v30, %v438_v30  ;;  %v951_v45 = vmul.f32 %v439_v31, %v439_v31  ;;  %v1458_v46 = vmul.f32 %v946_v38, %v946_v38 }
 0x13b   : > { %2480 = vst [vmem:[%s3092_s17 + $0x930] sm:$0xff] %v1968_v37  ;;  %v1459_v47 = vmul.f32 %v947_v39, %v947_v39  ;;  %v1460_v48 = vmul.f32 %v948_v40, %v948_v40  ;;  %v952_v49 = vmul.f32 %v440_v36, %v440_v36  ;;  %2481 = vst [vmem:[%s3092_s17 + $0x938] sm:$0xff] %v1969_v42 }
 0x13c   : > { %v1461_v50 = vmul.f32 %v949_v43, %v949_v43  ;;  %v1462_v51 = vmul.f32 %v950_v44, %v950_v44  ;;  %v1463_v52 = vmul.f32 %v951_v45, %v951_v45  ;;  %v953_v53 = vmul.f32 %v441_v41, %v441_v41 }
 0x13d   : > { %v1970_v57 = vmul.f32 %v1458_v46, %v434_v22  ;;  %v1971_v58 = vmul.f32 %v1459_v47, %v435_v23  ;;  %v1972_v59 = vmul.f32 %v1460_v48, %v436_v24  ;;  %v1464_v60 = vmul.f32 %v952_v49, %v952_v49  ;;  %v450_v22 = vld [vmem:[%s3069_s30 + $0x9c0] sm:$0xff]  ;;  %v451_v23 = vld [vmem:[%s3069_s30 + $0x9c8] sm:$0xff]  ;;  %v452_v24 = vld [vmem:[%s3069_s30 + $0x9d0] sm:$0xff] }
 0x13e   : > { %v1973_v0 = vmul.f32 %v1461_v50, %v437_v29  ;;  %v1974_v1 = vmul.f32 %v1462_v51, %v438_v30  ;;  %v1975_v2 = vmul.f32 %v1463_v52, %v439_v31  ;;  %v1465_v3 = vmul.f32 %v953_v53, %v953_v53  ;;  %v453_v29 = vld [vmem:[%s3069_s30 + $0x9d8] sm:$0xff]  ;;  %v454_v30 = vld [vmem:[%s3069_s30 + $0x9e0] sm:$0xff]  ;;  %v455_v31 = vld [vmem:[%s3069_s30 + $0x9e8] sm:$0xff] }
 0x13f   : > { %2482 = vst [vmem:[%s3092_s17 + $0x940] sm:$0xff] %v1970_v57  ;;  %2483 = vst [vmem:[%s3092_s17 + $0x948] sm:$0xff] %v1971_v58  ;;  %v1976_v5 = vmul.f32 %v1464_v60, %v440_v36  ;;  %v954_v6 = vmul.f32 %v442_v54, %v442_v54  ;;  %v955_v7 = vmul.f32 %v443_v55, %v443_v55  ;;  %v456_v36 = vld [vmem:[%s3069_s30 + $0x9f0] sm:$0xff] }
 0x140   : > { %2484 = vst [vmem:[%s3092_s17 + $0x950] sm:$0xff] %v1972_v59  ;;  %v956_v8 = vmul.f32 %v444_v56, %v444_v56  ;;  %2485 = vst [vmem:[%s3092_s17 + $0x958] sm:$0xff] %v1973_v0  ;;  %v1977_v10 = vmul.f32 %v1465_v3, %v441_v41  ;;  %v957_v11 = vmul.f32 %v445_v61, %v445_v61  ;;  %v457_v41 = vld [vmem:[%s3069_s30 + $0x9f8] sm:$0xff] }
 0x141   : > { %2486 = vst [vmem:[%s3092_s17 + $0x960] sm:$0xff] %v1974_v1  ;;  %2487 = vst [vmem:[%s3092_s17 + $0x968] sm:$0xff] %v1975_v2  ;;  %v958_v12 = vmul.f32 %v446_v62, %v446_v62  ;;  %v959_v13 = vmul.f32 %v447_v63, %v447_v63  ;;  %v1466_v14 = vmul.f32 %v954_v6, %v954_v6 }
 0x142   : > { %2488 = vst [vmem:[%s3092_s17 + $0x970] sm:$0xff] %v1976_v5  ;;  %v1467_v15 = vmul.f32 %v955_v7, %v955_v7  ;;  %v1468_v16 = vmul.f32 %v956_v8, %v956_v8  ;;  %v960_v17 = vmul.f32 %v448_v4, %v448_v4  ;;  %2489 = vst [vmem:[%s3092_s17 + $0x978] sm:$0xff] %v1977_v10 }
 0x143   : > { %v1469_v18 = vmul.f32 %v957_v11, %v957_v11  ;;  %v1470_v19 = vmul.f32 %v958_v12, %v958_v12  ;;  %v1471_v20 = vmul.f32 %v959_v13, %v959_v13  ;;  %v961_v21 = vmul.f32 %v449_v9, %v449_v9 }
 0x144   : > { %v1978_v25 = vmul.f32 %v1466_v14, %v442_v54  ;;  %v1979_v26 = vmul.f32 %v1467_v15, %v443_v55  ;;  %v1980_v27 = vmul.f32 %v1468_v16, %v444_v56  ;;  %v1472_v28 = vmul.f32 %v960_v17, %v960_v17  ;;  %v458_v54 = vld [vmem:[%s3069_s30 + $0xa00] sm:$0xff]  ;;  %v459_v55 = vld [vmem:[%s3069_s30 + $0xa08] sm:$0xff]  ;;  %v460_v56 = vld [vmem:[%s3069_s30 + $0xa10] sm:$0xff] }
 0x145   : > { %v1981_v32 = vmul.f32 %v1469_v18, %v445_v61  ;;  %v1982_v33 = vmul.f32 %v1470_v19, %v446_v62  ;;  %v1983_v34 = vmul.f32 %v1471_v20, %v447_v63  ;;  %v1473_v35 = vmul.f32 %v961_v21, %v961_v21  ;;  %v461_v61 = vld [vmem:[%s3069_s30 + $0xa18] sm:$0xff]  ;;  %v462_v62 = vld [vmem:[%s3069_s30 + $0xa20] sm:$0xff]  ;;  %v463_v63 = vld [vmem:[%s3069_s30 + $0xa28] sm:$0xff] }
 0x146   : > { %2490 = vst [vmem:[%s3092_s17 + $0x980] sm:$0xff] %v1978_v25  ;;  %2491 = vst [vmem:[%s3092_s17 + $0x988] sm:$0xff] %v1979_v26  ;;  %v1984_v37 = vmul.f32 %v1472_v28, %v448_v4  ;;  %v962_v38 = vmul.f32 %v450_v22, %v450_v22  ;;  %v963_v39 = vmul.f32 %v451_v23, %v451_v23  ;;  %v464_v4 = vld [vmem:[%s3069_s30 + $0xa30] sm:$0xff] }
 0x147   : > { %2492 = vst [vmem:[%s3092_s17 + $0x990] sm:$0xff] %v1980_v27  ;;  %v964_v40 = vmul.f32 %v452_v24, %v452_v24  ;;  %2493 = vst [vmem:[%s3092_s17 + $0x998] sm:$0xff] %v1981_v32  ;;  %v1985_v42 = vmul.f32 %v1473_v35, %v449_v9  ;;  %v965_v43 = vmul.f32 %v453_v29, %v453_v29  ;;  %v465_v9 = vld [vmem:[%s3069_s30 + $0xa38] sm:$0xff] }
 0x148   : > { %2494 = vst [vmem:[%s3092_s17 + $0x9a0] sm:$0xff] %v1982_v33  ;;  %2495 = vst [vmem:[%s3092_s17 + $0x9a8] sm:$0xff] %v1983_v34  ;;  %v966_v44 = vmul.f32 %v454_v30, %v454_v30  ;;  %v967_v45 = vmul.f32 %v455_v31, %v455_v31  ;;  %v1474_v46 = vmul.f32 %v962_v38, %v962_v38 }
 0x149   : > { %2496 = vst [vmem:[%s3092_s17 + $0x9b0] sm:$0xff] %v1984_v37  ;;  %v1475_v47 = vmul.f32 %v963_v39, %v963_v39  ;;  %v1476_v48 = vmul.f32 %v964_v40, %v964_v40  ;;  %v968_v49 = vmul.f32 %v456_v36, %v456_v36  ;;  %2497 = vst [vmem:[%s3092_s17 + $0x9b8] sm:$0xff] %v1985_v42 }
 0x14a   : > { %v1477_v50 = vmul.f32 %v965_v43, %v965_v43  ;;  %v1478_v51 = vmul.f32 %v966_v44, %v966_v44  ;;  %v1479_v52 = vmul.f32 %v967_v45, %v967_v45  ;;  %v969_v53 = vmul.f32 %v457_v41, %v457_v41 }
 0x14b   : > { %v1986_v57 = vmul.f32 %v1474_v46, %v450_v22  ;;  %v1987_v58 = vmul.f32 %v1475_v47, %v451_v23  ;;  %v1988_v59 = vmul.f32 %v1476_v48, %v452_v24  ;;  %v1480_v60 = vmul.f32 %v968_v49, %v968_v49  ;;  %v466_v22 = vld [vmem:[%s3069_s30 + $0xa40] sm:$0xff]  ;;  %v467_v23 = vld [vmem:[%s3069_s30 + $0xa48] sm:$0xff]  ;;  %v468_v24 = vld [vmem:[%s3069_s30 + $0xa50] sm:$0xff] }
 0x14c   : > { %v1989_v0 = vmul.f32 %v1477_v50, %v453_v29  ;;  %v1990_v1 = vmul.f32 %v1478_v51, %v454_v30  ;;  %v1991_v2 = vmul.f32 %v1479_v52, %v455_v31  ;;  %v1481_v3 = vmul.f32 %v969_v53, %v969_v53  ;;  %v469_v29 = vld [vmem:[%s3069_s30 + $0xa58] sm:$0xff]  ;;  %v470_v30 = vld [vmem:[%s3069_s30 + $0xa60] sm:$0xff]  ;;  %v471_v31 = vld [vmem:[%s3069_s30 + $0xa68] sm:$0xff] }
 0x14d   : > { %2498 = vst [vmem:[%s3092_s17 + $0x9c0] sm:$0xff] %v1986_v57  ;;  %2499 = vst [vmem:[%s3092_s17 + $0x9c8] sm:$0xff] %v1987_v58  ;;  %v1992_v5 = vmul.f32 %v1480_v60, %v456_v36  ;;  %v970_v6 = vmul.f32 %v458_v54, %v458_v54  ;;  %v971_v7 = vmul.f32 %v459_v55, %v459_v55  ;;  %v472_v36 = vld [vmem:[%s3069_s30 + $0xa70] sm:$0xff] }
 0x14e   : > { %2500 = vst [vmem:[%s3092_s17 + $0x9d0] sm:$0xff] %v1988_v59  ;;  %v972_v8 = vmul.f32 %v460_v56, %v460_v56  ;;  %2501 = vst [vmem:[%s3092_s17 + $0x9d8] sm:$0xff] %v1989_v0  ;;  %v1993_v10 = vmul.f32 %v1481_v3, %v457_v41  ;;  %v973_v11 = vmul.f32 %v461_v61, %v461_v61  ;;  %v473_v41 = vld [vmem:[%s3069_s30 + $0xa78] sm:$0xff] }
 0x14f   : > { %2502 = vst [vmem:[%s3092_s17 + $0x9e0] sm:$0xff] %v1990_v1  ;;  %2503 = vst [vmem:[%s3092_s17 + $0x9e8] sm:$0xff] %v1991_v2  ;;  %v974_v12 = vmul.f32 %v462_v62, %v462_v62  ;;  %v975_v13 = vmul.f32 %v463_v63, %v463_v63  ;;  %v1482_v14 = vmul.f32 %v970_v6, %v970_v6 }
 0x150   : > { %2504 = vst [vmem:[%s3092_s17 + $0x9f0] sm:$0xff] %v1992_v5  ;;  %v1483_v15 = vmul.f32 %v971_v7, %v971_v7  ;;  %v1484_v16 = vmul.f32 %v972_v8, %v972_v8  ;;  %v976_v17 = vmul.f32 %v464_v4, %v464_v4  ;;  %2505 = vst [vmem:[%s3092_s17 + $0x9f8] sm:$0xff] %v1993_v10 }
 0x151   : > { %v1485_v18 = vmul.f32 %v973_v11, %v973_v11  ;;  %v1486_v19 = vmul.f32 %v974_v12, %v974_v12  ;;  %v1487_v20 = vmul.f32 %v975_v13, %v975_v13  ;;  %v977_v21 = vmul.f32 %v465_v9, %v465_v9 }
 0x152   : > { %v1994_v25 = vmul.f32 %v1482_v14, %v458_v54  ;;  %v1995_v26 = vmul.f32 %v1483_v15, %v459_v55  ;;  %v1996_v27 = vmul.f32 %v1484_v16, %v460_v56  ;;  %v1488_v28 = vmul.f32 %v976_v17, %v976_v17  ;;  %v474_v54 = vld [vmem:[%s3069_s30 + $0xa80] sm:$0xff]  ;;  %v475_v55 = vld [vmem:[%s3069_s30 + $0xa88] sm:$0xff]  ;;  %v476_v56 = vld [vmem:[%s3069_s30 + $0xa90] sm:$0xff] }
 0x153   : > { %v1997_v32 = vmul.f32 %v1485_v18, %v461_v61  ;;  %v1998_v33 = vmul.f32 %v1486_v19, %v462_v62  ;;  %v1999_v34 = vmul.f32 %v1487_v20, %v463_v63  ;;  %v1489_v35 = vmul.f32 %v977_v21, %v977_v21  ;;  %v477_v61 = vld [vmem:[%s3069_s30 + $0xa98] sm:$0xff]  ;;  %v478_v62 = vld [vmem:[%s3069_s30 + $0xaa0] sm:$0xff]  ;;  %v479_v63 = vld [vmem:[%s3069_s30 + $0xaa8] sm:$0xff] }
 0x154   : > { %2506 = vst [vmem:[%s3092_s17 + $0xa00] sm:$0xff] %v1994_v25  ;;  %2507 = vst [vmem:[%s3092_s17 + $0xa08] sm:$0xff] %v1995_v26  ;;  %v2000_v37 = vmul.f32 %v1488_v28, %v464_v4  ;;  %v978_v38 = vmul.f32 %v466_v22, %v466_v22  ;;  %v979_v39 = vmul.f32 %v467_v23, %v467_v23  ;;  %v480_v4 = vld [vmem:[%s3069_s30 + $0xab0] sm:$0xff] }
 0x155   : > { %2508 = vst [vmem:[%s3092_s17 + $0xa10] sm:$0xff] %v1996_v27  ;;  %v980_v40 = vmul.f32 %v468_v24, %v468_v24  ;;  %2509 = vst [vmem:[%s3092_s17 + $0xa18] sm:$0xff] %v1997_v32  ;;  %v2001_v42 = vmul.f32 %v1489_v35, %v465_v9  ;;  %v981_v43 = vmul.f32 %v469_v29, %v469_v29  ;;  %v481_v9 = vld [vmem:[%s3069_s30 + $0xab8] sm:$0xff] }
 0x156   : > { %2510 = vst [vmem:[%s3092_s17 + $0xa20] sm:$0xff] %v1998_v33  ;;  %2511 = vst [vmem:[%s3092_s17 + $0xa28] sm:$0xff] %v1999_v34  ;;  %v982_v44 = vmul.f32 %v470_v30, %v470_v30  ;;  %v983_v45 = vmul.f32 %v471_v31, %v471_v31  ;;  %v1490_v46 = vmul.f32 %v978_v38, %v978_v38 }
 0x157   : > { %2512 = vst [vmem:[%s3092_s17 + $0xa30] sm:$0xff] %v2000_v37  ;;  %v1491_v47 = vmul.f32 %v979_v39, %v979_v39  ;;  %v1492_v48 = vmul.f32 %v980_v40, %v980_v40  ;;  %v984_v49 = vmul.f32 %v472_v36, %v472_v36  ;;  %2513 = vst [vmem:[%s3092_s17 + $0xa38] sm:$0xff] %v2001_v42 }
 0x158   : > { %v1493_v50 = vmul.f32 %v981_v43, %v981_v43  ;;  %v1494_v51 = vmul.f32 %v982_v44, %v982_v44  ;;  %v1495_v52 = vmul.f32 %v983_v45, %v983_v45  ;;  %v985_v53 = vmul.f32 %v473_v41, %v473_v41 }
 0x159   : > { %v2002_v57 = vmul.f32 %v1490_v46, %v466_v22  ;;  %v2003_v58 = vmul.f32 %v1491_v47, %v467_v23  ;;  %v2004_v59 = vmul.f32 %v1492_v48, %v468_v24  ;;  %v1496_v60 = vmul.f32 %v984_v49, %v984_v49  ;;  %v482_v22 = vld [vmem:[%s3069_s30 + $0xac0] sm:$0xff]  ;;  %v483_v23 = vld [vmem:[%s3069_s30 + $0xac8] sm:$0xff]  ;;  %v484_v24 = vld [vmem:[%s3069_s30 + $0xad0] sm:$0xff] }
 0x15a   : > { %v2005_v0 = vmul.f32 %v1493_v50, %v469_v29  ;;  %v2006_v1 = vmul.f32 %v1494_v51, %v470_v30  ;;  %v2007_v2 = vmul.f32 %v1495_v52, %v471_v31  ;;  %v1497_v3 = vmul.f32 %v985_v53, %v985_v53  ;;  %v485_v29 = vld [vmem:[%s3069_s30 + $0xad8] sm:$0xff]  ;;  %v486_v30 = vld [vmem:[%s3069_s30 + $0xae0] sm:$0xff]  ;;  %v487_v31 = vld [vmem:[%s3069_s30 + $0xae8] sm:$0xff] }
 0x15b   : > { %2514 = vst [vmem:[%s3092_s17 + $0xa40] sm:$0xff] %v2002_v57  ;;  %2515 = vst [vmem:[%s3092_s17 + $0xa48] sm:$0xff] %v2003_v58  ;;  %v2008_v5 = vmul.f32 %v1496_v60, %v472_v36  ;;  %v986_v6 = vmul.f32 %v474_v54, %v474_v54  ;;  %v987_v7 = vmul.f32 %v475_v55, %v475_v55  ;;  %v488_v36 = vld [vmem:[%s3069_s30 + $0xaf0] sm:$0xff] }
 0x15c   : > { %2516 = vst [vmem:[%s3092_s17 + $0xa50] sm:$0xff] %v2004_v59  ;;  %v988_v8 = vmul.f32 %v476_v56, %v476_v56  ;;  %2517 = vst [vmem:[%s3092_s17 + $0xa58] sm:$0xff] %v2005_v0  ;;  %v2009_v10 = vmul.f32 %v1497_v3, %v473_v41  ;;  %v989_v11 = vmul.f32 %v477_v61, %v477_v61  ;;  %v489_v41 = vld [vmem:[%s3069_s30 + $0xaf8] sm:$0xff] }
 0x15d   : > { %2518 = vst [vmem:[%s3092_s17 + $0xa60] sm:$0xff] %v2006_v1  ;;  %2519 = vst [vmem:[%s3092_s17 + $0xa68] sm:$0xff] %v2007_v2  ;;  %v990_v12 = vmul.f32 %v478_v62, %v478_v62  ;;  %v991_v13 = vmul.f32 %v479_v63, %v479_v63  ;;  %v1498_v14 = vmul.f32 %v986_v6, %v986_v6 }
 0x15e   : > { %2520 = vst [vmem:[%s3092_s17 + $0xa70] sm:$0xff] %v2008_v5  ;;  %v1499_v15 = vmul.f32 %v987_v7, %v987_v7  ;;  %v1500_v16 = vmul.f32 %v988_v8, %v988_v8  ;;  %v992_v17 = vmul.f32 %v480_v4, %v480_v4  ;;  %2521 = vst [vmem:[%s3092_s17 + $0xa78] sm:$0xff] %v2009_v10 }
 0x15f   : > { %v1501_v18 = vmul.f32 %v989_v11, %v989_v11  ;;  %v1502_v19 = vmul.f32 %v990_v12, %v990_v12  ;;  %v1503_v20 = vmul.f32 %v991_v13, %v991_v13  ;;  %v993_v21 = vmul.f32 %v481_v9, %v481_v9 }
 0x160   : > { %v2010_v25 = vmul.f32 %v1498_v14, %v474_v54  ;;  %v2011_v26 = vmul.f32 %v1499_v15, %v475_v55  ;;  %v2012_v27 = vmul.f32 %v1500_v16, %v476_v56  ;;  %v1504_v28 = vmul.f32 %v992_v17, %v992_v17  ;;  %v490_v54 = vld [vmem:[%s3069_s30 + $0xb00] sm:$0xff]  ;;  %v491_v55 = vld [vmem:[%s3069_s30 + $0xb08] sm:$0xff]  ;;  %v492_v56 = vld [vmem:[%s3069_s30 + $0xb10] sm:$0xff] }
 0x161   : > { %v2013_v32 = vmul.f32 %v1501_v18, %v477_v61  ;;  %v2014_v33 = vmul.f32 %v1502_v19, %v478_v62  ;;  %v2015_v34 = vmul.f32 %v1503_v20, %v479_v63  ;;  %v1505_v35 = vmul.f32 %v993_v21, %v993_v21  ;;  %v493_v61 = vld [vmem:[%s3069_s30 + $0xb18] sm:$0xff]  ;;  %v494_v62 = vld [vmem:[%s3069_s30 + $0xb20] sm:$0xff]  ;;  %v495_v63 = vld [vmem:[%s3069_s30 + $0xb28] sm:$0xff] }
 0x162   : > { %2522 = vst [vmem:[%s3092_s17 + $0xa80] sm:$0xff] %v2010_v25  ;;  %2523 = vst [vmem:[%s3092_s17 + $0xa88] sm:$0xff] %v2011_v26  ;;  %v2016_v37 = vmul.f32 %v1504_v28, %v480_v4  ;;  %v994_v38 = vmul.f32 %v482_v22, %v482_v22  ;;  %v995_v39 = vmul.f32 %v483_v23, %v483_v23  ;;  %v496_v4 = vld [vmem:[%s3069_s30 + $0xb30] sm:$0xff] }
 0x163   : > { %2524 = vst [vmem:[%s3092_s17 + $0xa90] sm:$0xff] %v2012_v27  ;;  %v996_v40 = vmul.f32 %v484_v24, %v484_v24  ;;  %2525 = vst [vmem:[%s3092_s17 + $0xa98] sm:$0xff] %v2013_v32  ;;  %v2017_v42 = vmul.f32 %v1505_v35, %v481_v9  ;;  %v997_v43 = vmul.f32 %v485_v29, %v485_v29  ;;  %v497_v9 = vld [vmem:[%s3069_s30 + $0xb38] sm:$0xff] }
 0x164   : > { %2526 = vst [vmem:[%s3092_s17 + $0xaa0] sm:$0xff] %v2014_v33  ;;  %2527 = vst [vmem:[%s3092_s17 + $0xaa8] sm:$0xff] %v2015_v34  ;;  %v998_v44 = vmul.f32 %v486_v30, %v486_v30  ;;  %v999_v45 = vmul.f32 %v487_v31, %v487_v31  ;;  %v1506_v46 = vmul.f32 %v994_v38, %v994_v38 }
 0x165   : > { %2528 = vst [vmem:[%s3092_s17 + $0xab0] sm:$0xff] %v2016_v37  ;;  %v1507_v47 = vmul.f32 %v995_v39, %v995_v39  ;;  %v1508_v48 = vmul.f32 %v996_v40, %v996_v40  ;;  %v1000_v49 = vmul.f32 %v488_v36, %v488_v36  ;;  %2529 = vst [vmem:[%s3092_s17 + $0xab8] sm:$0xff] %v2017_v42 }
 0x166   : > { %v1509_v50 = vmul.f32 %v997_v43, %v997_v43  ;;  %v1510_v51 = vmul.f32 %v998_v44, %v998_v44  ;;  %v1511_v52 = vmul.f32 %v999_v45, %v999_v45  ;;  %v1001_v53 = vmul.f32 %v489_v41, %v489_v41 }
 0x167   : > { %v2018_v57 = vmul.f32 %v1506_v46, %v482_v22  ;;  %v2019_v58 = vmul.f32 %v1507_v47, %v483_v23  ;;  %v2020_v59 = vmul.f32 %v1508_v48, %v484_v24  ;;  %v1512_v60 = vmul.f32 %v1000_v49, %v1000_v49  ;;  %v498_v22 = vld [vmem:[%s3069_s30 + $0xb40] sm:$0xff]  ;;  %v499_v23 = vld [vmem:[%s3069_s30 + $0xb48] sm:$0xff]  ;;  %v500_v24 = vld [vmem:[%s3069_s30 + $0xb50] sm:$0xff] }
 0x168   : > { %v2021_v0 = vmul.f32 %v1509_v50, %v485_v29  ;;  %v2022_v1 = vmul.f32 %v1510_v51, %v486_v30  ;;  %v2023_v2 = vmul.f32 %v1511_v52, %v487_v31  ;;  %v1513_v3 = vmul.f32 %v1001_v53, %v1001_v53  ;;  %v501_v29 = vld [vmem:[%s3069_s30 + $0xb58] sm:$0xff]  ;;  %v502_v30 = vld [vmem:[%s3069_s30 + $0xb60] sm:$0xff]  ;;  %v503_v31 = vld [vmem:[%s3069_s30 + $0xb68] sm:$0xff] }
 0x169   : > { %2530 = vst [vmem:[%s3092_s17 + $0xac0] sm:$0xff] %v2018_v57  ;;  %2531 = vst [vmem:[%s3092_s17 + $0xac8] sm:$0xff] %v2019_v58  ;;  %v2024_v5 = vmul.f32 %v1512_v60, %v488_v36  ;;  %v1002_v6 = vmul.f32 %v490_v54, %v490_v54  ;;  %v1003_v7 = vmul.f32 %v491_v55, %v491_v55  ;;  %v504_v36 = vld [vmem:[%s3069_s30 + $0xb70] sm:$0xff] }
 0x16a   : > { %2532 = vst [vmem:[%s3092_s17 + $0xad0] sm:$0xff] %v2020_v59  ;;  %v1004_v8 = vmul.f32 %v492_v56, %v492_v56  ;;  %2533 = vst [vmem:[%s3092_s17 + $0xad8] sm:$0xff] %v2021_v0  ;;  %v2025_v10 = vmul.f32 %v1513_v3, %v489_v41  ;;  %v1005_v11 = vmul.f32 %v493_v61, %v493_v61  ;;  %v505_v41 = vld [vmem:[%s3069_s30 + $0xb78] sm:$0xff] }
 0x16b   : > { %2534 = vst [vmem:[%s3092_s17 + $0xae0] sm:$0xff] %v2022_v1  ;;  %2535 = vst [vmem:[%s3092_s17 + $0xae8] sm:$0xff] %v2023_v2  ;;  %v1006_v12 = vmul.f32 %v494_v62, %v494_v62  ;;  %v1007_v13 = vmul.f32 %v495_v63, %v495_v63  ;;  %v1514_v14 = vmul.f32 %v1002_v6, %v1002_v6 }
 0x16c   : > { %2536 = vst [vmem:[%s3092_s17 + $0xaf0] sm:$0xff] %v2024_v5  ;;  %v1515_v15 = vmul.f32 %v1003_v7, %v1003_v7  ;;  %v1516_v16 = vmul.f32 %v1004_v8, %v1004_v8  ;;  %v1008_v17 = vmul.f32 %v496_v4, %v496_v4  ;;  %2537 = vst [vmem:[%s3092_s17 + $0xaf8] sm:$0xff] %v2025_v10 }
 0x16d   : > { %v1517_v18 = vmul.f32 %v1005_v11, %v1005_v11  ;;  %v1518_v19 = vmul.f32 %v1006_v12, %v1006_v12  ;;  %v1519_v20 = vmul.f32 %v1007_v13, %v1007_v13  ;;  %v1009_v21 = vmul.f32 %v497_v9, %v497_v9 }
 0x16e   : > { %v2026_v25 = vmul.f32 %v1514_v14, %v490_v54  ;;  %v2027_v26 = vmul.f32 %v1515_v15, %v491_v55  ;;  %v2028_v27 = vmul.f32 %v1516_v16, %v492_v56  ;;  %v1520_v28 = vmul.f32 %v1008_v17, %v1008_v17  ;;  %v506_v54 = vld [vmem:[%s3069_s30 + $0xb80] sm:$0xff]  ;;  %v507_v55 = vld [vmem:[%s3069_s30 + $0xb88] sm:$0xff]  ;;  %v508_v56 = vld [vmem:[%s3069_s30 + $0xb90] sm:$0xff] }
 0x16f   : > { %v2029_v32 = vmul.f32 %v1517_v18, %v493_v61  ;;  %v2030_v33 = vmul.f32 %v1518_v19, %v494_v62  ;;  %v2031_v34 = vmul.f32 %v1519_v20, %v495_v63  ;;  %v1521_v35 = vmul.f32 %v1009_v21, %v1009_v21  ;;  %v509_v61 = vld [vmem:[%s3069_s30 + $0xb98] sm:$0xff]  ;;  %v510_v62 = vld [vmem:[%s3069_s30 + $0xba0] sm:$0xff]  ;;  %v511_v63 = vld [vmem:[%s3069_s30 + $0xba8] sm:$0xff] }
 0x170   : > { %2538 = vst [vmem:[%s3092_s17 + $0xb00] sm:$0xff] %v2026_v25  ;;  %2539 = vst [vmem:[%s3092_s17 + $0xb08] sm:$0xff] %v2027_v26  ;;  %v2032_v37 = vmul.f32 %v1520_v28, %v496_v4  ;;  %v1010_v38 = vmul.f32 %v498_v22, %v498_v22  ;;  %v1011_v39 = vmul.f32 %v499_v23, %v499_v23  ;;  %v512_v4 = vld [vmem:[%s3069_s30 + $0xbb0] sm:$0xff] }
 0x171   : > { %2540 = vst [vmem:[%s3092_s17 + $0xb10] sm:$0xff] %v2028_v27  ;;  %v1012_v40 = vmul.f32 %v500_v24, %v500_v24  ;;  %2541 = vst [vmem:[%s3092_s17 + $0xb18] sm:$0xff] %v2029_v32  ;;  %v2033_v42 = vmul.f32 %v1521_v35, %v497_v9  ;;  %v1013_v43 = vmul.f32 %v501_v29, %v501_v29  ;;  %v513_v9 = vld [vmem:[%s3069_s30 + $0xbb8] sm:$0xff] }
 0x172   : > { %2542 = vst [vmem:[%s3092_s17 + $0xb20] sm:$0xff] %v2030_v33  ;;  %2543 = vst [vmem:[%s3092_s17 + $0xb28] sm:$0xff] %v2031_v34  ;;  %v1014_v44 = vmul.f32 %v502_v30, %v502_v30  ;;  %v1015_v45 = vmul.f32 %v503_v31, %v503_v31  ;;  %v1522_v46 = vmul.f32 %v1010_v38, %v1010_v38 }
 0x173   : > { %2544 = vst [vmem:[%s3092_s17 + $0xb30] sm:$0xff] %v2032_v37  ;;  %v1523_v47 = vmul.f32 %v1011_v39, %v1011_v39  ;;  %v1524_v48 = vmul.f32 %v1012_v40, %v1012_v40  ;;  %v1016_v49 = vmul.f32 %v504_v36, %v504_v36  ;;  %2545 = vst [vmem:[%s3092_s17 + $0xb38] sm:$0xff] %v2033_v42 }
 0x174   : > { %v1525_v50 = vmul.f32 %v1013_v43, %v1013_v43  ;;  %v1526_v51 = vmul.f32 %v1014_v44, %v1014_v44  ;;  %v1527_v52 = vmul.f32 %v1015_v45, %v1015_v45  ;;  %v1017_v53 = vmul.f32 %v505_v41, %v505_v41 }
 0x175   : > { %v2034_v57 = vmul.f32 %v1522_v46, %v498_v22  ;;  %v2035_v58 = vmul.f32 %v1523_v47, %v499_v23  ;;  %v2036_v59 = vmul.f32 %v1524_v48, %v500_v24  ;;  %v1528_v60 = vmul.f32 %v1016_v49, %v1016_v49  ;;  %v514_v22 = vld [vmem:[%s3069_s30 + $0xbc0] sm:$0xff]  ;;  %v515_v23 = vld [vmem:[%s3069_s30 + $0xbc8] sm:$0xff]  ;;  %v516_v24 = vld [vmem:[%s3069_s30 + $0xbd0] sm:$0xff] }
 0x176   : > { %v2037_v0 = vmul.f32 %v1525_v50, %v501_v29  ;;  %v2038_v1 = vmul.f32 %v1526_v51, %v502_v30  ;;  %v2039_v2 = vmul.f32 %v1527_v52, %v503_v31  ;;  %v1529_v3 = vmul.f32 %v1017_v53, %v1017_v53  ;;  %v517_v29 = vld [vmem:[%s3069_s30 + $0xbd8] sm:$0xff]  ;;  %v518_v30 = vld [vmem:[%s3069_s30 + $0xbe0] sm:$0xff]  ;;  %v519_v31 = vld [vmem:[%s3069_s30 + $0xbe8] sm:$0xff] }
 0x177   : > { %2546 = vst [vmem:[%s3092_s17 + $0xb40] sm:$0xff] %v2034_v57  ;;  %2547 = vst [vmem:[%s3092_s17 + $0xb48] sm:$0xff] %v2035_v58  ;;  %v2040_v5 = vmul.f32 %v1528_v60, %v504_v36  ;;  %v1018_v6 = vmul.f32 %v506_v54, %v506_v54  ;;  %v1019_v7 = vmul.f32 %v507_v55, %v507_v55  ;;  %v520_v36 = vld [vmem:[%s3069_s30 + $0xbf0] sm:$0xff] }
 0x178   : > { %2548 = vst [vmem:[%s3092_s17 + $0xb50] sm:$0xff] %v2036_v59  ;;  %v1020_v8 = vmul.f32 %v508_v56, %v508_v56  ;;  %2549 = vst [vmem:[%s3092_s17 + $0xb58] sm:$0xff] %v2037_v0  ;;  %v2041_v10 = vmul.f32 %v1529_v3, %v505_v41  ;;  %v1021_v11 = vmul.f32 %v509_v61, %v509_v61  ;;  %v521_v41 = vld [vmem:[%s3069_s30 + $0xbf8] sm:$0xff] }
 0x179   : > { %2550 = vst [vmem:[%s3092_s17 + $0xb60] sm:$0xff] %v2038_v1  ;;  %2551 = vst [vmem:[%s3092_s17 + $0xb68] sm:$0xff] %v2039_v2  ;;  %v1022_v12 = vmul.f32 %v510_v62, %v510_v62  ;;  %v1023_v13 = vmul.f32 %v511_v63, %v511_v63  ;;  %v1530_v14 = vmul.f32 %v1018_v6, %v1018_v6 }
 0x17a   : > { %2552 = vst [vmem:[%s3092_s17 + $0xb70] sm:$0xff] %v2040_v5  ;;  %v1531_v15 = vmul.f32 %v1019_v7, %v1019_v7  ;;  %v1532_v16 = vmul.f32 %v1020_v8, %v1020_v8  ;;  %v1024_v17 = vmul.f32 %v512_v4, %v512_v4  ;;  %2553 = vst [vmem:[%s3092_s17 + $0xb78] sm:$0xff] %v2041_v10 }
 0x17b   : > { %v1533_v18 = vmul.f32 %v1021_v11, %v1021_v11  ;;  %v1534_v19 = vmul.f32 %v1022_v12, %v1022_v12  ;;  %v1535_v20 = vmul.f32 %v1023_v13, %v1023_v13  ;;  %v1025_v21 = vmul.f32 %v513_v9, %v513_v9 }
 0x17c   : > { %v2042_v25 = vmul.f32 %v1530_v14, %v506_v54  ;;  %v2043_v26 = vmul.f32 %v1531_v15, %v507_v55  ;;  %v2044_v27 = vmul.f32 %v1532_v16, %v508_v56  ;;  %v1536_v28 = vmul.f32 %v1024_v17, %v1024_v17  ;;  %v522_v54 = vld [vmem:[%s3069_s30 + $0xc00] sm:$0xff]  ;;  %v523_v55 = vld [vmem:[%s3069_s30 + $0xc08] sm:$0xff]  ;;  %v524_v56 = vld [vmem:[%s3069_s30 + $0xc10] sm:$0xff] }
 0x17d   : > { %v2045_v32 = vmul.f32 %v1533_v18, %v509_v61  ;;  %v2046_v33 = vmul.f32 %v1534_v19, %v510_v62  ;;  %v2047_v34 = vmul.f32 %v1535_v20, %v511_v63  ;;  %v1537_v35 = vmul.f32 %v1025_v21, %v1025_v21  ;;  %v525_v61 = vld [vmem:[%s3069_s30 + $0xc18] sm:$0xff]  ;;  %v526_v62 = vld [vmem:[%s3069_s30 + $0xc20] sm:$0xff]  ;;  %v527_v63 = vld [vmem:[%s3069_s30 + $0xc28] sm:$0xff] }
 0x17e   : > { %2554 = vst [vmem:[%s3092_s17 + $0xb80] sm:$0xff] %v2042_v25  ;;  %2555 = vst [vmem:[%s3092_s17 + $0xb88] sm:$0xff] %v2043_v26  ;;  %v2048_v37 = vmul.f32 %v1536_v28, %v512_v4  ;;  %v1026_v38 = vmul.f32 %v514_v22, %v514_v22  ;;  %v1027_v39 = vmul.f32 %v515_v23, %v515_v23  ;;  %v528_v4 = vld [vmem:[%s3069_s30 + $0xc30] sm:$0xff] }
 0x17f   : > { %2556 = vst [vmem:[%s3092_s17 + $0xb90] sm:$0xff] %v2044_v27  ;;  %v1028_v40 = vmul.f32 %v516_v24, %v516_v24  ;;  %2557 = vst [vmem:[%s3092_s17 + $0xb98] sm:$0xff] %v2045_v32  ;;  %v2049_v42 = vmul.f32 %v1537_v35, %v513_v9  ;;  %v1029_v43 = vmul.f32 %v517_v29, %v517_v29  ;;  %v529_v9 = vld [vmem:[%s3069_s30 + $0xc38] sm:$0xff] }
 0x180   : > { %2558 = vst [vmem:[%s3092_s17 + $0xba0] sm:$0xff] %v2046_v33  ;;  %2559 = vst [vmem:[%s3092_s17 + $0xba8] sm:$0xff] %v2047_v34  ;;  %v1030_v44 = vmul.f32 %v518_v30, %v518_v30  ;;  %v1031_v45 = vmul.f32 %v519_v31, %v519_v31  ;;  %v1538_v46 = vmul.f32 %v1026_v38, %v1026_v38 }
 0x181   : > { %2560 = vst [vmem:[%s3092_s17 + $0xbb0] sm:$0xff] %v2048_v37  ;;  %v1539_v47 = vmul.f32 %v1027_v39, %v1027_v39  ;;  %v1540_v48 = vmul.f32 %v1028_v40, %v1028_v40  ;;  %v1032_v49 = vmul.f32 %v520_v36, %v520_v36  ;;  %2561 = vst [vmem:[%s3092_s17 + $0xbb8] sm:$0xff] %v2049_v42 }
 0x182   : > { %v1541_v50 = vmul.f32 %v1029_v43, %v1029_v43  ;;  %v1542_v51 = vmul.f32 %v1030_v44, %v1030_v44  ;;  %v1543_v52 = vmul.f32 %v1031_v45, %v1031_v45  ;;  %v1033_v53 = vmul.f32 %v521_v41, %v521_v41 }
 0x183   : > { %v2050_v57 = vmul.f32 %v1538_v46, %v514_v22  ;;  %v2051_v58 = vmul.f32 %v1539_v47, %v515_v23  ;;  %v2052_v59 = vmul.f32 %v1540_v48, %v516_v24  ;;  %v1544_v60 = vmul.f32 %v1032_v49, %v1032_v49  ;;  %v530_v22 = vld [vmem:[%s3069_s30 + $0xc40] sm:$0xff]  ;;  %v531_v23 = vld [vmem:[%s3069_s30 + $0xc48] sm:$0xff]  ;;  %v532_v24 = vld [vmem:[%s3069_s30 + $0xc50] sm:$0xff] }
 0x184   : > { %v2053_v0 = vmul.f32 %v1541_v50, %v517_v29  ;;  %v2054_v1 = vmul.f32 %v1542_v51, %v518_v30  ;;  %v2055_v2 = vmul.f32 %v1543_v52, %v519_v31  ;;  %v1545_v3 = vmul.f32 %v1033_v53, %v1033_v53  ;;  %v533_v29 = vld [vmem:[%s3069_s30 + $0xc58] sm:$0xff]  ;;  %v534_v30 = vld [vmem:[%s3069_s30 + $0xc60] sm:$0xff]  ;;  %v535_v31 = vld [vmem:[%s3069_s30 + $0xc68] sm:$0xff] }
 0x185   : > { %2562 = vst [vmem:[%s3092_s17 + $0xbc0] sm:$0xff] %v2050_v57  ;;  %2563 = vst [vmem:[%s3092_s17 + $0xbc8] sm:$0xff] %v2051_v58  ;;  %v2056_v5 = vmul.f32 %v1544_v60, %v520_v36  ;;  %v1034_v6 = vmul.f32 %v522_v54, %v522_v54  ;;  %v1035_v7 = vmul.f32 %v523_v55, %v523_v55  ;;  %v536_v36 = vld [vmem:[%s3069_s30 + $0xc70] sm:$0xff] }
 0x186   : > { %2564 = vst [vmem:[%s3092_s17 + $0xbd0] sm:$0xff] %v2052_v59  ;;  %v1036_v8 = vmul.f32 %v524_v56, %v524_v56  ;;  %2565 = vst [vmem:[%s3092_s17 + $0xbd8] sm:$0xff] %v2053_v0  ;;  %v2057_v10 = vmul.f32 %v1545_v3, %v521_v41  ;;  %v1037_v11 = vmul.f32 %v525_v61, %v525_v61  ;;  %v537_v41 = vld [vmem:[%s3069_s30 + $0xc78] sm:$0xff] }
 0x187   : > { %2566 = vst [vmem:[%s3092_s17 + $0xbe0] sm:$0xff] %v2054_v1  ;;  %2567 = vst [vmem:[%s3092_s17 + $0xbe8] sm:$0xff] %v2055_v2  ;;  %v1038_v12 = vmul.f32 %v526_v62, %v526_v62  ;;  %v1039_v13 = vmul.f32 %v527_v63, %v527_v63  ;;  %v1546_v14 = vmul.f32 %v1034_v6, %v1034_v6 }
 0x188   : > { %2568 = vst [vmem:[%s3092_s17 + $0xbf0] sm:$0xff] %v2056_v5  ;;  %v1547_v15 = vmul.f32 %v1035_v7, %v1035_v7  ;;  %v1548_v16 = vmul.f32 %v1036_v8, %v1036_v8  ;;  %v1040_v17 = vmul.f32 %v528_v4, %v528_v4  ;;  %2569 = vst [vmem:[%s3092_s17 + $0xbf8] sm:$0xff] %v2057_v10 }
 0x189   : > { %v1549_v18 = vmul.f32 %v1037_v11, %v1037_v11  ;;  %v1550_v19 = vmul.f32 %v1038_v12, %v1038_v12  ;;  %v1551_v20 = vmul.f32 %v1039_v13, %v1039_v13  ;;  %v1041_v21 = vmul.f32 %v529_v9, %v529_v9 }
 0x18a   : > { %v2058_v25 = vmul.f32 %v1546_v14, %v522_v54  ;;  %v2059_v26 = vmul.f32 %v1547_v15, %v523_v55  ;;  %v2060_v27 = vmul.f32 %v1548_v16, %v524_v56  ;;  %v1552_v28 = vmul.f32 %v1040_v17, %v1040_v17  ;;  %v538_v54 = vld [vmem:[%s3069_s30 + $0xc80] sm:$0xff]  ;;  %v539_v55 = vld [vmem:[%s3069_s30 + $0xc88] sm:$0xff]  ;;  %v540_v56 = vld [vmem:[%s3069_s30 + $0xc90] sm:$0xff] }
 0x18b   : > { %v2061_v32 = vmul.f32 %v1549_v18, %v525_v61  ;;  %v2062_v33 = vmul.f32 %v1550_v19, %v526_v62  ;;  %v2063_v34 = vmul.f32 %v1551_v20, %v527_v63  ;;  %v1553_v35 = vmul.f32 %v1041_v21, %v1041_v21  ;;  %v541_v61 = vld [vmem:[%s3069_s30 + $0xc98] sm:$0xff]  ;;  %v542_v62 = vld [vmem:[%s3069_s30 + $0xca0] sm:$0xff]  ;;  %v543_v63 = vld [vmem:[%s3069_s30 + $0xca8] sm:$0xff] }
 0x18c   : > { %2570 = vst [vmem:[%s3092_s17 + $0xc00] sm:$0xff] %v2058_v25  ;;  %2571 = vst [vmem:[%s3092_s17 + $0xc08] sm:$0xff] %v2059_v26  ;;  %v2064_v37 = vmul.f32 %v1552_v28, %v528_v4  ;;  %v1042_v38 = vmul.f32 %v530_v22, %v530_v22  ;;  %v1043_v39 = vmul.f32 %v531_v23, %v531_v23  ;;  %v544_v4 = vld [vmem:[%s3069_s30 + $0xcb0] sm:$0xff] }
 0x18d   : > { %2572 = vst [vmem:[%s3092_s17 + $0xc10] sm:$0xff] %v2060_v27  ;;  %v1044_v40 = vmul.f32 %v532_v24, %v532_v24  ;;  %2573 = vst [vmem:[%s3092_s17 + $0xc18] sm:$0xff] %v2061_v32  ;;  %v2065_v42 = vmul.f32 %v1553_v35, %v529_v9  ;;  %v1045_v43 = vmul.f32 %v533_v29, %v533_v29  ;;  %v545_v9 = vld [vmem:[%s3069_s30 + $0xcb8] sm:$0xff] }
 0x18e   : > { %2574 = vst [vmem:[%s3092_s17 + $0xc20] sm:$0xff] %v2062_v33  ;;  %2575 = vst [vmem:[%s3092_s17 + $0xc28] sm:$0xff] %v2063_v34  ;;  %v1046_v44 = vmul.f32 %v534_v30, %v534_v30  ;;  %v1047_v45 = vmul.f32 %v535_v31, %v535_v31  ;;  %v1554_v46 = vmul.f32 %v1042_v38, %v1042_v38 }
 0x18f   : > { %2576 = vst [vmem:[%s3092_s17 + $0xc30] sm:$0xff] %v2064_v37  ;;  %v1555_v47 = vmul.f32 %v1043_v39, %v1043_v39  ;;  %v1556_v48 = vmul.f32 %v1044_v40, %v1044_v40  ;;  %v1048_v49 = vmul.f32 %v536_v36, %v536_v36  ;;  %2577 = vst [vmem:[%s3092_s17 + $0xc38] sm:$0xff] %v2065_v42 }
 0x190   : > { %v1557_v50 = vmul.f32 %v1045_v43, %v1045_v43  ;;  %v1558_v51 = vmul.f32 %v1046_v44, %v1046_v44  ;;  %v1559_v52 = vmul.f32 %v1047_v45, %v1047_v45  ;;  %v1049_v53 = vmul.f32 %v537_v41, %v537_v41 }
 0x191   : > { %v2066_v57 = vmul.f32 %v1554_v46, %v530_v22  ;;  %v2067_v58 = vmul.f32 %v1555_v47, %v531_v23  ;;  %v2068_v59 = vmul.f32 %v1556_v48, %v532_v24  ;;  %v1560_v60 = vmul.f32 %v1048_v49, %v1048_v49  ;;  %v546_v22 = vld [vmem:[%s3069_s30 + $0xcc0] sm:$0xff]  ;;  %v547_v23 = vld [vmem:[%s3069_s30 + $0xcc8] sm:$0xff]  ;;  %v548_v24 = vld [vmem:[%s3069_s30 + $0xcd0] sm:$0xff] }
 0x192   : > { %v2069_v0 = vmul.f32 %v1557_v50, %v533_v29  ;;  %v2070_v1 = vmul.f32 %v1558_v51, %v534_v30  ;;  %v2071_v2 = vmul.f32 %v1559_v52, %v535_v31  ;;  %v1561_v3 = vmul.f32 %v1049_v53, %v1049_v53  ;;  %v549_v29 = vld [vmem:[%s3069_s30 + $0xcd8] sm:$0xff]  ;;  %v550_v30 = vld [vmem:[%s3069_s30 + $0xce0] sm:$0xff]  ;;  %v551_v31 = vld [vmem:[%s3069_s30 + $0xce8] sm:$0xff] }
 0x193   : > { %2578 = vst [vmem:[%s3092_s17 + $0xc40] sm:$0xff] %v2066_v57  ;;  %2579 = vst [vmem:[%s3092_s17 + $0xc48] sm:$0xff] %v2067_v58  ;;  %v2072_v5 = vmul.f32 %v1560_v60, %v536_v36  ;;  %v1050_v6 = vmul.f32 %v538_v54, %v538_v54  ;;  %v1051_v7 = vmul.f32 %v539_v55, %v539_v55  ;;  %v552_v36 = vld [vmem:[%s3069_s30 + $0xcf0] sm:$0xff] }
 0x194   : > { %2580 = vst [vmem:[%s3092_s17 + $0xc50] sm:$0xff] %v2068_v59  ;;  %v1052_v8 = vmul.f32 %v540_v56, %v540_v56  ;;  %2581 = vst [vmem:[%s3092_s17 + $0xc58] sm:$0xff] %v2069_v0  ;;  %v2073_v10 = vmul.f32 %v1561_v3, %v537_v41  ;;  %v1053_v11 = vmul.f32 %v541_v61, %v541_v61  ;;  %v553_v41 = vld [vmem:[%s3069_s30 + $0xcf8] sm:$0xff] }
 0x195   : > { %2582 = vst [vmem:[%s3092_s17 + $0xc60] sm:$0xff] %v2070_v1  ;;  %2583 = vst [vmem:[%s3092_s17 + $0xc68] sm:$0xff] %v2071_v2  ;;  %v1054_v12 = vmul.f32 %v542_v62, %v542_v62  ;;  %v1055_v13 = vmul.f32 %v543_v63, %v543_v63  ;;  %v1562_v14 = vmul.f32 %v1050_v6, %v1050_v6 }
 0x196   : > { %2584 = vst [vmem:[%s3092_s17 + $0xc70] sm:$0xff] %v2072_v5  ;;  %v1563_v15 = vmul.f32 %v1051_v7, %v1051_v7  ;;  %v1564_v16 = vmul.f32 %v1052_v8, %v1052_v8  ;;  %v1056_v17 = vmul.f32 %v544_v4, %v544_v4  ;;  %2585 = vst [vmem:[%s3092_s17 + $0xc78] sm:$0xff] %v2073_v10 }
 0x197   : > { %v1565_v18 = vmul.f32 %v1053_v11, %v1053_v11  ;;  %v1566_v19 = vmul.f32 %v1054_v12, %v1054_v12  ;;  %v1567_v20 = vmul.f32 %v1055_v13, %v1055_v13  ;;  %v1057_v21 = vmul.f32 %v545_v9, %v545_v9 }
 0x198   : > { %v2074_v25 = vmul.f32 %v1562_v14, %v538_v54  ;;  %v2075_v26 = vmul.f32 %v1563_v15, %v539_v55  ;;  %v2076_v27 = vmul.f32 %v1564_v16, %v540_v56  ;;  %v1568_v28 = vmul.f32 %v1056_v17, %v1056_v17  ;;  %v554_v54 = vld [vmem:[%s3069_s30 + $0xd00] sm:$0xff]  ;;  %v555_v55 = vld [vmem:[%s3069_s30 + $0xd08] sm:$0xff]  ;;  %v556_v56 = vld [vmem:[%s3069_s30 + $0xd10] sm:$0xff] }
 0x199   : > { %v2077_v32 = vmul.f32 %v1565_v18, %v541_v61  ;;  %v2078_v33 = vmul.f32 %v1566_v19, %v542_v62  ;;  %v2079_v34 = vmul.f32 %v1567_v20, %v543_v63  ;;  %v1569_v35 = vmul.f32 %v1057_v21, %v1057_v21  ;;  %v557_v61 = vld [vmem:[%s3069_s30 + $0xd18] sm:$0xff]  ;;  %v558_v62 = vld [vmem:[%s3069_s30 + $0xd20] sm:$0xff]  ;;  %v559_v63 = vld [vmem:[%s3069_s30 + $0xd28] sm:$0xff] }
 0x19a   : > { %2586 = vst [vmem:[%s3092_s17 + $0xc80] sm:$0xff] %v2074_v25  ;;  %2587 = vst [vmem:[%s3092_s17 + $0xc88] sm:$0xff] %v2075_v26  ;;  %v2080_v37 = vmul.f32 %v1568_v28, %v544_v4  ;;  %v1058_v38 = vmul.f32 %v546_v22, %v546_v22  ;;  %v1059_v39 = vmul.f32 %v547_v23, %v547_v23  ;;  %v560_v4 = vld [vmem:[%s3069_s30 + $0xd30] sm:$0xff] }
 0x19b   : > { %2588 = vst [vmem:[%s3092_s17 + $0xc90] sm:$0xff] %v2076_v27  ;;  %v1060_v40 = vmul.f32 %v548_v24, %v548_v24  ;;  %2589 = vst [vmem:[%s3092_s17 + $0xc98] sm:$0xff] %v2077_v32  ;;  %v2081_v42 = vmul.f32 %v1569_v35, %v545_v9  ;;  %v1061_v43 = vmul.f32 %v549_v29, %v549_v29  ;;  %v561_v9 = vld [vmem:[%s3069_s30 + $0xd38] sm:$0xff] }
 0x19c   : > { %2590 = vst [vmem:[%s3092_s17 + $0xca0] sm:$0xff] %v2078_v33  ;;  %2591 = vst [vmem:[%s3092_s17 + $0xca8] sm:$0xff] %v2079_v34  ;;  %v1062_v44 = vmul.f32 %v550_v30, %v550_v30  ;;  %v1063_v45 = vmul.f32 %v551_v31, %v551_v31  ;;  %v1570_v46 = vmul.f32 %v1058_v38, %v1058_v38 }
 0x19d   : > { %2592 = vst [vmem:[%s3092_s17 + $0xcb0] sm:$0xff] %v2080_v37  ;;  %v1571_v47 = vmul.f32 %v1059_v39, %v1059_v39  ;;  %v1572_v48 = vmul.f32 %v1060_v40, %v1060_v40  ;;  %v1064_v49 = vmul.f32 %v552_v36, %v552_v36  ;;  %2593 = vst [vmem:[%s3092_s17 + $0xcb8] sm:$0xff] %v2081_v42 }
 0x19e   : > { %v1573_v50 = vmul.f32 %v1061_v43, %v1061_v43  ;;  %v1574_v51 = vmul.f32 %v1062_v44, %v1062_v44  ;;  %v1575_v52 = vmul.f32 %v1063_v45, %v1063_v45  ;;  %v1065_v53 = vmul.f32 %v553_v41, %v553_v41 }
 0x19f   : > { %v2082_v57 = vmul.f32 %v1570_v46, %v546_v22  ;;  %v2083_v58 = vmul.f32 %v1571_v47, %v547_v23  ;;  %v2084_v59 = vmul.f32 %v1572_v48, %v548_v24  ;;  %v1576_v60 = vmul.f32 %v1064_v49, %v1064_v49  ;;  %v562_v22 = vld [vmem:[%s3069_s30 + $0xd40] sm:$0xff]  ;;  %v563_v23 = vld [vmem:[%s3069_s30 + $0xd48] sm:$0xff]  ;;  %v564_v24 = vld [vmem:[%s3069_s30 + $0xd50] sm:$0xff] }
 0x1a0   : > { %v2085_v0 = vmul.f32 %v1573_v50, %v549_v29  ;;  %v2086_v1 = vmul.f32 %v1574_v51, %v550_v30  ;;  %v2087_v2 = vmul.f32 %v1575_v52, %v551_v31  ;;  %v1577_v3 = vmul.f32 %v1065_v53, %v1065_v53  ;;  %v565_v29 = vld [vmem:[%s3069_s30 + $0xd58] sm:$0xff]  ;;  %v566_v30 = vld [vmem:[%s3069_s30 + $0xd60] sm:$0xff]  ;;  %v567_v31 = vld [vmem:[%s3069_s30 + $0xd68] sm:$0xff] }
 0x1a1   : > { %2594 = vst [vmem:[%s3092_s17 + $0xcc0] sm:$0xff] %v2082_v57  ;;  %2595 = vst [vmem:[%s3092_s17 + $0xcc8] sm:$0xff] %v2083_v58  ;;  %v2088_v5 = vmul.f32 %v1576_v60, %v552_v36  ;;  %v1066_v6 = vmul.f32 %v554_v54, %v554_v54  ;;  %v1067_v7 = vmul.f32 %v555_v55, %v555_v55  ;;  %v568_v36 = vld [vmem:[%s3069_s30 + $0xd70] sm:$0xff] }
 0x1a2   : > { %2596 = vst [vmem:[%s3092_s17 + $0xcd0] sm:$0xff] %v2084_v59  ;;  %v1068_v8 = vmul.f32 %v556_v56, %v556_v56  ;;  %2597 = vst [vmem:[%s3092_s17 + $0xcd8] sm:$0xff] %v2085_v0  ;;  %v2089_v10 = vmul.f32 %v1577_v3, %v553_v41  ;;  %v1069_v11 = vmul.f32 %v557_v61, %v557_v61  ;;  %v569_v41 = vld [vmem:[%s3069_s30 + $0xd78] sm:$0xff] }
 0x1a3   : > { %2598 = vst [vmem:[%s3092_s17 + $0xce0] sm:$0xff] %v2086_v1  ;;  %2599 = vst [vmem:[%s3092_s17 + $0xce8] sm:$0xff] %v2087_v2  ;;  %v1070_v12 = vmul.f32 %v558_v62, %v558_v62  ;;  %v1071_v13 = vmul.f32 %v559_v63, %v559_v63  ;;  %v1578_v14 = vmul.f32 %v1066_v6, %v1066_v6 }
 0x1a4   : > { %2600 = vst [vmem:[%s3092_s17 + $0xcf0] sm:$0xff] %v2088_v5  ;;  %v1579_v15 = vmul.f32 %v1067_v7, %v1067_v7  ;;  %v1580_v16 = vmul.f32 %v1068_v8, %v1068_v8  ;;  %v1072_v17 = vmul.f32 %v560_v4, %v560_v4  ;;  %2601 = vst [vmem:[%s3092_s17 + $0xcf8] sm:$0xff] %v2089_v10 }
 0x1a5   : > { %v1581_v18 = vmul.f32 %v1069_v11, %v1069_v11  ;;  %v1582_v19 = vmul.f32 %v1070_v12, %v1070_v12  ;;  %v1583_v20 = vmul.f32 %v1071_v13, %v1071_v13  ;;  %v1073_v21 = vmul.f32 %v561_v9, %v561_v9 }
 0x1a6   : > { %v2090_v25 = vmul.f32 %v1578_v14, %v554_v54  ;;  %v2091_v26 = vmul.f32 %v1579_v15, %v555_v55  ;;  %v2092_v27 = vmul.f32 %v1580_v16, %v556_v56  ;;  %v1584_v28 = vmul.f32 %v1072_v17, %v1072_v17  ;;  %v570_v54 = vld [vmem:[%s3069_s30 + $0xd80] sm:$0xff]  ;;  %v571_v55 = vld [vmem:[%s3069_s30 + $0xd88] sm:$0xff]  ;;  %v572_v56 = vld [vmem:[%s3069_s30 + $0xd90] sm:$0xff] }
 0x1a7   : > { %v2093_v32 = vmul.f32 %v1581_v18, %v557_v61  ;;  %v2094_v33 = vmul.f32 %v1582_v19, %v558_v62  ;;  %v2095_v34 = vmul.f32 %v1583_v20, %v559_v63  ;;  %v1585_v35 = vmul.f32 %v1073_v21, %v1073_v21  ;;  %v573_v61 = vld [vmem:[%s3069_s30 + $0xd98] sm:$0xff]  ;;  %v574_v62 = vld [vmem:[%s3069_s30 + $0xda0] sm:$0xff]  ;;  %v575_v63 = vld [vmem:[%s3069_s30 + $0xda8] sm:$0xff] }
 0x1a8   : > { %2602 = vst [vmem:[%s3092_s17 + $0xd00] sm:$0xff] %v2090_v25  ;;  %2603 = vst [vmem:[%s3092_s17 + $0xd08] sm:$0xff] %v2091_v26  ;;  %v2096_v37 = vmul.f32 %v1584_v28, %v560_v4  ;;  %v1074_v38 = vmul.f32 %v562_v22, %v562_v22  ;;  %v1075_v39 = vmul.f32 %v563_v23, %v563_v23  ;;  %v576_v4 = vld [vmem:[%s3069_s30 + $0xdb0] sm:$0xff] }
 0x1a9   : > { %2604 = vst [vmem:[%s3092_s17 + $0xd10] sm:$0xff] %v2092_v27  ;;  %v1076_v40 = vmul.f32 %v564_v24, %v564_v24  ;;  %2605 = vst [vmem:[%s3092_s17 + $0xd18] sm:$0xff] %v2093_v32  ;;  %v2097_v42 = vmul.f32 %v1585_v35, %v561_v9  ;;  %v1077_v43 = vmul.f32 %v565_v29, %v565_v29  ;;  %v577_v9 = vld [vmem:[%s3069_s30 + $0xdb8] sm:$0xff] }
 0x1aa   : > { %2606 = vst [vmem:[%s3092_s17 + $0xd20] sm:$0xff] %v2094_v33  ;;  %2607 = vst [vmem:[%s3092_s17 + $0xd28] sm:$0xff] %v2095_v34  ;;  %v1078_v44 = vmul.f32 %v566_v30, %v566_v30  ;;  %v1079_v45 = vmul.f32 %v567_v31, %v567_v31  ;;  %v1586_v46 = vmul.f32 %v1074_v38, %v1074_v38 }
 0x1ab   : > { %2608 = vst [vmem:[%s3092_s17 + $0xd30] sm:$0xff] %v2096_v37  ;;  %v1587_v47 = vmul.f32 %v1075_v39, %v1075_v39  ;;  %v1588_v48 = vmul.f32 %v1076_v40, %v1076_v40  ;;  %v1080_v49 = vmul.f32 %v568_v36, %v568_v36  ;;  %2609 = vst [vmem:[%s3092_s17 + $0xd38] sm:$0xff] %v2097_v42 }
 0x1ac   : > { %v1589_v50 = vmul.f32 %v1077_v43, %v1077_v43  ;;  %v1590_v51 = vmul.f32 %v1078_v44, %v1078_v44  ;;  %v1591_v52 = vmul.f32 %v1079_v45, %v1079_v45  ;;  %v1081_v53 = vmul.f32 %v569_v41, %v569_v41 }
 0x1ad   : > { %v2098_v57 = vmul.f32 %v1586_v46, %v562_v22  ;;  %v2099_v58 = vmul.f32 %v1587_v47, %v563_v23  ;;  %v2100_v59 = vmul.f32 %v1588_v48, %v564_v24  ;;  %v1592_v60 = vmul.f32 %v1080_v49, %v1080_v49  ;;  %v578_v22 = vld [vmem:[%s3069_s30 + $0xdc0] sm:$0xff]  ;;  %v579_v23 = vld [vmem:[%s3069_s30 + $0xdc8] sm:$0xff]  ;;  %v580_v24 = vld [vmem:[%s3069_s30 + $0xdd0] sm:$0xff] }
 0x1ae   : > { %v2101_v0 = vmul.f32 %v1589_v50, %v565_v29  ;;  %v2102_v1 = vmul.f32 %v1590_v51, %v566_v30  ;;  %v2103_v2 = vmul.f32 %v1591_v52, %v567_v31  ;;  %v1593_v3 = vmul.f32 %v1081_v53, %v1081_v53  ;;  %v581_v29 = vld [vmem:[%s3069_s30 + $0xdd8] sm:$0xff]  ;;  %v582_v30 = vld [vmem:[%s3069_s30 + $0xde0] sm:$0xff]  ;;  %v583_v31 = vld [vmem:[%s3069_s30 + $0xde8] sm:$0xff] }
 0x1af   : > { %2610 = vst [vmem:[%s3092_s17 + $0xd40] sm:$0xff] %v2098_v57  ;;  %2611 = vst [vmem:[%s3092_s17 + $0xd48] sm:$0xff] %v2099_v58  ;;  %v2104_v5 = vmul.f32 %v1592_v60, %v568_v36  ;;  %v1082_v6 = vmul.f32 %v570_v54, %v570_v54  ;;  %v1083_v7 = vmul.f32 %v571_v55, %v571_v55  ;;  %v584_v36 = vld [vmem:[%s3069_s30 + $0xdf0] sm:$0xff] }
 0x1b0   : > { %2612 = vst [vmem:[%s3092_s17 + $0xd50] sm:$0xff] %v2100_v59  ;;  %v1084_v8 = vmul.f32 %v572_v56, %v572_v56  ;;  %2613 = vst [vmem:[%s3092_s17 + $0xd58] sm:$0xff] %v2101_v0  ;;  %v2105_v10 = vmul.f32 %v1593_v3, %v569_v41  ;;  %v1085_v11 = vmul.f32 %v573_v61, %v573_v61  ;;  %v585_v41 = vld [vmem:[%s3069_s30 + $0xdf8] sm:$0xff] }
 0x1b1   : > { %2614 = vst [vmem:[%s3092_s17 + $0xd60] sm:$0xff] %v2102_v1  ;;  %2615 = vst [vmem:[%s3092_s17 + $0xd68] sm:$0xff] %v2103_v2  ;;  %v1086_v12 = vmul.f32 %v574_v62, %v574_v62  ;;  %v1087_v13 = vmul.f32 %v575_v63, %v575_v63  ;;  %v1594_v14 = vmul.f32 %v1082_v6, %v1082_v6 }
 0x1b2   : > { %2616 = vst [vmem:[%s3092_s17 + $0xd70] sm:$0xff] %v2104_v5  ;;  %v1595_v15 = vmul.f32 %v1083_v7, %v1083_v7  ;;  %v1596_v16 = vmul.f32 %v1084_v8, %v1084_v8  ;;  %v1088_v17 = vmul.f32 %v576_v4, %v576_v4  ;;  %2617 = vst [vmem:[%s3092_s17 + $0xd78] sm:$0xff] %v2105_v10 }
 0x1b3   : > { %v1597_v18 = vmul.f32 %v1085_v11, %v1085_v11  ;;  %v1598_v19 = vmul.f32 %v1086_v12, %v1086_v12  ;;  %v1599_v20 = vmul.f32 %v1087_v13, %v1087_v13  ;;  %v1089_v21 = vmul.f32 %v577_v9, %v577_v9 }
 0x1b4   : > { %v2106_v25 = vmul.f32 %v1594_v14, %v570_v54  ;;  %v2107_v26 = vmul.f32 %v1595_v15, %v571_v55  ;;  %v2108_v27 = vmul.f32 %v1596_v16, %v572_v56  ;;  %v1600_v28 = vmul.f32 %v1088_v17, %v1088_v17  ;;  %v586_v54 = vld [vmem:[%s3069_s30 + $0xe00] sm:$0xff]  ;;  %v587_v55 = vld [vmem:[%s3069_s30 + $0xe08] sm:$0xff]  ;;  %v588_v56 = vld [vmem:[%s3069_s30 + $0xe10] sm:$0xff] }
 0x1b5   : > { %v2109_v32 = vmul.f32 %v1597_v18, %v573_v61  ;;  %v2110_v33 = vmul.f32 %v1598_v19, %v574_v62  ;;  %v2111_v34 = vmul.f32 %v1599_v20, %v575_v63  ;;  %v1601_v35 = vmul.f32 %v1089_v21, %v1089_v21  ;;  %v589_v61 = vld [vmem:[%s3069_s30 + $0xe18] sm:$0xff]  ;;  %v590_v62 = vld [vmem:[%s3069_s30 + $0xe20] sm:$0xff]  ;;  %v591_v63 = vld [vmem:[%s3069_s30 + $0xe28] sm:$0xff] }
 0x1b6   : > { %2618 = vst [vmem:[%s3092_s17 + $0xd80] sm:$0xff] %v2106_v25  ;;  %2619 = vst [vmem:[%s3092_s17 + $0xd88] sm:$0xff] %v2107_v26  ;;  %v2112_v37 = vmul.f32 %v1600_v28, %v576_v4  ;;  %v1090_v38 = vmul.f32 %v578_v22, %v578_v22  ;;  %v1091_v39 = vmul.f32 %v579_v23, %v579_v23  ;;  %v592_v4 = vld [vmem:[%s3069_s30 + $0xe30] sm:$0xff] }
 0x1b7   : > { %2620 = vst [vmem:[%s3092_s17 + $0xd90] sm:$0xff] %v2108_v27  ;;  %v1092_v40 = vmul.f32 %v580_v24, %v580_v24  ;;  %2621 = vst [vmem:[%s3092_s17 + $0xd98] sm:$0xff] %v2109_v32  ;;  %v2113_v42 = vmul.f32 %v1601_v35, %v577_v9  ;;  %v1093_v43 = vmul.f32 %v581_v29, %v581_v29  ;;  %v593_v9 = vld [vmem:[%s3069_s30 + $0xe38] sm:$0xff] }
 0x1b8   : > { %2622 = vst [vmem:[%s3092_s17 + $0xda0] sm:$0xff] %v2110_v33  ;;  %2623 = vst [vmem:[%s3092_s17 + $0xda8] sm:$0xff] %v2111_v34  ;;  %v1094_v44 = vmul.f32 %v582_v30, %v582_v30  ;;  %v1095_v45 = vmul.f32 %v583_v31, %v583_v31  ;;  %v1602_v46 = vmul.f32 %v1090_v38, %v1090_v38 }
 0x1b9   : > { %2624 = vst [vmem:[%s3092_s17 + $0xdb0] sm:$0xff] %v2112_v37  ;;  %v1603_v47 = vmul.f32 %v1091_v39, %v1091_v39  ;;  %v1604_v48 = vmul.f32 %v1092_v40, %v1092_v40  ;;  %v1096_v49 = vmul.f32 %v584_v36, %v584_v36  ;;  %2625 = vst [vmem:[%s3092_s17 + $0xdb8] sm:$0xff] %v2113_v42 }
 0x1ba   : > { %v1605_v50 = vmul.f32 %v1093_v43, %v1093_v43  ;;  %v1606_v51 = vmul.f32 %v1094_v44, %v1094_v44  ;;  %v1607_v52 = vmul.f32 %v1095_v45, %v1095_v45  ;;  %v1097_v53 = vmul.f32 %v585_v41, %v585_v41 }
 0x1bb   : > { %v2114_v57 = vmul.f32 %v1602_v46, %v578_v22  ;;  %v2115_v58 = vmul.f32 %v1603_v47, %v579_v23  ;;  %v2116_v59 = vmul.f32 %v1604_v48, %v580_v24  ;;  %v1608_v60 = vmul.f32 %v1096_v49, %v1096_v49  ;;  %v594_v22 = vld [vmem:[%s3069_s30 + $0xe40] sm:$0xff]  ;;  %v595_v23 = vld [vmem:[%s3069_s30 + $0xe48] sm:$0xff]  ;;  %v596_v24 = vld [vmem:[%s3069_s30 + $0xe50] sm:$0xff] }
 0x1bc   : > { %v2117_v0 = vmul.f32 %v1605_v50, %v581_v29  ;;  %v2118_v1 = vmul.f32 %v1606_v51, %v582_v30  ;;  %v2119_v2 = vmul.f32 %v1607_v52, %v583_v31  ;;  %v1609_v3 = vmul.f32 %v1097_v53, %v1097_v53  ;;  %v597_v29 = vld [vmem:[%s3069_s30 + $0xe58] sm:$0xff]  ;;  %v598_v30 = vld [vmem:[%s3069_s30 + $0xe60] sm:$0xff]  ;;  %v599_v31 = vld [vmem:[%s3069_s30 + $0xe68] sm:$0xff] }
 0x1bd   : > { %2626 = vst [vmem:[%s3092_s17 + $0xdc0] sm:$0xff] %v2114_v57  ;;  %2627 = vst [vmem:[%s3092_s17 + $0xdc8] sm:$0xff] %v2115_v58  ;;  %v2120_v5 = vmul.f32 %v1608_v60, %v584_v36  ;;  %v1098_v6 = vmul.f32 %v586_v54, %v586_v54  ;;  %v1099_v7 = vmul.f32 %v587_v55, %v587_v55  ;;  %v600_v36 = vld [vmem:[%s3069_s30 + $0xe70] sm:$0xff] }
 0x1be   : > { %2628 = vst [vmem:[%s3092_s17 + $0xdd0] sm:$0xff] %v2116_v59  ;;  %v1100_v8 = vmul.f32 %v588_v56, %v588_v56  ;;  %2629 = vst [vmem:[%s3092_s17 + $0xdd8] sm:$0xff] %v2117_v0  ;;  %v2121_v10 = vmul.f32 %v1609_v3, %v585_v41  ;;  %v1101_v11 = vmul.f32 %v589_v61, %v589_v61  ;;  %v601_v41 = vld [vmem:[%s3069_s30 + $0xe78] sm:$0xff] }
 0x1bf   : > { %2630 = vst [vmem:[%s3092_s17 + $0xde0] sm:$0xff] %v2118_v1  ;;  %2631 = vst [vmem:[%s3092_s17 + $0xde8] sm:$0xff] %v2119_v2  ;;  %v1102_v12 = vmul.f32 %v590_v62, %v590_v62  ;;  %v1103_v13 = vmul.f32 %v591_v63, %v591_v63  ;;  %v1610_v14 = vmul.f32 %v1098_v6, %v1098_v6 }
 0x1c0   : > { %2632 = vst [vmem:[%s3092_s17 + $0xdf0] sm:$0xff] %v2120_v5  ;;  %v1611_v15 = vmul.f32 %v1099_v7, %v1099_v7  ;;  %v1612_v16 = vmul.f32 %v1100_v8, %v1100_v8  ;;  %v1104_v17 = vmul.f32 %v592_v4, %v592_v4  ;;  %2633 = vst [vmem:[%s3092_s17 + $0xdf8] sm:$0xff] %v2121_v10 }
 0x1c1   : > { %v1613_v18 = vmul.f32 %v1101_v11, %v1101_v11  ;;  %v1614_v19 = vmul.f32 %v1102_v12, %v1102_v12  ;;  %v1615_v20 = vmul.f32 %v1103_v13, %v1103_v13  ;;  %v1105_v21 = vmul.f32 %v593_v9, %v593_v9 }
 0x1c2   : > { %v2122_v25 = vmul.f32 %v1610_v14, %v586_v54  ;;  %v2123_v26 = vmul.f32 %v1611_v15, %v587_v55  ;;  %v2124_v27 = vmul.f32 %v1612_v16, %v588_v56  ;;  %v1616_v28 = vmul.f32 %v1104_v17, %v1104_v17  ;;  %v602_v54 = vld [vmem:[%s3069_s30 + $0xe80] sm:$0xff]  ;;  %v603_v55 = vld [vmem:[%s3069_s30 + $0xe88] sm:$0xff]  ;;  %v604_v56 = vld [vmem:[%s3069_s30 + $0xe90] sm:$0xff] }
 0x1c3   : > { %v2125_v32 = vmul.f32 %v1613_v18, %v589_v61  ;;  %v2126_v33 = vmul.f32 %v1614_v19, %v590_v62  ;;  %v2127_v34 = vmul.f32 %v1615_v20, %v591_v63  ;;  %v1617_v35 = vmul.f32 %v1105_v21, %v1105_v21  ;;  %v605_v61 = vld [vmem:[%s3069_s30 + $0xe98] sm:$0xff]  ;;  %v606_v62 = vld [vmem:[%s3069_s30 + $0xea0] sm:$0xff]  ;;  %v607_v63 = vld [vmem:[%s3069_s30 + $0xea8] sm:$0xff] }
 0x1c4   : > { %2634 = vst [vmem:[%s3092_s17 + $0xe00] sm:$0xff] %v2122_v25  ;;  %2635 = vst [vmem:[%s3092_s17 + $0xe08] sm:$0xff] %v2123_v26  ;;  %v2128_v37 = vmul.f32 %v1616_v28, %v592_v4  ;;  %v1106_v38 = vmul.f32 %v594_v22, %v594_v22  ;;  %v1107_v39 = vmul.f32 %v595_v23, %v595_v23  ;;  %v608_v4 = vld [vmem:[%s3069_s30 + $0xeb0] sm:$0xff] }
 0x1c5   : > { %2636 = vst [vmem:[%s3092_s17 + $0xe10] sm:$0xff] %v2124_v27  ;;  %v1108_v40 = vmul.f32 %v596_v24, %v596_v24  ;;  %2637 = vst [vmem:[%s3092_s17 + $0xe18] sm:$0xff] %v2125_v32  ;;  %v2129_v42 = vmul.f32 %v1617_v35, %v593_v9  ;;  %v1109_v43 = vmul.f32 %v597_v29, %v597_v29  ;;  %v609_v9 = vld [vmem:[%s3069_s30 + $0xeb8] sm:$0xff] }
 0x1c6   : > { %2638 = vst [vmem:[%s3092_s17 + $0xe20] sm:$0xff] %v2126_v33  ;;  %2639 = vst [vmem:[%s3092_s17 + $0xe28] sm:$0xff] %v2127_v34  ;;  %v1110_v44 = vmul.f32 %v598_v30, %v598_v30  ;;  %v1111_v45 = vmul.f32 %v599_v31, %v599_v31  ;;  %v1618_v46 = vmul.f32 %v1106_v38, %v1106_v38 }
 0x1c7   : > { %2640 = vst [vmem:[%s3092_s17 + $0xe30] sm:$0xff] %v2128_v37  ;;  %v1619_v47 = vmul.f32 %v1107_v39, %v1107_v39  ;;  %v1620_v48 = vmul.f32 %v1108_v40, %v1108_v40  ;;  %v1112_v49 = vmul.f32 %v600_v36, %v600_v36  ;;  %2641 = vst [vmem:[%s3092_s17 + $0xe38] sm:$0xff] %v2129_v42 }
 0x1c8   : > { %v1621_v50 = vmul.f32 %v1109_v43, %v1109_v43  ;;  %v1622_v51 = vmul.f32 %v1110_v44, %v1110_v44  ;;  %v1623_v52 = vmul.f32 %v1111_v45, %v1111_v45  ;;  %v1113_v53 = vmul.f32 %v601_v41, %v601_v41 }
 0x1c9   : > { %v2130_v57 = vmul.f32 %v1618_v46, %v594_v22  ;;  %v2131_v58 = vmul.f32 %v1619_v47, %v595_v23  ;;  %v2132_v59 = vmul.f32 %v1620_v48, %v596_v24  ;;  %v1624_v60 = vmul.f32 %v1112_v49, %v1112_v49  ;;  %v610_v22 = vld [vmem:[%s3069_s30 + $0xec0] sm:$0xff]  ;;  %v611_v23 = vld [vmem:[%s3069_s30 + $0xec8] sm:$0xff]  ;;  %v612_v24 = vld [vmem:[%s3069_s30 + $0xed0] sm:$0xff] }
 0x1ca   : > { %v2133_v0 = vmul.f32 %v1621_v50, %v597_v29  ;;  %v2134_v1 = vmul.f32 %v1622_v51, %v598_v30  ;;  %v2135_v2 = vmul.f32 %v1623_v52, %v599_v31  ;;  %v1625_v3 = vmul.f32 %v1113_v53, %v1113_v53  ;;  %v613_v29 = vld [vmem:[%s3069_s30 + $0xed8] sm:$0xff]  ;;  %v614_v30 = vld [vmem:[%s3069_s30 + $0xee0] sm:$0xff]  ;;  %v615_v31 = vld [vmem:[%s3069_s30 + $0xee8] sm:$0xff] }
 0x1cb   : > { %2642 = vst [vmem:[%s3092_s17 + $0xe40] sm:$0xff] %v2130_v57  ;;  %2643 = vst [vmem:[%s3092_s17 + $0xe48] sm:$0xff] %v2131_v58  ;;  %v2136_v5 = vmul.f32 %v1624_v60, %v600_v36  ;;  %v1114_v6 = vmul.f32 %v602_v54, %v602_v54  ;;  %v1115_v7 = vmul.f32 %v603_v55, %v603_v55  ;;  %v616_v36 = vld [vmem:[%s3069_s30 + $0xef0] sm:$0xff] }
 0x1cc   : > { %2644 = vst [vmem:[%s3092_s17 + $0xe50] sm:$0xff] %v2132_v59  ;;  %v1116_v8 = vmul.f32 %v604_v56, %v604_v56  ;;  %2645 = vst [vmem:[%s3092_s17 + $0xe58] sm:$0xff] %v2133_v0  ;;  %v2137_v10 = vmul.f32 %v1625_v3, %v601_v41  ;;  %v1117_v11 = vmul.f32 %v605_v61, %v605_v61  ;;  %v617_v41 = vld [vmem:[%s3069_s30 + $0xef8] sm:$0xff] }
 0x1cd   : > { %2646 = vst [vmem:[%s3092_s17 + $0xe60] sm:$0xff] %v2134_v1  ;;  %2647 = vst [vmem:[%s3092_s17 + $0xe68] sm:$0xff] %v2135_v2  ;;  %v1118_v12 = vmul.f32 %v606_v62, %v606_v62  ;;  %v1119_v13 = vmul.f32 %v607_v63, %v607_v63  ;;  %v1626_v14 = vmul.f32 %v1114_v6, %v1114_v6 }
 0x1ce   : > { %2648 = vst [vmem:[%s3092_s17 + $0xe70] sm:$0xff] %v2136_v5  ;;  %v1627_v15 = vmul.f32 %v1115_v7, %v1115_v7  ;;  %v1628_v16 = vmul.f32 %v1116_v8, %v1116_v8  ;;  %v1120_v17 = vmul.f32 %v608_v4, %v608_v4  ;;  %2649 = vst [vmem:[%s3092_s17 + $0xe78] sm:$0xff] %v2137_v10 }
 0x1cf   : > { %v1629_v18 = vmul.f32 %v1117_v11, %v1117_v11  ;;  %v1630_v19 = vmul.f32 %v1118_v12, %v1118_v12  ;;  %v1631_v20 = vmul.f32 %v1119_v13, %v1119_v13  ;;  %v1121_v21 = vmul.f32 %v609_v9, %v609_v9 }
 0x1d0   : > { %v2138_v25 = vmul.f32 %v1626_v14, %v602_v54  ;;  %v2139_v26 = vmul.f32 %v1627_v15, %v603_v55  ;;  %v2140_v27 = vmul.f32 %v1628_v16, %v604_v56  ;;  %v1632_v28 = vmul.f32 %v1120_v17, %v1120_v17  ;;  %v618_v54 = vld [vmem:[%s3069_s30 + $0xf00] sm:$0xff]  ;;  %v619_v55 = vld [vmem:[%s3069_s30 + $0xf08] sm:$0xff]  ;;  %v620_v56 = vld [vmem:[%s3069_s30 + $0xf10] sm:$0xff] }
 0x1d1   : > { %v2141_v32 = vmul.f32 %v1629_v18, %v605_v61  ;;  %v2142_v33 = vmul.f32 %v1630_v19, %v606_v62  ;;  %v2143_v34 = vmul.f32 %v1631_v20, %v607_v63  ;;  %v1633_v35 = vmul.f32 %v1121_v21, %v1121_v21  ;;  %v621_v61 = vld [vmem:[%s3069_s30 + $0xf18] sm:$0xff]  ;;  %v622_v62 = vld [vmem:[%s3069_s30 + $0xf20] sm:$0xff]  ;;  %v623_v63 = vld [vmem:[%s3069_s30 + $0xf28] sm:$0xff] }
 0x1d2   : > { %2650 = vst [vmem:[%s3092_s17 + $0xe80] sm:$0xff] %v2138_v25  ;;  %2651 = vst [vmem:[%s3092_s17 + $0xe88] sm:$0xff] %v2139_v26  ;;  %v2144_v37 = vmul.f32 %v1632_v28, %v608_v4  ;;  %v1122_v38 = vmul.f32 %v610_v22, %v610_v22  ;;  %v1123_v39 = vmul.f32 %v611_v23, %v611_v23  ;;  %v624_v4 = vld [vmem:[%s3069_s30 + $0xf30] sm:$0xff] }
 0x1d3   : > { %2652 = vst [vmem:[%s3092_s17 + $0xe90] sm:$0xff] %v2140_v27  ;;  %v1124_v40 = vmul.f32 %v612_v24, %v612_v24  ;;  %2653 = vst [vmem:[%s3092_s17 + $0xe98] sm:$0xff] %v2141_v32  ;;  %v2145_v42 = vmul.f32 %v1633_v35, %v609_v9  ;;  %v1125_v43 = vmul.f32 %v613_v29, %v613_v29  ;;  %v625_v9 = vld [vmem:[%s3069_s30 + $0xf38] sm:$0xff] }
 0x1d4   : > { %2654 = vst [vmem:[%s3092_s17 + $0xea0] sm:$0xff] %v2142_v33  ;;  %2655 = vst [vmem:[%s3092_s17 + $0xea8] sm:$0xff] %v2143_v34  ;;  %v1126_v44 = vmul.f32 %v614_v30, %v614_v30  ;;  %v1127_v45 = vmul.f32 %v615_v31, %v615_v31  ;;  %v1634_v46 = vmul.f32 %v1122_v38, %v1122_v38 }
 0x1d5   : > { %2656 = vst [vmem:[%s3092_s17 + $0xeb0] sm:$0xff] %v2144_v37  ;;  %v1635_v47 = vmul.f32 %v1123_v39, %v1123_v39  ;;  %v1636_v48 = vmul.f32 %v1124_v40, %v1124_v40  ;;  %v1128_v49 = vmul.f32 %v616_v36, %v616_v36  ;;  %2657 = vst [vmem:[%s3092_s17 + $0xeb8] sm:$0xff] %v2145_v42 }
 0x1d6   : > { %v1637_v50 = vmul.f32 %v1125_v43, %v1125_v43  ;;  %v1638_v51 = vmul.f32 %v1126_v44, %v1126_v44  ;;  %v1639_v52 = vmul.f32 %v1127_v45, %v1127_v45  ;;  %v1129_v53 = vmul.f32 %v617_v41, %v617_v41 }
 0x1d7   : > { %v2146_v57 = vmul.f32 %v1634_v46, %v610_v22  ;;  %v2147_v58 = vmul.f32 %v1635_v47, %v611_v23  ;;  %v2148_v59 = vmul.f32 %v1636_v48, %v612_v24  ;;  %v1640_v60 = vmul.f32 %v1128_v49, %v1128_v49  ;;  %v626_v22 = vld [vmem:[%s3069_s30 + $0xf40] sm:$0xff]  ;;  %v627_v23 = vld [vmem:[%s3069_s30 + $0xf48] sm:$0xff]  ;;  %v628_v24 = vld [vmem:[%s3069_s30 + $0xf50] sm:$0xff] }
 0x1d8   : > { %v2149_v0 = vmul.f32 %v1637_v50, %v613_v29  ;;  %v2150_v1 = vmul.f32 %v1638_v51, %v614_v30  ;;  %v2151_v2 = vmul.f32 %v1639_v52, %v615_v31  ;;  %v1641_v3 = vmul.f32 %v1129_v53, %v1129_v53  ;;  %v629_v29 = vld [vmem:[%s3069_s30 + $0xf58] sm:$0xff]  ;;  %v630_v30 = vld [vmem:[%s3069_s30 + $0xf60] sm:$0xff]  ;;  %v631_v31 = vld [vmem:[%s3069_s30 + $0xf68] sm:$0xff] }
 0x1d9   : > { %2658 = vst [vmem:[%s3092_s17 + $0xec0] sm:$0xff] %v2146_v57  ;;  %2659 = vst [vmem:[%s3092_s17 + $0xec8] sm:$0xff] %v2147_v58  ;;  %v2152_v5 = vmul.f32 %v1640_v60, %v616_v36  ;;  %v1130_v6 = vmul.f32 %v618_v54, %v618_v54  ;;  %v1131_v7 = vmul.f32 %v619_v55, %v619_v55  ;;  %v632_v36 = vld [vmem:[%s3069_s30 + $0xf70] sm:$0xff] }
 0x1da   : > { %2660 = vst [vmem:[%s3092_s17 + $0xed0] sm:$0xff] %v2148_v59  ;;  %v1132_v8 = vmul.f32 %v620_v56, %v620_v56  ;;  %2661 = vst [vmem:[%s3092_s17 + $0xed8] sm:$0xff] %v2149_v0  ;;  %v2153_v10 = vmul.f32 %v1641_v3, %v617_v41  ;;  %v1133_v11 = vmul.f32 %v621_v61, %v621_v61  ;;  %v633_v41 = vld [vmem:[%s3069_s30 + $0xf78] sm:$0xff] }
 0x1db   : > { %2662 = vst [vmem:[%s3092_s17 + $0xee0] sm:$0xff] %v2150_v1  ;;  %2663 = vst [vmem:[%s3092_s17 + $0xee8] sm:$0xff] %v2151_v2  ;;  %v1134_v12 = vmul.f32 %v622_v62, %v622_v62  ;;  %v1135_v13 = vmul.f32 %v623_v63, %v623_v63  ;;  %v1642_v14 = vmul.f32 %v1130_v6, %v1130_v6 }
 0x1dc   : > { %2664 = vst [vmem:[%s3092_s17 + $0xef0] sm:$0xff] %v2152_v5  ;;  %v1643_v15 = vmul.f32 %v1131_v7, %v1131_v7  ;;  %v1644_v16 = vmul.f32 %v1132_v8, %v1132_v8  ;;  %v1136_v17 = vmul.f32 %v624_v4, %v624_v4  ;;  %2665 = vst [vmem:[%s3092_s17 + $0xef8] sm:$0xff] %v2153_v10 }
 0x1dd   : > { %v1645_v18 = vmul.f32 %v1133_v11, %v1133_v11  ;;  %v1646_v19 = vmul.f32 %v1134_v12, %v1134_v12  ;;  %v1647_v20 = vmul.f32 %v1135_v13, %v1135_v13  ;;  %v1137_v21 = vmul.f32 %v625_v9, %v625_v9 }
 0x1de   : > { %v2154_v25 = vmul.f32 %v1642_v14, %v618_v54  ;;  %v2155_v26 = vmul.f32 %v1643_v15, %v619_v55  ;;  %v2156_v27 = vmul.f32 %v1644_v16, %v620_v56  ;;  %v1648_v28 = vmul.f32 %v1136_v17, %v1136_v17  ;;  %v634_v54 = vld [vmem:[%s3069_s30 + $0xf80] sm:$0xff]  ;;  %v635_v55 = vld [vmem:[%s3069_s30 + $0xf88] sm:$0xff]  ;;  %v636_v56 = vld [vmem:[%s3069_s30 + $0xf90] sm:$0xff] }
 0x1df   : > { %v2157_v32 = vmul.f32 %v1645_v18, %v621_v61  ;;  %v2158_v33 = vmul.f32 %v1646_v19, %v622_v62  ;;  %v2159_v34 = vmul.f32 %v1647_v20, %v623_v63  ;;  %v1649_v35 = vmul.f32 %v1137_v21, %v1137_v21  ;;  %v637_v61 = vld [vmem:[%s3069_s30 + $0xf98] sm:$0xff]  ;;  %v638_v62 = vld [vmem:[%s3069_s30 + $0xfa0] sm:$0xff]  ;;  %v639_v63 = vld [vmem:[%s3069_s30 + $0xfa8] sm:$0xff] }
 0x1e0   : > { %2666 = vst [vmem:[%s3092_s17 + $0xf00] sm:$0xff] %v2154_v25  ;;  %2667 = vst [vmem:[%s3092_s17 + $0xf08] sm:$0xff] %v2155_v26  ;;  %v2160_v37 = vmul.f32 %v1648_v28, %v624_v4  ;;  %v1138_v38 = vmul.f32 %v626_v22, %v626_v22  ;;  %v1139_v39 = vmul.f32 %v627_v23, %v627_v23  ;;  %v640_v4 = vld [vmem:[%s3069_s30 + $0xfb0] sm:$0xff] }
 0x1e1   : > { %2668 = vst [vmem:[%s3092_s17 + $0xf10] sm:$0xff] %v2156_v27  ;;  %v1140_v40 = vmul.f32 %v628_v24, %v628_v24  ;;  %2669 = vst [vmem:[%s3092_s17 + $0xf18] sm:$0xff] %v2157_v32  ;;  %v2161_v42 = vmul.f32 %v1649_v35, %v625_v9  ;;  %v1141_v43 = vmul.f32 %v629_v29, %v629_v29  ;;  %v641_v9 = vld [vmem:[%s3069_s30 + $0xfb8] sm:$0xff] }
 0x1e2   : > { %2670 = vst [vmem:[%s3092_s17 + $0xf20] sm:$0xff] %v2158_v33  ;;  %2671 = vst [vmem:[%s3092_s17 + $0xf28] sm:$0xff] %v2159_v34  ;;  %v1142_v44 = vmul.f32 %v630_v30, %v630_v30  ;;  %v1143_v45 = vmul.f32 %v631_v31, %v631_v31  ;;  %v1650_v46 = vmul.f32 %v1138_v38, %v1138_v38 }
 0x1e3   : > { %2672 = vst [vmem:[%s3092_s17 + $0xf30] sm:$0xff] %v2160_v37  ;;  %v1651_v47 = vmul.f32 %v1139_v39, %v1139_v39  ;;  %v1652_v48 = vmul.f32 %v1140_v40, %v1140_v40  ;;  %v1144_v49 = vmul.f32 %v632_v36, %v632_v36  ;;  %2673 = vst [vmem:[%s3092_s17 + $0xf38] sm:$0xff] %v2161_v42 }
 0x1e4   : > { %v1653_v50 = vmul.f32 %v1141_v43, %v1141_v43  ;;  %v1654_v51 = vmul.f32 %v1142_v44, %v1142_v44  ;;  %v1655_v52 = vmul.f32 %v1143_v45, %v1143_v45  ;;  %v1145_v53 = vmul.f32 %v633_v41, %v633_v41 }
 0x1e5   : > { %v2162_v57 = vmul.f32 %v1650_v46, %v626_v22  ;;  %v2163_v58 = vmul.f32 %v1651_v47, %v627_v23  ;;  %v2164_v59 = vmul.f32 %v1652_v48, %v628_v24  ;;  %v1656_v60 = vmul.f32 %v1144_v49, %v1144_v49  ;;  %v642_v22 = vld [vmem:[%s3069_s30 + $0xfc0] sm:$0xff]  ;;  %v643_v23 = vld [vmem:[%s3069_s30 + $0xfc8] sm:$0xff]  ;;  %v644_v24 = vld [vmem:[%s3069_s30 + $0xfd0] sm:$0xff] }
 0x1e6   : > { %v2165_v0 = vmul.f32 %v1653_v50, %v629_v29  ;;  %v2166_v1 = vmul.f32 %v1654_v51, %v630_v30  ;;  %v2167_v2 = vmul.f32 %v1655_v52, %v631_v31  ;;  %v1657_v3 = vmul.f32 %v1145_v53, %v1145_v53  ;;  %v645_v29 = vld [vmem:[%s3069_s30 + $0xfd8] sm:$0xff]  ;;  %v646_v30 = vld [vmem:[%s3069_s30 + $0xfe0] sm:$0xff]  ;;  %v647_v31 = vld [vmem:[%s3069_s30 + $0xfe8] sm:$0xff] }
 0x1e7   : > { %2674 = vst [vmem:[%s3092_s17 + $0xf40] sm:$0xff] %v2162_v57  ;;  %2675 = vst [vmem:[%s3092_s17 + $0xf48] sm:$0xff] %v2163_v58  ;;  %v2168_v5 = vmul.f32 %v1656_v60, %v632_v36  ;;  %v1146_v6 = vmul.f32 %v634_v54, %v634_v54  ;;  %v1147_v7 = vmul.f32 %v635_v55, %v635_v55  ;;  %v648_v36 = vld [vmem:[%s3069_s30 + $0xff0] sm:$0xff] }
 0x1e8   : > { %2676 = vst [vmem:[%s3092_s17 + $0xf50] sm:$0xff] %v2164_v59  ;;  %v1148_v8 = vmul.f32 %v636_v56, %v636_v56  ;;  %2677 = vst [vmem:[%s3092_s17 + $0xf58] sm:$0xff] %v2165_v0  ;;  %v2169_v10 = vmul.f32 %v1657_v3, %v633_v41  ;;  %v1149_v11 = vmul.f32 %v637_v61, %v637_v61  ;;  %v649_v41 = vld [vmem:[%s3069_s30 + $0xff8] sm:$0xff] }
 0x1e9   : > { %2678 = vst [vmem:[%s3092_s17 + $0xf60] sm:$0xff] %v2166_v1  ;;  %2679 = vst [vmem:[%s3092_s17 + $0xf68] sm:$0xff] %v2167_v2  ;;  %v1150_v12 = vmul.f32 %v638_v62, %v638_v62  ;;  %v1151_v13 = vmul.f32 %v639_v63, %v639_v63  ;;  %v1658_v14 = vmul.f32 %v1146_v6, %v1146_v6 }
 0x1ea   : > { %2680 = vst [vmem:[%s3092_s17 + $0xf70] sm:$0xff] %v2168_v5  ;;  %v1659_v15 = vmul.f32 %v1147_v7, %v1147_v7  ;;  %v1660_v16 = vmul.f32 %v1148_v8, %v1148_v8  ;;  %v1152_v17 = vmul.f32 %v640_v4, %v640_v4  ;;  %2681 = vst [vmem:[%s3092_s17 + $0xf78] sm:$0xff] %v2169_v10 }
 0x1eb   : > { %v1661_v18 = vmul.f32 %v1149_v11, %v1149_v11  ;;  %v1662_v19 = vmul.f32 %v1150_v12, %v1150_v12  ;;  %v1663_v20 = vmul.f32 %v1151_v13, %v1151_v13  ;;  %v1153_v21 = vmul.f32 %v641_v9, %v641_v9 }
 0x1ec   : > { %v2170_v25 = vmul.f32 %v1658_v14, %v634_v54  ;;  %v2171_v26 = vmul.f32 %v1659_v15, %v635_v55  ;;  %v2172_v27 = vmul.f32 %v1660_v16, %v636_v56  ;;  %v1664_v28 = vmul.f32 %v1152_v17, %v1152_v17 }
 0x1ed   : > { %v2173_v32 = vmul.f32 %v1661_v18, %v637_v61  ;;  %v2174_v33 = vmul.f32 %v1662_v19, %v638_v62  ;;  %v2175_v34 = vmul.f32 %v1663_v20, %v639_v63  ;;  %v1665_v35 = vmul.f32 %v1153_v21, %v1153_v21 }
 0x1ee   : > { %2682 = vst [vmem:[%s3092_s17 + $0xf80] sm:$0xff] %v2170_v25  ;;  %2683 = vst [vmem:[%s3092_s17 + $0xf88] sm:$0xff] %v2171_v26  ;;  %v2176_v37 = vmul.f32 %v1664_v28, %v640_v4  ;;  %v1154_v38 = vmul.f32 %v642_v22, %v642_v22  ;;  %v1155_v39 = vmul.f32 %v643_v23, %v643_v23 }
 0x1ef   : > { %2684 = vst [vmem:[%s3092_s17 + $0xf90] sm:$0xff] %v2172_v27  ;;  %v1156_v40 = vmul.f32 %v644_v24, %v644_v24  ;;  %2685 = vst [vmem:[%s3092_s17 + $0xf98] sm:$0xff] %v2173_v32  ;;  %v2177_v42 = vmul.f32 %v1665_v35, %v641_v9  ;;  %v1157_v43 = vmul.f32 %v645_v29, %v645_v29 }
 0x1f0   : > { %2686 = vst [vmem:[%s3092_s17 + $0xfa0] sm:$0xff] %v2174_v33  ;;  %2687 = vst [vmem:[%s3092_s17 + $0xfa8] sm:$0xff] %v2175_v34  ;;  %v1158_v44 = vmul.f32 %v646_v30, %v646_v30  ;;  %v1159_v45 = vmul.f32 %v647_v31, %v647_v31  ;;  %v1666_v46 = vmul.f32 %v1154_v38, %v1154_v38 }
 0x1f1   : > { %2688 = vst [vmem:[%s3092_s17 + $0xfb0] sm:$0xff] %v2176_v37  ;;  %v1667_v47 = vmul.f32 %v1155_v39, %v1155_v39  ;;  %v1668_v48 = vmul.f32 %v1156_v40, %v1156_v40  ;;  %v1160_v49 = vmul.f32 %v648_v36, %v648_v36  ;;  %2689 = vst [vmem:[%s3092_s17 + $0xfb8] sm:$0xff] %v2177_v42 }
 0x1f2   : > { %v1669_v50 = vmul.f32 %v1157_v43, %v1157_v43  ;;  %v1670_v51 = vmul.f32 %v1158_v44, %v1158_v44  ;;  %v1671_v52 = vmul.f32 %v1159_v45, %v1159_v45  ;;  %v1161_v53 = vmul.f32 %v649_v41, %v649_v41 }
 0x1f3   : > { %v2178_v54 = vmul.f32 %v1666_v46, %v642_v22  ;;  %v2179_v55 = vmul.f32 %v1667_v47, %v643_v23  ;;  %v2180_v56 = vmul.f32 %v1668_v48, %v644_v24  ;;  %v1672_v57 = vmul.f32 %v1160_v49, %v1160_v49 }
 0x1f4   : > { %v2181_v58 = vmul.f32 %v1669_v50, %v645_v29  ;;  %v2182_v59 = vmul.f32 %v1670_v51, %v646_v30  ;;  %v2183_v60 = vmul.f32 %v1671_v52, %v647_v31  ;;  %v1673_v61 = vmul.f32 %v1161_v53, %v1161_v53 }
 0x1f5   : > { %2690 = vst [vmem:[%s3092_s17 + $0xfc0] sm:$0xff] %v2178_v54  ;;  %2691 = vst [vmem:[%s3092_s17 + $0xfc8] sm:$0xff] %v2179_v55  ;;  %v2184_v62 = vmul.f32 %v1672_v57, %v648_v36 }
 0x1f6   : > { %2692 = vst [vmem:[%s3092_s17 + $0xfd0] sm:$0xff] %v2180_v56  ;;  %2693 = vst [vmem:[%s3092_s17 + $0xfd8] sm:$0xff] %v2181_v58  ;;  %v2185_v63 = vmul.f32 %v1673_v61, %v649_v41 }
 0x1f7   : > { %2694 = vst [vmem:[%s3092_s17 + $0xfe0] sm:$0xff] %v2182_v59  ;;  %2695 = vst [vmem:[%s3092_s17 + $0xfe8] sm:$0xff] %v2183_v60 }
 0x1f8   : > { %2696 = vst [vmem:[%s3092_s17 + $0xff0] sm:$0xff] %v2184_v62  ;;  %2697 = vst [vmem:[%s3092_s17 + $0xff8] sm:$0xff] %v2185_v63 }
 0x1f9   : > { %2897 = shalt.err (!%p2894_p10)
}
 0x1fa   : > { %s2898_s13 = scalar_lea.hbm %s4103_s29, 65536  ;;  %s2902_s20 = scalar_lea.hbm %s4154_s1, 131072 }
 0x1fb   : > { %p2899_p0 = scmp.ne.s32.totalorder %s4103_s29, %s2898_s13  ;;  %p2903_p1 = scmp.lt.s32.totalorder %s4103_s29, %s4154_s1 }
 0x1fc   : > { %p2904_p3 = scmp.lt.s32.totalorder %s2902_s20, %s2898_s13 }
 0x1fd   : > { %p2900_p2 = pnand %p2899_p0, %p4163_p12 }
 0x1fe   : > { %p2905_p6 = por %p2904_p3, %p2903_p1 }
 0x1ff   : > { %p2901_p9 = pneg %p2900_p2 }
 0x201   : > { %p2906_p11 = pnand %p2905_p6, %p2901_p9 }
 0x203   : > { %2909 = shalt.err (!%p2906_p11)
}
 0x204   : > { %s2954_s24 = smov 2048   ;;  %s2955_s26 = smov 128  }
 0x205   : > { %2808 = dma.vmem_to_hbm [thread:$0]  (%p4163_p12), %s4105_s27, 65536, %s4103_s29, %s2699_s2, %s2954_s24, %s2954_s24, %s2955_s26  }
 0x206 PF: > { %s2728_s30 = sand.u32 1, %s2936_s6   ;;  %p4164_p13 = scmp.ne.s32.totalorder %s4160_s19, 0 }
 0x207   : > { %p4165_p4 = scmp.ge.s32.totalorder %s2948_s9, 2  ;;  %s2729_s17 = scalar_lea.sflag [#allocation4], %s2728_s30 }
 0x209   : > { %p2815_p5 = pnand %p4165_p4, %p4164_p13 }
 0x20b   : > { %p2816_p7 = pneg %p2815_p5 }
 0x20d   : > { %2931 = dma.done.wait (%p2816_p7), %s2729_s17, 65536  }
 0x20e   : > { %2933 = vsyncadd (%p2816_p7), %s2729_s17, 4294901760  ;;  %p14_p8 = scmp.ge.s32.totalorder %s2991_s12, 4   ;;  %s4166_s6 = smov %s2940_s7 }
 0x20f   : > { %s4167_s7 = smov %s2944_s8  ;;  %s4168_s8 = smov %s3003_s15 }
 0x210   : > { %s4169_s9 = smov %s2991_s12  ;;  %16 = sbr.rel (!%p14_p8) target bundleno = 5 (0x5), region = 69 }
 0x215   :  { %2734 = vsyncpa [#allocation3], 1 }
 0x216   :  { %2736 = vsyncpa [#allocation3 + $0x1], 1 }
 0x217   :  { %2737 = vsyncpa [#allocation4], 1 }
 0x218   :  { %2739 = vsyncpa [#allocation4 + $0x1], 1 }

</bundles_post_ra>
